<compile_context>
chip_gen: v5e
topology: v5e:2x2
jax: 0.10.0
libtpu: 0.0.40
codegen_flags: <defaults>
</compile_context>

<pallas_src>
import functools
import math

import jax
import jax.numpy as jnp
from jax import lax
from jax.experimental import pallas as pl
from jax.experimental.pallas import tpu as pltpu

COMPUTE_DTYPE = jnp.bfloat16          # MXU operand / inter-stage dtype (f32 accumulation)
_INV_SQRT2 = 1.0 / math.sqrt(2.0)


# --------------------------- budget / tile helpers ---------------------------
@functools.lru_cache(maxsize=None)
def _vmem_budget():
    """(vmem_limit_bytes, target_rows_per_tile) derived from the TPU generation."""
    limit, rows = 48 * 1024 * 1024, 512           # safe everywhere (v7x has 64 MiB/TC)
    try:
        cap = int(pltpu.get_tpu_info().vmem_capacity_bytes)
        limit = min(max(cap * 3 // 4, 32 * 1024 * 1024), 100 * 1024 * 1024)
        if cap >= 96 * 1024 * 1024:               # v5e / v6e (128 MiB): bigger tiles
            rows = 1024
    except Exception:
        pass
    return limit, rows


def _largest_divisor_leq(n, cap):
    cap = max(1, min(n, cap))
    for d in range(cap, 0, -1):
        if n % d == 0:
            return d
    return 1


def _pick_bt_tile(bt, n_tokens, target_rows):
    cap = max(1, target_rows // max(n_tokens, 1))
    if bt >= 2:
        cap = min(cap, bt // 2)       # >=2 grid steps: keeps both v7x TCs busy
    return _largest_divisor_leq(bt, cap)


def _pick_spatial_tile(n_tokens, t, target_rows, min_tiles=1):
    """K2 spatial tile: a multiple of 8 (sublane) dividing N, near target_rows/T rows."""
    cap = max(1, target_rows // max(t, 1))
    if min_tiles > 1:
        cap = min(cap, max(1, n_tokens // min_tiles))
    best = 0
    for d in range(1, n_tokens + 1):
        if n_tokens % d == 0 and d % 8 == 0 and d <= cap and d > best:
            best = d
    if best:
        return best
    if n_tokens % 8 == 0:
        return 8                      # smallest aligned divisor: keeps the block bounded
    # TODO(synk): pad N to a multiple of 8 (masked tail tile) instead of a full-N block.
    return n_tokens


# ---------------- K1: LN1 + QKV + batched MHA + proj + residual --------------
def _attn_block_kernel(x_ref, n1w_ref, n1b_ref, qkvw_ref, projw_ref, projb_ref,
                       o_ref, q_sc, k_sc, v_sc, attn_sc, *, num_heads, eps):
    g, n, c = x_ref.shape
    dh = c // num_heads

    # LayerNorm(norm1) in f32 (biased variance, matches nn.LayerNorm).
    xb = x_ref[...].astype(jnp.float32)
    mean = jnp.mean(xb, axis=-1, keepdims=True)
    var = jnp.mean((xb - mean) ** 2, axis=-1, keepdims=True)
    xn = (xb - mean) * lax.rsqrt(var + eps)
    xn = xn * n1w_ref[...] + n1b_ref[...]

    # QKV projection (qkv_bias=False); attention scale is pre-folded into the Q columns.
    qkv = jnp.dot(xn.reshape(g * n, c).astype(COMPUTE_DTYPE), qkvw_ref[...],
                  preferred_element_type=jnp.float32)
    qkv = qkv.astype(COMPUTE_DTYPE).reshape(g, n, 3 * c)     # single f32->bf16 cast

    # Stage q/k/v into (heads, groups, N, dh) bf16 VMEM scratch so the whole multi-head
    # attention runs as ONE batched einsum over heads*groups (single MXU stream, no
    # per-head f32 temporaries, no lane-axis concatenate).
    for h in range(num_heads):
        q_sc[h] = qkv[:, :, h * dh:(h + 1) * dh]
        k_sc[h] = qkv[:, :, c + h * dh:c + (h + 1) * dh]
        v_sc[h] = qkv[:, :, 2 * c + h * dh:2 * c + (h + 1) * dh]

    b = num_heads * g
    q = q_sc[...].reshape(b, n, dh)
    k = k_sc[...].reshape(b, n, dh)
    v = v_sc[...].reshape(b, n, dh)
    s = jnp.einsum('bnd,bmd->bnm', q, k, preferred_element_type=jnp.float32)
    m = jnp.max(s, axis=-1, keepdims=True)
    p = jnp.exp(s - m)
    p = p * pl.reciprocal(jnp.sum(p, axis=-1, keepdims=True), approx=True)
    o = jnp.einsum('bnm,bmd->bnd', p.astype(COMPUTE_DTYPE), v,
                   preferred_element_type=jnp.float32)

    # Re-assemble a lane-dense (groups, N, C) layout for the wide output projection.
    o = o.astype(COMPUTE_DTYPE).reshape(num_heads, g, n, dh)
    for h in range(num_heads):
        attn_sc[:, :, h * dh:(h + 1) * dh] = o[h]

    # Output projection + residual (drop / drop_path are identity).  x_ref is re-read
    # here so the f32 input copy is not kept live across the whole attention body.
    proj = jnp.dot(attn_sc[...].reshape(g * n, c), projw_ref[...],
                   preferred_element_type=jnp.float32) + projb_ref[...]
    o_ref[...] = (x_ref[...].astype(jnp.float32) + proj.reshape(g, n, c)).astype(o_ref.dtype)


# -------- K2: LN2 + fc1 + GELU + fc2 + temporal Conv1d + residual ------------
def _mlp_tconv_block_kernel(x_ref, n2w_ref, n2b_ref, fc1w_ref, fc1b_ref,
                            fc2w_ref, fc2b_ref, convw_ref, convb_ref,
                            o_ref, conv_sc, *, eps):
    _, t, p_sp, c = x_ref.shape
    x2d = x_ref[0].astype(jnp.float32).reshape(t * p_sp, c)

    # LayerNorm(norm2) in f32.
    mean = jnp.mean(x2d, axis=-1, keepdims=True)
    var = jnp.mean((x2d - mean) ** 2, axis=-1, keepdims=True)
    xn = (x2d - mean) * lax.rsqrt(var + eps)
    xn = xn * n2w_ref[...] + n2b_ref[...]

    # Mlp: fc1 -> exact-erf GELU -> fc2; the (rows, 4C) hidden never leaves VMEM.
    h = jnp.dot(xn.astype(COMPUTE_DTYPE), fc1w_ref[...],
                preferred_element_type=jnp.float32) + fc1b_ref[...]
    # TODO(synk): tanh-approx GELU (EUP op) is faster on v6e/v7x but deviates ~1e-3 from
    # nn.GELU's default exact-erf form, so the exact erf form is kept for parity.
    h = 0.5 * h * (1.0 + lax.erf(h * _INV_SQRT2))
    mlp = jnp.dot(h.astype(COMPUTE_DTYPE), fc2w_ref[...],
                  preferred_element_type=jnp.float32) + fc2b_ref[...]
    mlp = mlp.astype(COMPUTE_DTYPE)

    # Temporal Conv1d(k=3, padding=1): three (C, C) tap matmuls accumulated at shifted
    # positions along the leading T axis of a f32 VMEM scratch:
    #   y[t] = b + A0[t-1] + A1[t] + A2[t+1],   A_k = mlp @ W_k^T
    conv_sc[...] = (jnp.dot(mlp, convw_ref[1], preferred_element_type=jnp.float32)
                    .reshape(t, p_sp, c) + convb_ref[...])
    if t > 1:
        a0 = jnp.dot(mlp, convw_ref[0],
                     preferred_element_type=jnp.float32).reshape(t, p_sp, c)
        conv_sc[1:] = conv_sc[1:] + a0[:-1]
        a2 = jnp.dot(mlp, convw_ref[2],
                     preferred_element_type=jnp.float32).reshape(t, p_sp, c)
        conv_sc[:-1] = conv_sc[:-1] + a2[1:]

    # Residual add (drop_path = identity); re-read x_ref so no f32 copy stays live.
    o_ref[0] = (x_ref[0].astype(jnp.float32) + conv_sc[...]).astype(o_ref.dtype)


# ------------------------------ Block forward --------------------------------
def block_forward(x, p, size, B, T, num_heads, eps=1e-5):
    BT, N, C = x.shape
    Hs, Ws = size
    assert BT == B * T and N == Hs * Ws and C % num_heads == 0
    dh = C // num_heads
    hidden = p["fc1_w"].shape[1]
    vmem_limit, target_rows = _vmem_budget()
    # NOTE: production configs should keep C (ideally dh) a multiple of 128 so every
    # load/store/MXU operand is lane-dense; the demo dim=32 is just a smoke test.

    # ---- Stage 1: x = x + proj(MHA(LN1(x))) --------------------------------
    bt_tile = _pick_bt_tile(BT, N, target_rows)
    x1 = pl.pallas_call(
        functools.partial(_attn_block_kernel, num_heads=num_heads, eps=eps),
        # Inter-stage residual stream kept in bf16 to halve the K1-write / K2-read HBM
        # traffic (set to x.dtype for a full-precision stream if needed).
        out_shape=jax.ShapeDtypeStruct((BT, N, C), COMPUTE_DTYPE),
        grid=(BT // bt_tile,),
        in_specs=[
            pl.BlockSpec((bt_tile, N, C), lambda i: (i, 0, 0)),
            pl.BlockSpec((1, C), lambda i: (0, 0)),
            pl.BlockSpec((1, C), lambda i: (0, 0)),
            pl.BlockSpec((C, 3 * C), lambda i: (0, 0)),
            pl.BlockSpec((C, C), lambda i: (0, 0)),
            pl.BlockSpec((1, C), lambda i: (0, 0)),
        ],
        out_specs=pl.BlockSpec((bt_tile, N, C), lambda i: (i, 0, 0)),
        scratch_shapes=[
            pltpu.VMEM((num_heads, bt_tile, N, dh), COMPUTE_DTYPE),   # q (head-batched)
            pltpu.VMEM((num_heads, bt_tile, N, dh), COMPUTE_DTYPE),   # k
            pltpu.VMEM((num_heads, bt_tile, N, dh), COMPUTE_DTYPE),   # v
            pltpu.VMEM((bt_tile, N, C), COMPUTE_DTYPE),               # attn out (lane-dense)
        ],
        compiler_params=pltpu.CompilerParams(
            dimension_semantics=("parallel",),
            vmem_limit_bytes=vmem_limit),
    )(x, p["norm1_w"], p["norm1_b"], p["qkv_w"], p["proj_w"], p["proj_b"])

    # ---- Stage 2: x = x + TemporalConv(Mlp(LN2(x))) ------------------------
    # View the residual stream as (B, T, N, C): the '(b t)(h w) c -> (b h w) c t'
    # rearranges become free reshapes; each grid step owns all T frames of a spatial
    # tile, so MLP + temporal conv + residual fuse in one kernel.
    x1_4d = x1.reshape(B, T, N, C)
    n_tile = _pick_spatial_tile(N, T, target_rows, min_tiles=1 if B >= 2 else 2)
    y = pl.pallas_call(
        functools.partial(_mlp_tconv_block_kernel, eps=eps),
        out_shape=jax.ShapeDtypeStruct((B, T, N, C), x.dtype),
        grid=(B, N // n_tile),
        in_specs=[
            pl.BlockSpec((1, T, n_tile, C), lambda b, j: (b, 0, j, 0)),
            pl.BlockSpec((1, C), lambda b, j: (0, 0)),
            pl.BlockSpec((1, C), lambda b, j: (0, 0)),
            pl.BlockSpec((C, hidden), lambda b, j: (0, 0)),
            pl.BlockSpec((1, hidden), lambda b, j: (0, 0)),
            pl.BlockSpec((hidden, C), lambda b, j: (0, 0)),
            pl.BlockSpec((1, C), lambda b, j: (0, 0)),
            pl.BlockSpec((3, C, C), lambda b, j: (0, 0, 0)),
            pl.BlockSpec((1, C), lambda b, j: (0, 0)),
        ],
        out_specs=pl.BlockSpec((1, T, n_tile, C), lambda b, j: (b, 0, j, 0)),
        scratch_shapes=[pltpu.VMEM((T, n_tile, C), jnp.float32)],     # conv accumulator
        compiler_params=pltpu.CompilerParams(
            dimension_semantics=("parallel", "parallel"),
            vmem_limit_bytes=vmem_limit),
    )(x1_4d, p["norm2_w"], p["norm2_b"], p["fc1_w"], p["fc1_b"],
      p["fc2_w"], p["fc2_b"], p["conv_w"], p["conv_b"])

    return y.reshape(BT, N, C)


# ------------------------------ Parameter init --------------------------------
def init_params(key, dim, num_heads, mlp_ratio):
    hidden = int(dim * mlp_ratio)
    dh = dim // num_heads
    scale = dh ** -0.5
    ks = jax.random.split(key, 8)
    s = 0.05
    f32 = jnp.float32
    wdt = COMPUTE_DTYPE   # matmul weights stored in bf16 (f32 accumulation in-kernel)

    p = {}
    p["norm1_w"] = (1.0 + 0.01 * jnp.arange(dim, dtype=f32)).reshape(1, dim)
    p["norm1_b"] = (0.005 * jnp.arange(dim, dtype=f32)).reshape(1, dim)
    p["norm2_w"] = (1.0 - 0.01 * jnp.arange(dim, dtype=f32)).reshape(1, dim)
    p["norm2_b"] = (-0.005 * jnp.arange(dim, dtype=f32)).reshape(1, dim)

    # Linear weights stored transposed to (in, out) for x @ W.  qkv_bias=False -> no
    # bias.  qkv_w columns are ordered (3, heads, dh) exactly like the PyTorch qkv
    # output reshape, and the attention scale (dh**-0.5) is folded into the Q columns
    # so the kernel never multiplies q by scale.
    qkv_w = s * jax.random.normal(ks[0], (dim, 3 * dim), f32)
    qkv_w = qkv_w.at[:, :dim].multiply(scale)
    p["qkv_w"] = qkv_w.astype(wdt)
    p["proj_w"] = (s * jax.random.normal(ks[1], (dim, dim), f32)).astype(wdt)
    p["proj_b"] = (s * jax.random.normal(ks[2], (dim,), f32)).reshape(1, dim)

    p["fc1_w"] = (s * jax.random.normal(ks[3], (dim, hidden), f32)).astype(wdt)
    p["fc1_b"] = (s * jax.random.normal(ks[4], (hidden,), f32)).reshape(1, hidden)
    p["fc2_w"] = (s * jax.random.normal(ks[5], (hidden, dim), f32)).astype(wdt)
    p["fc2_b"] = (s * jax.random.normal(ks[6], (dim,), f32)).reshape(1, dim)

    # Conv1d weight in PyTorch layout (C_out, C_in, K=3): stored as (3, C_in, C_out) so
    # each tap is a leading-axis index and y[t] = b + sum_k mlp[t+k-1] @ conv_w[k].
    conv_w = s * jax.random.normal(ks[7], (dim, dim, 3), f32)
    p["conv_w"] = jnp.stack([conv_w[:, :, 0].T, conv_w[:, :, 1].T, conv_w[:, :, 2].T],
                            axis=0).astype(wdt)
    p["conv_b"] = (0.01 * jnp.arange(dim, dtype=f32)).reshape(1, dim)
    return p


if __name__ == "__main__":
    # Small shapes consistent with the module's forward contract:
    #   x: (B*T, H*W, dim), size=(H, W)
    B, T, Hs, Ws = 2, 4, 4, 4
    dim, num_heads, mlp_ratio = 32, 4, 4.0
    size = (Hs, Ws)
    N = Hs * Ws

    key = jax.random.PRNGKey(0)
    k_in, k_par = jax.random.split(key)
    x = jax.random.normal(k_in, (B * T, N, dim), dtype=jnp.float32)
    params = init_params(k_par, dim, num_heads, mlp_ratio)

    fwd = jax.jit(functools.partial(block_forward, size=size, B=B, T=T, num_heads=num_heads))
    out = jax.block_until_ready(fwd(x, params))
    assert out.shape == (B * T, N, dim) and bool(jnp.all(jnp.isfinite(out)))
    # TODO(synk): Dropout / DropPath are identity here (p=0.0 module defaults), so no RNG path.
    print("KERNEL_OK")
</pallas_src>

<mosaic_0001>
module attributes {stable_mosaic.version = 11 : i64} {
  func.func @_mlp_tconv_block_kernel(%arg0: i32, %arg1: i32, %arg2: memref<1x4x16x32xbf16, #tpu.memory_space<vmem>>, %arg3: memref<1x32xf32, #tpu.memory_space<vmem>>, %arg4: memref<1x32xf32, #tpu.memory_space<vmem>>, %arg5: memref<32x128xbf16, #tpu.memory_space<vmem>>, %arg6: memref<1x128xf32, #tpu.memory_space<vmem>>, %arg7: memref<128x32xbf16, #tpu.memory_space<vmem>>, %arg8: memref<1x32xf32, #tpu.memory_space<vmem>>, %arg9: memref<3x32x32xbf16, #tpu.memory_space<vmem>>, %arg10: memref<1x32xf32, #tpu.memory_space<vmem>>, %arg11: memref<1x4x16x32xf32, #tpu.memory_space<vmem>>, %arg12: memref<4x16x32xf32, #tpu.memory_space<vmem>>) attributes {dimension_semantics = [#tpu.dimension_semantics<parallel>, #tpu.dimension_semantics<parallel>], iteration_bounds = array<i64: 2, 1>, scalar_prefetch = 0 : i64, scratch_operands = 1 : i64, tpu.core_type = #tpu.core_type<tc>, window_params = [{transform_indices = @transform_0, window_bounds = array<i64: 1, 4, 16, 32>}, {pipeline_mode = #tpu.pipeline_mode<synchronous>, transform_indices = @transform_1, window_bounds = array<i64: 1, 32>}, {pipeline_mode = #tpu.pipeline_mode<synchronous>, transform_indices = @transform_2, window_bounds = array<i64: 1, 32>}, {pipeline_mode = #tpu.pipeline_mode<synchronous>, transform_indices = @transform_3, window_bounds = array<i64: 32, 128>}, {pipeline_mode = #tpu.pipeline_mode<synchronous>, transform_indices = @transform_4, window_bounds = array<i64: 1, 128>}, {pipeline_mode = #tpu.pipeline_mode<synchronous>, transform_indices = @transform_5, window_bounds = array<i64: 128, 32>}, {pipeline_mode = #tpu.pipeline_mode<synchronous>, transform_indices = @transform_6, window_bounds = array<i64: 1, 32>}, {pipeline_mode = #tpu.pipeline_mode<synchronous>, transform_indices = @transform_7, window_bounds = array<i64: 3, 32, 32>}, {pipeline_mode = #tpu.pipeline_mode<synchronous>, transform_indices = @transform_8, window_bounds = array<i64: 1, 32>}, {transform_indices = @transform_9, window_bounds = array<i64: 1, 4, 16, 32>}]} {
    %c0 = arith.constant 0 : index
    %c0_0 = arith.constant 0 : index
    %c0_1 = arith.constant 0 : index
    %c0_2 = arith.constant 0 : index
    %0 = vector.load %arg2[%c0, %c0_0, %c0_1, %c0_2] : memref<1x4x16x32xbf16, #tpu.memory_space<vmem>>, vector<1x4x16x32xbf16>
    %1 = vector.shape_cast %0 : vector<1x4x16x32xbf16> to vector<4x16x32xbf16>
    %2 = arith.extf %1 : vector<4x16x32xbf16> to vector<4x16x32xf32>
    %3 = vector.shape_cast %2 : vector<4x16x32xf32> to vector<64x32xf32>
    %cst = arith.constant dense<0.000000e+00> : vector<64xf32>
    %4 = vector.multi_reduction <add>, %3, %cst [1] : vector<64x32xf32> to vector<64xf32>
    %5 = vector.shape_cast %4 : vector<64xf32> to vector<64x1xf32>
    %cst_3 = arith.constant 3.200000e+01 : f32
    %6 = vector.broadcast %cst_3 : f32 to vector<64x1xf32>
    %7 = arith.divf %5, %6 : vector<64x1xf32>
    %8 = vector.broadcast %7 : vector<64x1xf32> to vector<64x32xf32>
    %9 = arith.subf %3, %8 : vector<64x32xf32>
    %10 = arith.mulf %9, %9 : vector<64x32xf32>
    %cst_4 = arith.constant dense<0.000000e+00> : vector<64xf32>
    %11 = vector.multi_reduction <add>, %10, %cst_4 [1] : vector<64x32xf32> to vector<64xf32>
    %12 = vector.shape_cast %11 : vector<64xf32> to vector<64x1xf32>
    %cst_5 = arith.constant 3.200000e+01 : f32
    %13 = vector.broadcast %cst_5 : f32 to vector<64x1xf32>
    %14 = arith.divf %12, %13 : vector<64x1xf32>
    %15 = vector.broadcast %7 : vector<64x1xf32> to vector<64x32xf32>
    %16 = arith.subf %3, %15 : vector<64x32xf32>
    %cst_6 = arith.constant 9.99999974E-6 : f32
    %17 = vector.broadcast %cst_6 : f32 to vector<64x1xf32>
    %18 = arith.addf %14, %17 : vector<64x1xf32>
    %19 = math.rsqrt %18 : vector<64x1xf32>
    %20 = vector.broadcast %19 : vector<64x1xf32> to vector<64x32xf32>
    %21 = arith.mulf %16, %20 : vector<64x32xf32>
    %c0_7 = arith.constant 0 : index
    %c0_8 = arith.constant 0 : index
    %22 = vector.load %arg3[%c0_7, %c0_8] : memref<1x32xf32, #tpu.memory_space<vmem>>, vector<1x32xf32>
    %23 = vector.broadcast %22 : vector<1x32xf32> to vector<64x32xf32>
    %24 = arith.mulf %21, %23 : vector<64x32xf32>
    %c0_9 = arith.constant 0 : index
    %c0_10 = arith.constant 0 : index
    %25 = vector.load %arg4[%c0_9, %c0_10] : memref<1x32xf32, #tpu.memory_space<vmem>>, vector<1x32xf32>
    %26 = vector.broadcast %25 : vector<1x32xf32> to vector<64x32xf32>
    %27 = arith.addf %24, %26 : vector<64x32xf32>
    %28 = arith.truncf %27 : vector<64x32xf32> to vector<64x32xbf16>
    %c0_11 = arith.constant 0 : index
    %c0_12 = arith.constant 0 : index
    %29 = vector.load %arg5[%c0_11, %c0_12] : memref<32x128xbf16, #tpu.memory_space<vmem>>, vector<32x128xbf16>
    %cst_13 = arith.constant dense<0.000000e+00> : vector<64x128xf32>
    %30 = tpu.matmul %28, %29, %cst_13 {dimension_numbers = #tpu.dot_dimension_numbers<[1], [0], [0], [1], [0, 0, 1, 1], [], []>} : vector<64x32xbf16>, vector<32x128xbf16>, vector<64x128xf32> -> vector<64x128xf32>
    %c0_14 = arith.constant 0 : index
    %c0_15 = arith.constant 0 : index
    %31 = vector.load %arg6[%c0_14, %c0_15] : memref<1x128xf32, #tpu.memory_space<vmem>>, vector<1x128xf32>
    %32 = vector.broadcast %31 : vector<1x128xf32> to vector<64x128xf32>
    %33 = arith.addf %30, %32 : vector<64x128xf32>
    %cst_16 = arith.constant 5.000000e-01 : f32
    %34 = vector.broadcast %cst_16 : f32 to vector<64x128xf32>
    %35 = arith.mulf %34, %33 : vector<64x128xf32>
    %cst_17 = arith.constant 0.707106769 : f32
    %36 = vector.broadcast %cst_17 : f32 to vector<64x128xf32>
    %37 = arith.mulf %33, %36 : vector<64x128xf32>
    %38 = math.erf %37 : vector<64x128xf32>
    %cst_18 = arith.constant 1.000000e+00 : f32
    %39 = vector.broadcast %cst_18 : f32 to vector<64x128xf32>
    %40 = arith.addf %39, %38 : vector<64x128xf32>
    %41 = arith.mulf %35, %40 : vector<64x128xf32>
    %42 = arith.truncf %41 : vector<64x128xf32> to vector<64x128xbf16>
    %c0_19 = arith.constant 0 : index
    %c0_20 = arith.constant 0 : index
    %43 = vector.load %arg7[%c0_19, %c0_20] : memref<128x32xbf16, #tpu.memory_space<vmem>>, vector<128x32xbf16>
    %cst_21 = arith.constant dense<0.000000e+00> : vector<64x32xf32>
    %44 = tpu.matmul %42, %43, %cst_21 {dimension_numbers = #tpu.dot_dimension_numbers<[1], [0], [0], [1], [0, 0, 1, 1], [], []>} : vector<64x128xbf16>, vector<128x32xbf16>, vector<64x32xf32> -> vector<64x32xf32>
    %c0_22 = arith.constant 0 : index
    %c0_23 = arith.constant 0 : index
    %45 = vector.load %arg8[%c0_22, %c0_23] : memref<1x32xf32, #tpu.memory_space<vmem>>, vector<1x32xf32>
    %46 = vector.broadcast %45 : vector<1x32xf32> to vector<64x32xf32>
    %47 = arith.addf %44, %46 : vector<64x32xf32>
    %48 = arith.truncf %47 : vector<64x32xf32> to vector<64x32xbf16>
    %c1 = arith.constant 1 : index
    %c0_24 = arith.constant 0 : index
    %c0_25 = arith.constant 0 : index
    %49 = vector.load %arg9[%c1, %c0_24, %c0_25] : memref<3x32x32xbf16, #tpu.memory_space<vmem>>, vector<1x32x32xbf16>
    %50 = vector.shape_cast %49 : vector<1x32x32xbf16> to vector<32x32xbf16>
    %cst_26 = arith.constant dense<0.000000e+00> : vector<64x32xf32>
    %51 = tpu.matmul %48, %50, %cst_26 {dimension_numbers = #tpu.dot_dimension_numbers<[1], [0], [0], [1], [0, 0, 1, 1], [], []>} : vector<64x32xbf16>, vector<32x32xbf16>, vector<64x32xf32> -> vector<64x32xf32>
    %52 = vector.shape_cast %51 : vector<64x32xf32> to vector<4x16x32xf32>
    %c0_27 = arith.constant 0 : index
    %c0_28 = arith.constant 0 : index
    %53 = vector.load %arg10[%c0_27, %c0_28] : memref<1x32xf32, #tpu.memory_space<vmem>>, vector<1x32xf32>
    %54 = vector.shape_cast %53 : vector<1x32xf32> to vector<1x1x32xf32>
    %55 = vector.broadcast %54 : vector<1x1x32xf32> to vector<4x16x32xf32>
    %56 = arith.addf %52, %55 : vector<4x16x32xf32>
    %c0_29 = arith.constant 0 : index
    %c0_30 = arith.constant 0 : index
    %c0_31 = arith.constant 0 : index
    %57 = vector.load %arg12[%c0_29, %c0_30, %c0_31] : memref<4x16x32xf32, #tpu.memory_space<vmem>>, vector<4x16x32xf32>
    tpu.vector_store %arg12[%c0_29, %c0_30, %c0_31], %56 {strides = array<i32>} : memref<4x16x32xf32, #tpu.memory_space<vmem>>, vector<4x16x32xf32>,
    %c0_32 = arith.constant 0 : index
    %c0_33 = arith.constant 0 : index
    %c0_34 = arith.constant 0 : index
    %58 = vector.load %arg9[%c0_32, %c0_33, %c0_34] : memref<3x32x32xbf16, #tpu.memory_space<vmem>>, vector<1x32x32xbf16>
    %59 = vector.shape_cast %58 : vector<1x32x32xbf16> to vector<32x32xbf16>
    %cst_35 = arith.constant dense<0.000000e+00> : vector<64x32xf32>
    %60 = tpu.matmul %48, %59, %cst_35 {dimension_numbers = #tpu.dot_dimension_numbers<[1], [0], [0], [1], [0, 0, 1, 1], [], []>} : vector<64x32xbf16>, vector<32x32xbf16>, vector<64x32xf32> -> vector<64x32xf32>
    %61 = vector.shape_cast %60 : vector<64x32xf32> to vector<4x16x32xf32>
    %c1_36 = arith.constant 1 : index
    %c0_37 = arith.constant 0 : index
    %c0_38 = arith.constant 0 : index
    %62 = vector.load %arg12[%c1_36, %c0_37, %c0_38] : memref<4x16x32xf32, #tpu.memory_space<vmem>>, vector<3x16x32xf32>
    %63 = vector.extract_strided_slice %61 {offsets = [0, 0, 0], sizes = [3, 16, 32], strides = [1, 1, 1]} : vector<4x16x32xf32> to vector<3x16x32xf32>
    %64 = arith.addf %62, %63 : vector<3x16x32xf32>
    %c1_39 = arith.constant 1 : index
    %c0_40 = arith.constant 0 : index
    %c0_41 = arith.constant 0 : index
    %65 = vector.load %arg12[%c1_39, %c0_40, %c0_41] : memref<4x16x32xf32, #tpu.memory_space<vmem>>, vector<3x16x32xf32>
    tpu.vector_store %arg12[%c1_39, %c0_40, %c0_41], %64 {strides = array<i32>} : memref<4x16x32xf32, #tpu.memory_space<vmem>>, vector<3x16x32xf32>,
    %c2 = arith.constant 2 : index
    %c0_42 = arith.constant 0 : index
    %c0_43 = arith.constant 0 : index
    %66 = vector.load %arg9[%c2, %c0_42, %c0_43] : memref<3x32x32xbf16, #tpu.memory_space<vmem>>, vector<1x32x32xbf16>
    %67 = vector.shape_cast %66 : vector<1x32x32xbf16> to vector<32x32xbf16>
    %cst_44 = arith.constant dense<0.000000e+00> : vector<64x32xf32>
    %68 = tpu.matmul %48, %67, %cst_44 {dimension_numbers = #tpu.dot_dimension_numbers<[1], [0], [0], [1], [0, 0, 1, 1], [], []>} : vector<64x32xbf16>, vector<32x32xbf16>, vector<64x32xf32> -> vector<64x32xf32>
    %69 = vector.shape_cast %68 : vector<64x32xf32> to vector<4x16x32xf32>
    %c0_45 = arith.constant 0 : index
    %c0_46 = arith.constant 0 : index
    %c0_47 = arith.constant 0 : index
    %70 = vector.load %arg12[%c0_45, %c0_46, %c0_47] : memref<4x16x32xf32, #tpu.memory_space<vmem>>, vector<3x16x32xf32>
    %71 = vector.extract_strided_slice %69 {offsets = [1, 0, 0], sizes = [3, 16, 32], strides = [1, 1, 1]} : vector<4x16x32xf32> to vector<3x16x32xf32>
    %72 = arith.addf %70, %71 : vector<3x16x32xf32>
    %c0_48 = arith.constant 0 : index
    %c0_49 = arith.constant 0 : index
    %c0_50 = arith.constant 0 : index
    %73 = vector.load %arg12[%c0_48, %c0_49, %c0_50] : memref<4x16x32xf32, #tpu.memory_space<vmem>>, vector<3x16x32xf32>
    tpu.vector_store %arg12[%c0_48, %c0_49, %c0_50], %72 {strides = array<i32>} : memref<4x16x32xf32, #tpu.memory_space<vmem>>, vector<3x16x32xf32>,
    %c0_51 = arith.constant 0 : index
    %c0_52 = arith.constant 0 : index
    %c0_53 = arith.constant 0 : index
    %c0_54 = arith.constant 0 : index
    %74 = vector.load %arg2[%c0_51, %c0_52, %c0_53, %c0_54] : memref<1x4x16x32xbf16, #tpu.memory_space<vmem>>, vector<1x4x16x32xbf16>
    %75 = vector.shape_cast %74 : vector<1x4x16x32xbf16> to vector<4x16x32xbf16>
    %76 = arith.extf %75 : vector<4x16x32xbf16> to vector<4x16x32xf32>
    %c0_55 = arith.constant 0 : index
    %c0_56 = arith.constant 0 : index
    %c0_57 = arith.constant 0 : index
    %77 = vector.load %arg12[%c0_55, %c0_56, %c0_57] : memref<4x16x32xf32, #tpu.memory_space<vmem>>, vector<4x16x32xf32>
    %78 = arith.addf %76, %77 : vector<4x16x32xf32>
    %c0_58 = arith.constant 0 : index
    %c0_59 = arith.constant 0 : index
    %c0_60 = arith.constant 0 : index
    %c0_61 = arith.constant 0 : index
    %79 = vector.load %arg11[%c0_58, %c0_59, %c0_60, %c0_61] : memref<1x4x16x32xf32, #tpu.memory_space<vmem>>, vector<1x4x16x32xf32>
    %80 = vector.shape_cast %79 : vector<1x4x16x32xf32> to vector<4x16x32xf32>
    %81 = vector.shape_cast %78 : vector<4x16x32xf32> to vector<1x4x16x32xf32>
    tpu.vector_store %arg11[%c0_58, %c0_59, %c0_60, %c0_61], %81 {strides = array<i32>} : memref<1x4x16x32xf32, #tpu.memory_space<vmem>>, vector<1x4x16x32xf32>,
    return
  }
  func.func @transform_0(%arg0: i32, %arg1: i32) -> (i32, i32, i32, i32) {
    %c0_i32 = arith.constant 0 : i32
    %c0_i32_0 = arith.constant 0 : i32
    %c0_i32_1 = arith.constant 0 : i32
    return %arg0, %c0_i32, %arg1, %c0_i32_0 : i32, i32, i32, i32
  }
  func.func @transform_1(%arg0: i32, %arg1: i32) -> (i32, i32) {
    %c0_i32 = arith.constant 0 : i32
    %c0_i32_0 = arith.constant 0 : i32
    %c0_i32_1 = arith.constant 0 : i32
    return %c0_i32, %c0_i32_0 : i32, i32
  }
  func.func @transform_2(%arg0: i32, %arg1: i32) -> (i32, i32) {
    %c0_i32 = arith.constant 0 : i32
    %c0_i32_0 = arith.constant 0 : i32
    %c0_i32_1 = arith.constant 0 : i32
    return %c0_i32, %c0_i32_0 : i32, i32
  }
  func.func @transform_3(%arg0: i32, %arg1: i32) -> (i32, i32) {
    %c0_i32 = arith.constant 0 : i32
    %c0_i32_0 = arith.constant 0 : i32
    %c0_i32_1 = arith.constant 0 : i32
    return %c0_i32, %c0_i32_0 : i32, i32
  }
  func.func @transform_4(%arg0: i32, %arg1: i32) -> (i32, i32) {
    %c0_i32 = arith.constant 0 : i32
    %c0_i32_0 = arith.constant 0 : i32
    %c0_i32_1 = arith.constant 0 : i32
    return %c0_i32, %c0_i32_0 : i32, i32
  }
  func.func @transform_5(%arg0: i32, %arg1: i32) -> (i32, i32) {
    %c0_i32 = arith.constant 0 : i32
    %c0_i32_0 = arith.constant 0 : i32
    %c0_i32_1 = arith.constant 0 : i32
    return %c0_i32, %c0_i32_0 : i32, i32
  }
  func.func @transform_6(%arg0: i32, %arg1: i32) -> (i32, i32) {
    %c0_i32 = arith.constant 0 : i32
    %c0_i32_0 = arith.constant 0 : i32
    %c0_i32_1 = arith.constant 0 : i32
    return %c0_i32, %c0_i32_0 : i32, i32
  }
  func.func @transform_7(%arg0: i32, %arg1: i32) -> (i32, i32, i32) {
    %c0_i32 = arith.constant 0 : i32
    %c0_i32_0 = arith.constant 0 : i32
    %c0_i32_1 = arith.constant 0 : i32
    %c0_i32_2 = arith.constant 0 : i32
    return %c0_i32, %c0_i32_0, %c0_i32_1 : i32, i32, i32
  }
  func.func @transform_8(%arg0: i32, %arg1: i32) -> (i32, i32) {
    %c0_i32 = arith.constant 0 : i32
    %c0_i32_0 = arith.constant 0 : i32
    %c0_i32_1 = arith.constant 0 : i32
    return %c0_i32, %c0_i32_0 : i32, i32
  }
  func.func @transform_9(%arg0: i32, %arg1: i32) -> (i32, i32, i32, i32) {
    %c0_i32 = arith.constant 0 : i32
    %c0_i32_0 = arith.constant 0 : i32
    %c0_i32_1 = arith.constant 0 : i32
    return %arg0, %c0_i32, %arg1, %c0_i32_0 : i32, i32, i32, i32
  }
}

module attributes {stable_mosaic.version = 11 : i64} {
  func.func @_attn_block_kernel(%arg0: i32, %arg1: memref<4x16x32xf32, #tpu.memory_space<vmem>>, %arg2: memref<1x32xf32, #tpu.memory_space<vmem>>, %arg3: memref<1x32xf32, #tpu.memory_space<vmem>>, %arg4: memref<32x96xbf16, #tpu.memory_space<vmem>>, %arg5: memref<32x32xbf16, #tpu.memory_space<vmem>>, %arg6: memref<1x32xf32, #tpu.memory_space<vmem>>, %arg7: memref<4x16x32xbf16, #tpu.memory_space<vmem>>, %arg8: memref<4x4x16x8xbf16, #tpu.memory_space<vmem>>, %arg9: memref<4x4x16x8xbf16, #tpu.memory_space<vmem>>, %arg10: memref<4x4x16x8xbf16, #tpu.memory_space<vmem>>, %arg11: memref<4x16x32xbf16, #tpu.memory_space<vmem>>) attributes {dimension_semantics = [#tpu.dimension_semantics<parallel>], iteration_bounds = array<i64: 2>, scalar_prefetch = 0 : i64, scratch_operands = 4 : i64, tpu.core_type = #tpu.core_type<tc>, window_params = [{transform_indices = @transform_0, window_bounds = array<i64: 4, 16, 32>}, {pipeline_mode = #tpu.pipeline_mode<synchronous>, transform_indices = @transform_1, window_bounds = array<i64: 1, 32>}, {pipeline_mode = #tpu.pipeline_mode<synchronous>, transform_indices = @transform_2, window_bounds = array<i64: 1, 32>}, {pipeline_mode = #tpu.pipeline_mode<synchronous>, transform_indices = @transform_3, window_bounds = array<i64: 32, 96>}, {pipeline_mode = #tpu.pipeline_mode<synchronous>, transform_indices = @transform_4, window_bounds = array<i64: 32, 32>}, {pipeline_mode = #tpu.pipeline_mode<synchronous>, transform_indices = @transform_5, window_bounds = array<i64: 1, 32>}, {transform_indices = @transform_6, window_bounds = array<i64: 4, 16, 32>}]} {
    %c0 = arith.constant 0 : index
    %c0_0 = arith.constant 0 : index
    %c0_1 = arith.constant 0 : index
    %0 = vector.load %arg1[%c0, %c0_0, %c0_1] : memref<4x16x32xf32, #tpu.memory_space<vmem>>, vector<4x16x32xf32>
    %cst = arith.constant dense<0.000000e+00> : vector<4x16xf32>
    %1 = vector.multi_reduction <add>, %0, %cst [2] : vector<4x16x32xf32> to vector<4x16xf32>
    %2 = vector.shape_cast %1 : vector<4x16xf32> to vector<4x16x1xf32>
    %cst_2 = arith.constant 3.200000e+01 : f32
    %3 = vector.broadcast %cst_2 : f32 to vector<4x16x1xf32>
    %4 = arith.divf %2, %3 : vector<4x16x1xf32>
    %5 = vector.broadcast %4 : vector<4x16x1xf32> to vector<4x16x32xf32>
    %6 = arith.subf %0, %5 : vector<4x16x32xf32>
    %7 = arith.mulf %6, %6 : vector<4x16x32xf32>
    %cst_3 = arith.constant dense<0.000000e+00> : vector<4x16xf32>
    %8 = vector.multi_reduction <add>, %7, %cst_3 [2] : vector<4x16x32xf32> to vector<4x16xf32>
    %9 = vector.shape_cast %8 : vector<4x16xf32> to vector<4x16x1xf32>
    %cst_4 = arith.constant 3.200000e+01 : f32
    %10 = vector.broadcast %cst_4 : f32 to vector<4x16x1xf32>
    %11 = arith.divf %9, %10 : vector<4x16x1xf32>
    %12 = vector.broadcast %4 : vector<4x16x1xf32> to vector<4x16x32xf32>
    %13 = arith.subf %0, %12 : vector<4x16x32xf32>
    %cst_5 = arith.constant 9.99999974E-6 : f32
    %14 = vector.broadcast %cst_5 : f32 to vector<4x16x1xf32>
    %15 = arith.addf %11, %14 : vector<4x16x1xf32>
    %16 = math.rsqrt %15 : vector<4x16x1xf32>
    %17 = vector.broadcast %16 : vector<4x16x1xf32> to vector<4x16x32xf32>
    %18 = arith.mulf %13, %17 : vector<4x16x32xf32>
    %c0_6 = arith.constant 0 : index
    %c0_7 = arith.constant 0 : index
    %19 = vector.load %arg2[%c0_6, %c0_7] : memref<1x32xf32, #tpu.memory_space<vmem>>, vector<1x32xf32>
    %20 = vector.shape_cast %19 : vector<1x32xf32> to vector<1x1x32xf32>
    %21 = vector.broadcast %20 : vector<1x1x32xf32> to vector<4x16x32xf32>
    %22 = arith.mulf %18, %21 : vector<4x16x32xf32>
    %c0_8 = arith.constant 0 : index
    %c0_9 = arith.constant 0 : index
    %23 = vector.load %arg3[%c0_8, %c0_9] : memref<1x32xf32, #tpu.memory_space<vmem>>, vector<1x32xf32>
    %24 = vector.shape_cast %23 : vector<1x32xf32> to vector<1x1x32xf32>
    %25 = vector.broadcast %24 : vector<1x1x32xf32> to vector<4x16x32xf32>
    %26 = arith.addf %22, %25 : vector<4x16x32xf32>
    %27 = vector.shape_cast %26 : vector<4x16x32xf32> to vector<64x32xf32>
    %28 = arith.truncf %27 : vector<64x32xf32> to vector<64x32xbf16>
    %c0_10 = arith.constant 0 : index
    %c0_11 = arith.constant 0 : index
    %29 = vector.load %arg4[%c0_10, %c0_11] : memref<32x96xbf16, #tpu.memory_space<vmem>>, vector<32x96xbf16>
    %cst_12 = arith.constant dense<0.000000e+00> : vector<64x96xf32>
    %30 = tpu.matmul %28, %29, %cst_12 {dimension_numbers = #tpu.dot_dimension_numbers<[1], [0], [0], [1], [0, 0, 1, 1], [], []>} : vector<64x32xbf16>, vector<32x96xbf16>, vector<64x96xf32> -> vector<64x96xf32>
    %31 = arith.truncf %30 : vector<64x96xf32> to vector<64x96xbf16>
    %32 = vector.shape_cast %31 : vector<64x96xbf16> to vector<4x16x96xbf16>
    %33 = vector.extract_strided_slice %32 {offsets = [0, 0, 0], sizes = [4, 16, 8], strides = [1, 1, 1]} : vector<4x16x96xbf16> to vector<4x16x8xbf16>
    %c0_13 = arith.constant 0 : index
    %c0_14 = arith.constant 0 : index
    %c0_15 = arith.constant 0 : index
    %c0_16 = arith.constant 0 : index
    %34 = vector.load %arg8[%c0_13, %c0_14, %c0_15, %c0_16] : memref<4x4x16x8xbf16, #tpu.memory_space<vmem>>, vector<1x4x16x8xbf16>
    %35 = vector.shape_cast %34 : vector<1x4x16x8xbf16> to vector<4x16x8xbf16>
    %36 = vector.shape_cast %33 : vector<4x16x8xbf16> to vector<1x4x16x8xbf16>
    tpu.vector_store %arg8[%c0_13, %c0_14, %c0_15, %c0_16], %36 {strides = array<i32>} : memref<4x4x16x8xbf16, #tpu.memory_space<vmem>>, vector<1x4x16x8xbf16>,
    %37 = vector.extract_strided_slice %32 {offsets = [0, 0, 32], sizes = [4, 16, 8], strides = [1, 1, 1]} : vector<4x16x96xbf16> to vector<4x16x8xbf16>
    %c0_17 = arith.constant 0 : index
    %c0_18 = arith.constant 0 : index
    %c0_19 = arith.constant 0 : index
    %c0_20 = arith.constant 0 : index
    %38 = vector.load %arg9[%c0_17, %c0_18, %c0_19, %c0_20] : memref<4x4x16x8xbf16, #tpu.memory_space<vmem>>, vector<1x4x16x8xbf16>
    %39 = vector.shape_cast %38 : vector<1x4x16x8xbf16> to vector<4x16x8xbf16>
    %40 = vector.shape_cast %37 : vector<4x16x8xbf16> to vector<1x4x16x8xbf16>
    tpu.vector_store %arg9[%c0_17, %c0_18, %c0_19, %c0_20], %40 {strides = array<i32>} : memref<4x4x16x8xbf16, #tpu.memory_space<vmem>>, vector<1x4x16x8xbf16>,
    %41 = vector.extract_strided_slice %32 {offsets = [0, 0, 64], sizes = [4, 16, 8], strides = [1, 1, 1]} : vector<4x16x96xbf16> to vector<4x16x8xbf16>
    %c0_21 = arith.constant 0 : index
    %c0_22 = arith.constant 0 : index
    %c0_23 = arith.constant 0 : index
    %c0_24 = arith.constant 0 : index
    %42 = vector.load %arg10[%c0_21, %c0_22, %c0_23, %c0_24] : memref<4x4x16x8xbf16, #tpu.memory_space<vmem>>, vector<1x4x16x8xbf16>
    %43 = vector.shape_cast %42 : vector<1x4x16x8xbf16> to vector<4x16x8xbf16>
    %44 = vector.shape_cast %41 : vector<4x16x8xbf16> to vector<1x4x16x8xbf16>
    tpu.vector_store %arg10[%c0_21, %c0_22, %c0_23, %c0_24], %44 {strides = array<i32>} : memref<4x4x16x8xbf16, #tpu.memory_space<vmem>>, vector<1x4x16x8xbf16>,
    %45 = vector.extract_strided_slice %32 {offsets = [0, 0, 8], sizes = [4, 16, 8], strides = [1, 1, 1]} : vector<4x16x96xbf16> to vector<4x16x8xbf16>
    %c1 = arith.constant 1 : index
    %c0_25 = arith.constant 0 : index
    %c0_26 = arith.constant 0 : index
    %c0_27 = arith.constant 0 : index
    %46 = vector.load %arg8[%c1, %c0_25, %c0_26, %c0_27] : memref<4x4x16x8xbf16, #tpu.memory_space<vmem>>, vector<1x4x16x8xbf16>
    %47 = vector.shape_cast %46 : vector<1x4x16x8xbf16> to vector<4x16x8xbf16>
    %48 = vector.shape_cast %45 : vector<4x16x8xbf16> to vector<1x4x16x8xbf16>
    tpu.vector_store %arg8[%c1, %c0_25, %c0_26, %c0_27], %48 {strides = array<i32>} : memref<4x4x16x8xbf16, #tpu.memory_space<vmem>>, vector<1x4x16x8xbf16>,
    %49 = vector.extract_strided_slice %32 {offsets = [0, 0, 40], sizes = [4, 16, 8], strides = [1, 1, 1]} : vector<4x16x96xbf16> to vector<4x16x8xbf16>
    %c1_28 = arith.constant 1 : index
    %c0_29 = arith.constant 0 : index
    %c0_30 = arith.constant 0 : index
    %c0_31 = arith.constant 0 : index
    %50 = vector.load %arg9[%c1_28, %c0_29, %c0_30, %c0_31] : memref<4x4x16x8xbf16, #tpu.memory_space<vmem>>, vector<1x4x16x8xbf16>
    %51 = vector.shape_cast %50 : vector<1x4x16x8xbf16> to vector<4x16x8xbf16>
    %52 = vector.shape_cast %49 : vector<4x16x8xbf16> to vector<1x4x16x8xbf16>
    tpu.vector_store %arg9[%c1_28, %c0_29, %c0_30, %c0_31], %52 {strides = array<i32>} : memref<4x4x16x8xbf16, #tpu.memory_space<vmem>>, vector<1x4x16x8xbf16>,
    %53 = vector.extract_strided_slice %32 {offsets = [0, 0, 72], sizes = [4, 16, 8], strides = [1, 1, 1]} : vector<4x16x96xbf16> to vector<4x16x8xbf16>
    %c1_32 = arith.constant 1 : index
    %c0_33 = arith.constant 0 : index
    %c0_34 = arith.constant 0 : index
    %c0_35 = arith.constant 0 : index
    %54 = vector.load %arg10[%c1_32, %c0_33, %c0_34, %c0_35] : memref<4x4x16x8xbf16, #tpu.memory_space<vmem>>, vector<1x4x16x8xbf16>
    %55 = vector.shape_cast %54 : vector<1x4x16x8xbf16> to vector<4x16x8xbf16>
    %56 = vector.shape_cast %53 : vector<4x16x8xbf16> to vector<1x4x16x8xbf16>
    tpu.vector_store %arg10[%c1_32, %c0_33, %c0_34, %c0_35], %56 {strides = array<i32>} : memref<4x4x16x8xbf16, #tpu.memory_space<vmem>>, vector<1x4x16x8xbf16>,
    %57 = vector.extract_strided_slice %32 {offsets = [0, 0, 16], sizes = [4, 16, 8], strides = [1, 1, 1]} : vector<4x16x96xbf16> to vector<4x16x8xbf16>
    %c2 = arith.constant 2 : index
    %c0_36 = arith.constant 0 : index
    %c0_37 = arith.constant 0 : index
    %c0_38 = arith.constant 0 : index
    %58 = vector.load %arg8[%c2, %c0_36, %c0_37, %c0_38] : memref<4x4x16x8xbf16, #tpu.memory_space<vmem>>, vector<1x4x16x8xbf16>
    %59 = vector.shape_cast %58 : vector<1x4x16x8xbf16> to vector<4x16x8xbf16>
    %60 = vector.shape_cast %57 : vector<4x16x8xbf16> to vector<1x4x16x8xbf16>
    tpu.vector_store %arg8[%c2, %c0_36, %c0_37, %c0_38], %60 {strides = array<i32>} : memref<4x4x16x8xbf16, #tpu.memory_space<vmem>>, vector<1x4x16x8xbf16>,
    %61 = vector.extract_strided_slice %32 {offsets = [0, 0, 48], sizes = [4, 16, 8], strides = [1, 1, 1]} : vector<4x16x96xbf16> to vector<4x16x8xbf16>
    %c2_39 = arith.constant 2 : index
    %c0_40 = arith.constant 0 : index
    %c0_41 = arith.constant 0 : index
    %c0_42 = arith.constant 0 : index
    %62 = vector.load %arg9[%c2_39, %c0_40, %c0_41, %c0_42] : memref<4x4x16x8xbf16, #tpu.memory_space<vmem>>, vector<1x4x16x8xbf16>
    %63 = vector.shape_cast %62 : vector<1x4x16x8xbf16> to vector<4x16x8xbf16>
    %64 = vector.shape_cast %61 : vector<4x16x8xbf16> to vector<1x4x16x8xbf16>
    tpu.vector_store %arg9[%c2_39, %c0_40, %c0_41, %c0_42], %64 {strides = array<i32>} : memref<4x4x16x8xbf16, #tpu.memory_space<vmem>>, vector<1x4x16x8xbf16>,
    %65 = vector.extract_strided_slice %32 {offsets = [0, 0, 80], sizes = [4, 16, 8], strides = [1, 1, 1]} : vector<4x16x96xbf16> to vector<4x16x8xbf16>
    %c2_43 = arith.constant 2 : index
    %c0_44 = arith.constant 0 : index
    %c0_45 = arith.constant 0 : index
    %c0_46 = arith.constant 0 : index
    %66 = vector.load %arg10[%c2_43, %c0_44, %c0_45, %c0_46] : memref<4x4x16x8xbf16, #tpu.memory_space<vmem>>, vector<1x4x16x8xbf16>
    %67 = vector.shape_cast %66 : vector<1x4x16x8xbf16> to vector<4x16x8xbf16>
    %68 = vector.shape_cast %65 : vector<4x16x8xbf16> to vector<1x4x16x8xbf16>
    tpu.vector_store %arg10[%c2_43, %c0_44, %c0_45, %c0_46], %68 {strides = array<i32>} : memref<4x4x16x8xbf16, #tpu.memory_space<vmem>>, vector<1x4x16x8xbf16>,
    %69 = vector.extract_strided_slice %32 {offsets = [0, 0, 24], sizes = [4, 16, 8], strides = [1, 1, 1]} : vector<4x16x96xbf16> to vector<4x16x8xbf16>
    %c3 = arith.constant 3 : index
    %c0_47 = arith.constant 0 : index
    %c0_48 = arith.constant 0 : index
    %c0_49 = arith.constant 0 : index
    %70 = vector.load %arg8[%c3, %c0_47, %c0_48, %c0_49] : memref<4x4x16x8xbf16, #tpu.memory_space<vmem>>, vector<1x4x16x8xbf16>
    %71 = vector.shape_cast %70 : vector<1x4x16x8xbf16> to vector<4x16x8xbf16>
    %72 = vector.shape_cast %69 : vector<4x16x8xbf16> to vector<1x4x16x8xbf16>
    tpu.vector_store %arg8[%c3, %c0_47, %c0_48, %c0_49], %72 {strides = array<i32>} : memref<4x4x16x8xbf16, #tpu.memory_space<vmem>>, vector<1x4x16x8xbf16>,
    %73 = vector.extract_strided_slice %32 {offsets = [0, 0, 56], sizes = [4, 16, 8], strides = [1, 1, 1]} : vector<4x16x96xbf16> to vector<4x16x8xbf16>
    %c3_50 = arith.constant 3 : index
    %c0_51 = arith.constant 0 : index
    %c0_52 = arith.constant 0 : index
    %c0_53 = arith.constant 0 : index
    %74 = vector.load %arg9[%c3_50, %c0_51, %c0_52, %c0_53] : memref<4x4x16x8xbf16, #tpu.memory_space<vmem>>, vector<1x4x16x8xbf16>
    %75 = vector.shape_cast %74 : vector<1x4x16x8xbf16> to vector<4x16x8xbf16>
    %76 = vector.shape_cast %73 : vector<4x16x8xbf16> to vector<1x4x16x8xbf16>
    tpu.vector_store %arg9[%c3_50, %c0_51, %c0_52, %c0_53], %76 {strides = array<i32>} : memref<4x4x16x8xbf16, #tpu.memory_space<vmem>>, vector<1x4x16x8xbf16>,
    %77 = vector.extract_strided_slice %32 {offsets = [0, 0, 88], sizes = [4, 16, 8], strides = [1, 1, 1]} : vector<4x16x96xbf16> to vector<4x16x8xbf16>
    %c3_54 = arith.constant 3 : index
    %c0_55 = arith.constant 0 : index
    %c0_56 = arith.constant 0 : index
    %c0_57 = arith.constant 0 : index
    %78 = vector.load %arg10[%c3_54, %c0_55, %c0_56, %c0_57] : memref<4x4x16x8xbf16, #tpu.memory_space<vmem>>, vector<1x4x16x8xbf16>
    %79 = vector.shape_cast %78 : vector<1x4x16x8xbf16> to vector<4x16x8xbf16>
    %80 = vector.shape_cast %77 : vector<4x16x8xbf16> to vector<1x4x16x8xbf16>
    tpu.vector_store %arg10[%c3_54, %c0_55, %c0_56, %c0_57], %80 {strides = array<i32>} : memref<4x4x16x8xbf16, #tpu.memory_space<vmem>>, vector<1x4x16x8xbf16>,
    %c0_58 = arith.constant 0 : index
    %c0_59 = arith.constant 0 : index
    %c0_60 = arith.constant 0 : index
    %c0_61 = arith.constant 0 : index
    %81 = vector.load %arg8[%c0_58, %c0_59, %c0_60, %c0_61] : memref<4x4x16x8xbf16, #tpu.memory_space<vmem>>, vector<4x4x16x8xbf16>
    %82 = vector.shape_cast %81 : vector<4x4x16x8xbf16> to vector<16x16x8xbf16>
    %c0_62 = arith.constant 0 : index
    %c0_63 = arith.constant 0 : index
    %c0_64 = arith.constant 0 : index
    %c0_65 = arith.constant 0 : index
    %83 = vector.load %arg9[%c0_62, %c0_63, %c0_64, %c0_65] : memref<4x4x16x8xbf16, #tpu.memory_space<vmem>>, vector<4x4x16x8xbf16>
    %84 = vector.shape_cast %83 : vector<4x4x16x8xbf16> to vector<16x16x8xbf16>
    %c0_66 = arith.constant 0 : index
    %c0_67 = arith.constant 0 : index
    %c0_68 = arith.constant 0 : index
    %c0_69 = arith.constant 0 : index
    %85 = vector.load %arg10[%c0_66, %c0_67, %c0_68, %c0_69] : memref<4x4x16x8xbf16, #tpu.memory_space<vmem>>, vector<4x4x16x8xbf16>
    %86 = vector.shape_cast %85 : vector<4x4x16x8xbf16> to vector<16x16x8xbf16>
    "tpu.trace_start"() <{level = 10 : i32, message = "bnd,bmd->bnm"}> : () -> ()
    %cst_70 = arith.constant dense<0.000000e+00> : vector<16x16x16xf32>
    %87 = tpu.matmul %82, %84, %cst_70 {dimension_numbers = #tpu.dot_dimension_numbers<[2], [2], [1], [1], [0, 0, 0, 1, 1, 1], [0], [0]>} : vector<16x16x8xbf16>, vector<16x16x8xbf16>, vector<16x16x16xf32> -> vector<16x16x16xf32>
    "tpu.trace_stop"() : () -> ()
    %cst_71 = arith.constant dense<0xFF800000> : vector<16x16xf32>
    %88 = vector.multi_reduction <maximumf>, %87, %cst_71 [2] : vector<16x16x16xf32> to vector<16x16xf32>
    %89 = vector.shape_cast %88 : vector<16x16xf32> to vector<16x16x1xf32>
    %90 = vector.broadcast %89 : vector<16x16x1xf32> to vector<16x16x16xf32>
    %91 = arith.subf %87, %90 : vector<16x16x16xf32>
    %92 = math.exp %91 : vector<16x16x16xf32>
    %cst_72 = arith.constant dense<0.000000e+00> : vector<16x16xf32>
    %93 = vector.multi_reduction <add>, %92, %cst_72 [2] : vector<16x16x16xf32> to vector<16x16xf32>
    %94 = vector.shape_cast %93 : vector<16x16xf32> to vector<16x16x1xf32>
    %95 = tpu.reciprocal %94 {approx = true} : vector<16x16x1xf32> -> vector<16x16x1xf32>
    %96 = vector.broadcast %95 : vector<16x16x1xf32> to vector<16x16x16xf32>
    %97 = arith.mulf %92, %96 : vector<16x16x16xf32>
    %98 = arith.truncf %97 : vector<16x16x16xf32> to vector<16x16x16xbf16>
    "tpu.trace_start"() <{level = 10 : i32, message = "bnm,bmd->bnd"}> : () -> ()
    %cst_73 = arith.constant dense<0.000000e+00> : vector<16x16x8xf32>
    %99 = tpu.matmul %98, %86, %cst_73 {dimension_numbers = #tpu.dot_dimension_numbers<[2], [1], [1], [2], [0, 0, 0, 1, 1, 2], [0], [0]>} : vector<16x16x16xbf16>, vector<16x16x8xbf16>, vector<16x16x8xf32> -> vector<16x16x8xf32>
    "tpu.trace_stop"() : () -> ()
    %100 = arith.truncf %99 : vector<16x16x8xf32> to vector<16x16x8xbf16>
    %101 = vector.shape_cast %100 : vector<16x16x8xbf16> to vector<4x4x16x8xbf16>
    %102 = vector.extract_strided_slice %101 {offsets = [0, 0, 0, 0], sizes = [1, 4, 16, 8], strides = [1, 1, 1, 1]} : vector<4x4x16x8xbf16> to vector<1x4x16x8xbf16>
    %103 = vector.shape_cast %102 : vector<1x4x16x8xbf16> to vector<4x16x8xbf16>
    %c0_74 = arith.constant 0 : index
    %c0_75 = arith.constant 0 : index
    %c0_76 = arith.constant 0 : index
    %104 = vector.load %arg11[%c0_74, %c0_75, %c0_76] : memref<4x16x32xbf16, #tpu.memory_space<vmem>>, vector<4x16x8xbf16>
    tpu.vector_store %arg11[%c0_74, %c0_75, %c0_76], %103 {strides = array<i32>} : memref<4x16x32xbf16, #tpu.memory_space<vmem>>, vector<4x16x8xbf16>,
    %105 = vector.extract_strided_slice %101 {offsets = [1, 0, 0, 0], sizes = [1, 4, 16, 8], strides = [1, 1, 1, 1]} : vector<4x4x16x8xbf16> to vector<1x4x16x8xbf16>
    %106 = vector.shape_cast %105 : vector<1x4x16x8xbf16> to vector<4x16x8xbf16>
    %c0_77 = arith.constant 0 : index
    %c0_78 = arith.constant 0 : index
    %c8 = arith.constant 8 : index
    %107 = vector.load %arg11[%c0_77, %c0_78, %c8] : memref<4x16x32xbf16, #tpu.memory_space<vmem>>, vector<4x16x8xbf16>
    tpu.vector_store %arg11[%c0_77, %c0_78, %c8], %106 {strides = array<i32>} : memref<4x16x32xbf16, #tpu.memory_space<vmem>>, vector<4x16x8xbf16>,
    %108 = vector.extract_strided_slice %101 {offsets = [2, 0, 0, 0], sizes = [1, 4, 16, 8], strides = [1, 1, 1, 1]} : vector<4x4x16x8xbf16> to vector<1x4x16x8xbf16>
    %109 = vector.shape_cast %108 : vector<1x4x16x8xbf16> to vector<4x16x8xbf16>
    %c0_79 = arith.constant 0 : index
    %c0_80 = arith.constant 0 : index
    %c16 = arith.constant 16 : index
    %110 = vector.load %arg11[%c0_79, %c0_80, %c16] : memref<4x16x32xbf16, #tpu.memory_space<vmem>>, vector<4x16x8xbf16>
    tpu.vector_store %arg11[%c0_79, %c0_80, %c16], %109 {strides = array<i32>} : memref<4x16x32xbf16, #tpu.memory_space<vmem>>, vector<4x16x8xbf16>,
    %111 = vector.extract_strided_slice %101 {offsets = [3, 0, 0, 0], sizes = [1, 4, 16, 8], strides = [1, 1, 1, 1]} : vector<4x4x16x8xbf16> to vector<1x4x16x8xbf16>
    %112 = vector.shape_cast %111 : vector<1x4x16x8xbf16> to vector<4x16x8xbf16>
    %c0_81 = arith.constant 0 : index
    %c0_82 = arith.constant 0 : index
    %c24 = arith.constant 24 : index
    %113 = vector.load %arg11[%c0_81, %c0_82, %c24] : memref<4x16x32xbf16, #tpu.memory_space<vmem>>, vector<4x16x8xbf16>
    tpu.vector_store %arg11[%c0_81, %c0_82, %c24], %112 {strides = array<i32>} : memref<4x16x32xbf16, #tpu.memory_space<vmem>>, vector<4x16x8xbf16>,
    %c0_83 = arith.constant 0 : index
    %c0_84 = arith.constant 0 : index
    %c0_85 = arith.constant 0 : index
    %114 = vector.load %arg11[%c0_83, %c0_84, %c0_85] : memref<4x16x32xbf16, #tpu.memory_space<vmem>>, vector<4x16x32xbf16>
    %115 = vector.shape_cast %114 : vector<4x16x32xbf16> to vector<64x32xbf16>
    %c0_86 = arith.constant 0 : index
    %c0_87 = arith.constant 0 : index
    %116 = vector.load %arg5[%c0_86, %c0_87] : memref<32x32xbf16, #tpu.memory_space<vmem>>, vector<32x32xbf16>
    %cst_88 = arith.constant dense<0.000000e+00> : vector<64x32xf32>
    %117 = tpu.matmul %115, %116, %cst_88 {dimension_numbers = #tpu.dot_dimension_numbers<[1], [0], [0], [1], [0, 0, 1, 1], [], []>} : vector<64x32xbf16>, vector<32x32xbf16>, vector<64x32xf32> -> vector<64x32xf32>
    %c0_89 = arith.constant 0 : index
    %c0_90 = arith.constant 0 : index
    %118 = vector.load %arg6[%c0_89, %c0_90] : memref<1x32xf32, #tpu.memory_space<vmem>>, vector<1x32xf32>
    %119 = vector.broadcast %118 : vector<1x32xf32> to vector<64x32xf32>
    %120 = arith.addf %117, %119 : vector<64x32xf32>
    %c0_91 = arith.constant 0 : index
    %c0_92 = arith.constant 0 : index
    %c0_93 = arith.constant 0 : index
    %121 = vector.load %arg1[%c0_91, %c0_92, %c0_93] : memref<4x16x32xf32, #tpu.memory_space<vmem>>, vector<4x16x32xf32>
    %122 = vector.shape_cast %120 : vector<64x32xf32> to vector<4x16x32xf32>
    %123 = arith.addf %121, %122 : vector<4x16x32xf32>
    %124 = arith.truncf %123 : vector<4x16x32xf32> to vector<4x16x32xbf16>
    %c0_94 = arith.constant 0 : index
    %c0_95 = arith.constant 0 : index
    %c0_96 = arith.constant 0 : index
    %125 = vector.load %arg7[%c0_94, %c0_95, %c0_96] : memref<4x16x32xbf16, #tpu.memory_space<vmem>>, vector<4x16x32xbf16>
    tpu.vector_store %arg7[%c0_94, %c0_95, %c0_96], %124 {strides = array<i32>} : memref<4x16x32xbf16, #tpu.memory_space<vmem>>, vector<4x16x32xbf16>,
    return
  }
  func.func @transform_0(%arg0: i32) -> (i32, i32, i32) {
    %c0_i32 = arith.constant 0 : i32
    %c0_i32_0 = arith.constant 0 : i32
    %c0_i32_1 = arith.constant 0 : i32
    return %arg0, %c0_i32, %c0_i32_0 : i32, i32, i32
  }
  func.func @transform_1(%arg0: i32) -> (i32, i32) {
    %c0_i32 = arith.constant 0 : i32
    %c0_i32_0 = arith.constant 0 : i32
    %c0_i32_1 = arith.constant 0 : i32
    return %c0_i32, %c0_i32_0 : i32, i32
  }
  func.func @transform_2(%arg0: i32) -> (i32, i32) {
    %c0_i32 = arith.constant 0 : i32
    %c0_i32_0 = arith.constant 0 : i32
    %c0_i32_1 = arith.constant 0 : i32
    return %c0_i32, %c0_i32_0 : i32, i32
  }
  func.func @transform_3(%arg0: i32) -> (i32, i32) {
    %c0_i32 = arith.constant 0 : i32
    %c0_i32_0 = arith.constant 0 : i32
    %c0_i32_1 = arith.constant 0 : i32
    return %c0_i32, %c0_i32_0 : i32, i32
  }
  func.func @transform_4(%arg0: i32) -> (i32, i32) {
    %c0_i32 = arith.constant 0 : i32
    %c0_i32_0 = arith.constant 0 : i32
    %c0_i32_1 = arith.constant 0 : i32
    return %c0_i32, %c0_i32_0 : i32, i32
  }
  func.func @transform_5(%arg0: i32) -> (i32, i32) {
    %c0_i32 = arith.constant 0 : i32
    %c0_i32_0 = arith.constant 0 : i32
    %c0_i32_1 = arith.constant 0 : i32
    return %c0_i32, %c0_i32_0 : i32, i32
  }
  func.func @transform_6(%arg0: i32) -> (i32, i32, i32) {
    %c0_i32 = arith.constant 0 : i32
    %c0_i32_0 = arith.constant 0 : i32
    %c0_i32_1 = arith.constant 0 : i32
    return %arg0, %c0_i32, %c0_i32_0 : i32, i32, i32
  }
}

</mosaic_0001>

<bundles_post_ra>
// kernel: block_forward.3
= control target key start
LH: loop header
LB: loop body
LE: loop exit
PB: predicated region body
PF: predicated region fallthrough
CT: control target
= control target key end

     0   :  { %14 = vsyncpa [#allocation4], 0  ;;  %s2551_s0 = inlined_call_operand.vmem [shape: bf16[2,4,16,32], index: 0, kind: input, shape index: {}]   ;;  %s2552_s1 = inlined_call_operand.vmem [shape: f32[1,32], index: 1, kind: input, shape index: {}]   ;;  %s2553_s2 = inlined_call_operand.vmem [shape: f32[1,32], index: 2, kind: input, shape index: {}]   ;;  %s2554_s3 = inlined_call_operand.vmem [shape: bf16[32,128], index: 3, kind: input, shape index: {}]   ;;  %s2555_s4 = inlined_call_operand.vmem [shape: f32[1,128], index: 4, kind: input, shape index: {}]   ;;  %s2556_s5 = inlined_call_operand.vmem [shape: bf16[128,32], index: 5, kind: input, shape index: {}]   ;;  %s2557_s6 = inlined_call_operand.vmem [shape: f32[1,32], index: 6, kind: input, shape index: {}]   ;;  %s2558_s7 = inlined_call_operand.vmem [shape: bf16[3,32,32], index: 7, kind: input, shape index: {}]   ;;  %s2559_s8 = inlined_call_operand.vmem [shape: f32[1,32], index: 8, kind: input, shape index: {}]   ;;  %s2560_s9 = inlined_call_operand.hbm [shape: f32[2,4,16,32], index: 9, kind: output, shape index: {}]  }
   0x1   :  { %16 = vsyncpa [#allocation4 + $0x1], 0  ;;  %s1847_s30 = smov 0   ;;  %s1849_s10 = smov 0  }
   0x2   :  { %s1851_s11 = smov 0   ;;  %s1853_s12 = smov 0  }
   0x3   :  { %s1855_s13 = smov 0   ;;  %s1857_s14 = smov 0  }
   0x4 LB: > { %s1448_s15 = sadd.s32 4294967295, %s1792_s14   ;;  %s1449_s16 = sadd.s32 4294967294, %s1792_s14   ;;  %s1792_s14 = sphi %s1857_s14, %s22_s14   ;;  %s1788_s13 = sphi %s1855_s13, %s2583_s13   ;;  %s1784_s12 = sphi %s1853_s12, %s2582_s12   ;;  %s1780_s11 = sphi %s1851_s11, %s2581_s11   ;;  %s1776_s10 = sphi %s1849_s10, %s2580_s10   ;;  %s1772_s30 = sphi %s1847_s30, %s2579_s30  }
   0x5   : > { %s34_s17 = sadd.s32 1, %s1788_s13  ;;  %s239_s18 = sadd.s32 1, %s1780_s11 }
   0x6   : > { %p36_p0 = scmp.ge.s32.totalorder %s34_s17, 2  ;;  %p249_p1 = scmp.ne.s32.totalorder %s1780_s11, %s1776_s10 }
   0x7   : > { %p250_p2 = scmp.eq.s32.totalorder %s1448_s15, 1  ;;  %p255_p3 = scmp.ne.s32.totalorder %s1776_s10, %s1772_s30 }
   0x8   : > { %s2585_s17 = smov (%p36_p0, %s34_s17), 0  ;;  %p256_p5 = scmp.eq.s32.totalorder %s1449_s16, 1 }
   0x9   : > { %p1887_p4 = por %p250_p2, %p249_p1  ;;  %s234_s20 = ssub.s32 %s1788_s13, %s2585_s17 }
   0xa   : > { %p1452_p6 = scmp.ge.s32.totalorder %s1792_s14, 1  ;;  %p237_p7 = scmp.eq.s32.totalorder %s234_s20, 0 }
   0xb   : > { %p1894_p8 = por %p256_p5, %p255_p3  ;;  %p311_p9 = scmp.lt.s32.totalorder %s1792_s14, 3 }
   0xc   : > { %s1900_s22 = scalar_select %p237_p7, %s1780_s11, %s239_s18  }
   0xd   : > { %p312_p10 = pnand %p1452_p6, %p311_p9 }
   0xe   : > { %p352_p11 = scmp.lt.s32.totalorder (!%p312_p10), %s1784_s12, 1  ;;  %s348_s26 = sand.u32 (!%p312_p10), 1, %s1776_s10  }
   0xf   : > { %315 = sbr.rel (%p312_p10) target bundleno = 855 (0x357), region = 56  ;;  %s1574_s29 = sshll.u32 (!%p312_p10), %s1784_s12, 6 }
  0x10   : > { %s1365_s18 = scalar_lea.hbm (!%p312_p10), %s2560_s9, %s1574_s29  ;;  %s1734_s15 = scalar_lea.hbm (!%p312_p10), %s2560_s9, 128 }
  0x14   : > { %s353_s23 = scalar_select %p352_p11, %s1784_s12, 1  ;;  %vm379_vm0 = vcmask 261120   ;;  %v1794_v20 = vmov 32.0  }
  0x15   : > { %1680 = vrcp.f32 %v1794_v20  ;;  %s1368_s12 = sshll.u32 %s1365_s18, 4  ;;  %s1369_s12 = int_to_ptr.hbm [resolvable:$true] %s1368_s12 }
  0x16   : > { %s1557_s24 = sshll.u32 %s353_s23, 5  ;;  %s1352_s23 = scalar_lea.sflag [#allocation4], %s348_s26 }
  0x17   : > { %s359_s27 = scalar_lea.vmem %s2551_s0, %s1557_s24  ;;  %s1728_s24 = sshra.s32 %s1369_s12, 4  ;;  %s1729_s24 = int_to_ptr.hbm [resolvable:$true] %s1728_s24 }
  0x18   : > { %v1608_v0 = vld [vmem:[%s359_s27 + $0x10] sm:$0xff]   ;;  %v1592_v1 = vld [vmem:[%s359_s27] sm:$0xff]   ;;  %v1610_v2 = vld [vmem:[%s359_s27 + $0x8] sm:$0xff]   ;;  %s1730_s25 = scalar_lea.hbm %s1729_s24, 64  ;;  %p1735_p1 = scmp.lt.s32.totalorder %s1729_s24, %s2560_s9 }
  0x19   : > { %v1907_v3 = vunpack.c.l.bf16 %v1608_v0  ;;  %v1909_v4 = vunpack.c.l.bf16 %v1592_v1  ;;  %v1911_v5 = vunpack.c.l.bf16 %v1610_v2  ;;  %v1919_v9 = vunpack.c.h.bf16 %v1610_v2  ;;  %v1612_v15 = vld [vmem:[%s359_s27 + $0x18] sm:$0xff]   ;;  %s1453_s27 = sshll.u32 %s348_s26, 6  ;;  %p1731_p12 = scmp.ne.s32.totalorder %s1729_s24, %s1730_s25 }
  0x1a   : > { %v1921_v10 = vunpack.c.h.bf16 %v1608_v0  ;;  %v1923_v11 = vunpack.c.h.bf16 %v1592_v1  ;;  %v1931_v16 = vunpack.c.h.bf16 %v1612_v15  ;;  %v1933_v17 = vunpack.c.l.bf16 %v1612_v15  ;;  %s2467_s28 = scalar_lea.vmem [#allocation3], %s1453_s27  ;;  %p1736_p2 = scmp.lt.s32.totalorder %s1734_s15, %s1730_s25 }
  0x1b   : > { %v392_v6 = vsel %vm379_vm0, %v1907_v3, 0.0  ;;  %v386_v7 = vsel %vm379_vm0, %v1911_v5, 0.0  ;;  %v380_v8 = vsel %vm379_vm0, %v1909_v4, 0.0  ;;  %v389_v13 = vsel %vm379_vm0, %v1919_v9, 0.0  ;;  %v1681_v21 = vpop.eup %1680  ;;  %s1366_s20 = sshll.u32 %s2467_s28, 4  ;;  %p1732_p13 = pnand %p1731_p12, %p1887_p4  ;;  %s1367_s20 = int_to_ptr.vmem [resolvable:$true] %s1366_s20 }
  0x1c   : > { %393 = vadd.xlane.f32.xlu2 %v392_v6  ;;  %387 = vadd.xlane.f32.xlu1 %v386_v7  ;;  %v395_v12 = vsel %vm379_vm0, %v1921_v10, 0.0  ;;  %v383_v14 = vsel %vm379_vm0, %v1923_v11, 0.0  ;;  %v401_v18 = vsel %vm379_vm0, %v1931_v16, 0.0  ;;  %v398_v19 = vsel %vm379_vm0, %v1933_v17, 0.0  ;;  %p1737_p3 = por %p1736_p2, %p1735_p1 }
  0x1d   : > { %381 = vadd.xlane.f32.xlu0 %v380_v8  ;;  %v405_v22 = vmul.f32 32.0, %v1681_v21  ;;  %vm409_vm1 = vweird.f32 %v1681_v21  ;;  %p1733_p0 = pneg %p1732_p13 }
  0x1f   : > { %v406_v23 = vsub.f32 1.0, %v405_v22  ;;  %p1738_p5 = pnand %p1737_p3, %p1733_p0 }
  0x21   : > { %v407_v24 = vmul.f32 %v1681_v21, %v406_v23 }
  0x23   : > { %v408_v25 = vadd.f32 %v1681_v21, %v407_v24 }
  0x24   : > { %396 = vadd.xlane.f32.xlu2 %v395_v12  ;;  %390 = vadd.xlane.f32.xlu1 %v389_v13  ;;  %v1559_v13 = vld [vmem:[%s2554_s3 + $0x8] sm:$0xff] }
  0x25   : > { %384 = vadd.xlane.f32.xlu0 %v383_v14  ;;  %v1939_v26 = vsel %vm409_vm1, %v1681_v21, %v408_v25  ;;  %629 = vmatpush.bf16.msra.mxu0 %v1559_v13 }
  0x26   : > { %1613 = vmatpush.bf16.msra.mxu2 %v1559_v13  ;;  %1614 = vmatpush.bf16.msra.mxu3 %v1559_v13 }
  0x2c   : > { %402 = vadd.xlane.f32.xlu1 %v401_v18  ;;  %v1558_v18 = vld [vmem:[%s2554_s3] sm:$0xff] }
  0x2d   : > { %399 = vadd.xlane.f32.xlu0 %v398_v19  ;;  %630 = vmatpush.bf16.msra.mxu0 %v1558_v18 }
  0x2e   : > { %1615 = vmatpush.bf16.msra.mxu2 %v1558_v18  ;;  %1616 = vmatpush.bf16.msra.mxu3 %v1558_v18 }
  0x8f   : > { %v394_v27 = vpop.xlane.xlu2 %393  ;;  %v388_v28 = vpop.xlane.xlu1 %387 }
  0x90   : > { %v413_v29 = vmul.f32 %v1939_v26, %v388_v28  ;;  %v382_v30 = vpop.xlane.xlu0 %381  ;;  %v415_v43 = vmul.f32 %v1939_v26, %v394_v27 }
  0x91   : > { %v411_v31 = vmul.f32 %v1939_v26, %v382_v30 }
  0x92   : > { %v1944_v32 = vsub.f32 %v1911_v5, %v413_v29  ;;  %v1973_v50 = vsub.f32 %v1907_v3, %v415_v43 }
  0x93   : > { %v1947_v33 = vsub.f32 %v1909_v4, %v411_v31 }
  0x94   : > { %v429_v34 = vmul.f32 %v1944_v32, %v1944_v32  ;;  %v431_v59 = vmul.f32 %v1973_v50, %v1973_v50 }
  0x95   : > { %v427_v35 = vmul.f32 %v1947_v33, %v1947_v33 }
  0x96   : > { %v441_v36 = vsel %vm379_vm0, %v429_v34, 0.0  ;;  %v447_v62 = vsel %vm379_vm0, %v431_v59, 0.0 }
  0x97   : > { %v397_v37 = vpop.xlane.xlu2 %396  ;;  %442 = vadd.xlane.f32.xlu1 %v441_v36  ;;  %v391_v38 = vpop.xlane.xlu1 %390  ;;  %v435_v39 = vsel %vm379_vm0, %v427_v35, 0.0 }
  0x98   : > { %v416_v40 = vmul.f32 %v1939_v26, %v397_v37  ;;  %v414_v41 = vmul.f32 %v1939_v26, %v391_v38  ;;  %436 = vadd.xlane.f32.xlu2 %v435_v39  ;;  %v385_v42 = vpop.xlane.xlu0 %384 }
  0x99   : > { %v412_v44 = vmul.f32 %v1939_v26, %v385_v42 }
  0x9a   : > { %v1960_v45 = vsub.f32 %v1921_v10, %v416_v40  ;;  %v1963_v46 = vsub.f32 %v1919_v9, %v414_v41 }
  0x9b   : > { %v1966_v47 = vsub.f32 %v1923_v11, %v412_v44 }
  0x9c   : > { %v432_v48 = vmul.f32 %v1960_v45, %v1960_v45  ;;  %v430_v49 = vmul.f32 %v1963_v46, %v1963_v46 }
  0x9d   : > { %v428_v51 = vmul.f32 %v1966_v47, %v1966_v47 }
  0x9e   : > { %v450_v52 = vsel %vm379_vm0, %v432_v48, 0.0  ;;  %v444_v53 = vsel %vm379_vm0, %v430_v49, 0.0 }
  0x9f   : > { %451 = vadd.xlane.f32.xlu1 %v450_v52  ;;  %v438_v54 = vsel %vm379_vm0, %v428_v51, 0.0  ;;  %v403_v55 = vpop.xlane.xlu1 %402 }
  0xa0   : > { %445 = vadd.xlane.f32.xlu2 %v444_v53  ;;  %439 = vadd.xlane.f32.xlu0 %v438_v54  ;;  %v400_v56 = vpop.xlane.xlu0 %399  ;;  %v418_v58 = vmul.f32 %v1939_v26, %v403_v55 }
  0xa1   : > { %v417_v57 = vmul.f32 %v1939_v26, %v400_v56 }
  0xa2   : > { %v1988_v61 = vsub.f32 %v1931_v16, %v418_v58 }
  0xa3   : > { %v1985_v60 = vsub.f32 %v1933_v17, %v417_v57 }
  0xa4   : > { %v434_v1 = vmul.f32 %v1988_v61, %v1988_v61 }
  0xa5   : > { %v433_v63 = vmul.f32 %v1985_v60, %v1985_v60 }
  0xa6   : > { %v456_v2 = vsel %vm379_vm0, %v434_v1, 0.0 }
  0xa7   : > { %v453_v0 = vsel %vm379_vm0, %v433_v63, 0.0 }
  0xa8   : > { %448 = vadd.xlane.f32.xlu0 %v447_v62  ;;  %454 = vadd.xlane.f32.xlu2 %v453_v0 }
  0xb0   : > { %457 = vadd.xlane.f32.xlu0 %v456_v2 }
 0x10a   : > { %v443_v6 = vpop.xlane.xlu1 %442 }
 0x10b   : > { %v461_v7 = vmul.f32 %v443_v6, %v1939_v26  ;;  %v437_v8 = vpop.xlane.xlu2 %436 }
 0x10c   : > { %v459_v12 = vmul.f32 %v437_v8, %v1939_v26 }
 0x10d   : > { %v469_v14 = vadd.f32 1e-05, %v461_v7 }
 0x10e   : > { %v467_v15 = vadd.f32 1e-05, %v459_v12 }
 0x10f   : > { %1682 = vrsqrt.f32 %v469_v14  ;;  %vm501_vm2 = vweird.f32 %v469_v14 }
 0x110   : > { %1684 = vrsqrt.f32 %v467_v15  ;;  %vm481_vm6 = vweird.f32 %v467_v15 }
 0x112   : > { %v452_v19 = vpop.xlane.xlu1 %451 }
 0x113   : > { %v464_v20 = vmul.f32 %v452_v19, %v1939_v26  ;;  %v446_v21 = vpop.xlane.xlu2 %445  ;;  %v440_v22 = vpop.xlane.xlu0 %439 }
 0x114   : > { %v462_v23 = vmul.f32 %v446_v21, %v1939_v26  ;;  %v460_v24 = vmul.f32 %v440_v22, %v1939_v26 }
 0x115   : > { %v1683_v25 = vpop.eup %1682  ;;  %v2008_v27 = vadd.f32 1e-05, %v464_v20 }
 0x116   : > { %v1685_v28 = vpop.eup %1684  ;;  %v496_v29 = vmul.f32 %v1683_v25, %v469_v14  ;;  %v470_v30 = vadd.f32 1e-05, %v462_v23  ;;  %v468_v31 = vadd.f32 1e-05, %v460_v24  ;;  %vm502_vm3 = vweird.f32 %v1683_v25  ;;  %v2046_v24 = vld [vmem:[%s2552_s1] ss:$0 sm:$0xff] }
 0x117   : > { %v476_v34 = vmul.f32 %v1685_v28, %v467_v15  ;;  %1686 = vrsqrt.f32 %v2008_v27  ;;  %vm482_vm4 = vweird.f32 %v1685_v28  ;;  %vm2022_vm5 = vmor %vm501_vm2, %vm502_vm3  ;;  %vm531_vm14 = vweird.f32 %v2008_v27 }
 0x118   : > { %v497_v35 = vmul.f32 %v1683_v25, %v496_v29  ;;  %1688 = vrsqrt.f32 %v470_v30  ;;  %vm2026_vm7 = vmor %vm481_vm6, %vm482_vm4  ;;  %vm511_vm8 = vweird.f32 %v470_v30  ;;  %vm491_vm12 = vweird.f32 %v468_v31 }
 0x119   : > { %v477_v36 = vmul.f32 %v1685_v28, %v476_v34  ;;  %1690 = vrsqrt.f32 %v468_v31 }
 0x11a   : > { %v498_v37 = vmul.f32 0.5, %v497_v35 }
 0x11b   : > { %v478_v38 = vmul.f32 0.5, %v477_v36  ;;  %v455_v39 = vpop.xlane.xlu2 %454  ;;  %v449_v40 = vpop.xlane.xlu0 %448 }
 0x11c   : > { %v499_v41 = vsub.f32 1.5, %v498_v37  ;;  %v465_v42 = vmul.f32 %v455_v39, %v1939_v26  ;;  %v463_v43 = vmul.f32 %v449_v40, %v1939_v26  ;;  %v1676_v37 = vld [vmem:[%s2553_s2] ss:$0 sm:$0xff] }
 0x11d   : > { %v2013_v44 = vpop.eup %1686  ;;  %v479_v48 = vsub.f32 1.5, %v478_v38 }
 0x11e   : > { %v1689_v49 = vpop.eup %1688  ;;  %v2015_v51 = vadd.f32 1e-05, %v465_v42  ;;  %v526_v53 = vmul.f32 %v2013_v44, %v2008_v27  ;;  %v2019_v55 = vadd.f32 1e-05, %v463_v43  ;;  %v500_v56 = vmul.f32 %v1683_v25, %v499_v41 }
 0x11f   : > { %v1691_v52 = vpop.eup %1690  ;;  %v506_v54 = vmul.f32 %v1689_v49, %v470_v30  ;;  %v480_v57 = vmul.f32 %v1685_v28, %v479_v48  ;;  %vm512_vm9 = vweird.f32 %v1689_v49  ;;  %vm532_vm15 = vweird.f32 %v2013_v44 }
 0x120   : > { %v486_v58 = vmul.f32 %v1691_v52, %v468_v31  ;;  %1692 = vrsqrt.f32 %v2015_v51  ;;  %v527_v1 = vmul.f32 %v2013_v44, %v526_v53  ;;  %v504_v7 = vsel %vm2022_vm5, %v1683_v25, %v500_v56  ;;  %vm513_vm11 = vmor %vm511_vm8, %vm512_vm9 }
 0x121   : > { %v507_v59 = vmul.f32 %v1689_v49, %v506_v54  ;;  %1694 = vrsqrt.f32 %v2019_v55  ;;  %v484_v8 = vsel %vm2026_vm7, %v1685_v28, %v480_v57  ;;  %vm492_vm10 = vweird.f32 %v1691_v52  ;;  %vm2070_vm4 = vmor %vm531_vm14, %vm532_vm15 }
 0x122   : > { %v487_v63 = vmul.f32 %v1691_v52, %v486_v58  ;;  %v557_v20 = vmul.f32 %v504_v7, %v1944_v32  ;;  %v555_v21 = vmul.f32 %v484_v8, %v1947_v33  ;;  %v528_v22 = vmul.f32 0.5, %v527_v1  ;;  %vm493_vm13 = vmor %vm491_vm12, %vm492_vm10 }
 0x123   : > { %v508_v2 = vmul.f32 0.5, %v507_v59  ;;  %v458_v6 = vpop.xlane.xlu0 %457  ;;  %vm541_vm1 = vweird.f32 %v2015_v51  ;;  %vm521_vm2 = vweird.f32 %v2019_v55 }
 0x124   : > { %v488_v12 = vmul.f32 0.5, %v487_v63  ;;  %v466_v13 = vmul.f32 %v458_v6, %v1939_v26  ;;  %v529_v35 = vsub.f32 1.5, %v528_v22  ;;  %v567_v31 = vmul.f32 %v2046_v24, %v555_v21 }
 0x125   : > { %v509_v14 = vsub.f32 1.5, %v508_v2  ;;  %v569_v38 = vmul.f32 %v2046_v24, %v557_v20 }
 0x126   : > { %v489_v15 = vsub.f32 1.5, %v488_v12  ;;  %v2037_v18 = vadd.f32 1e-05, %v466_v13  ;;  %v2039_v19 = vpop.eup %1692 }
 0x127   : > { %v510_v23 = vmul.f32 %v1689_v49, %v509_v14  ;;  %v536_v25 = vmul.f32 %v2039_v19, %v2015_v51  ;;  %v1695_v28 = vpop.eup %1694  ;;  %vm542_vm3 = vweird.f32 %v2039_v19  ;;  %v581_v54 = vadd.f32 %v1676_v37, %v569_v38 }
 0x128   : > { %v490_v26 = vmul.f32 %v1691_v52, %v489_v15  ;;  %1696 = vrsqrt.f32 %v2037_v18  ;;  %v516_v34 = vmul.f32 %v1695_v28, %v2019_v55  ;;  %vm522_vm5 = vweird.f32 %v1695_v28  ;;  %vm2078_vm6 = vmor %vm541_vm1, %vm542_vm3 }
 0x129   : > { %v514_v29 = vsel %vm513_vm11, %v1689_v49, %v510_v23  ;;  %v537_v30 = vmul.f32 %v2039_v19, %v536_v25  ;;  %v530_v49 = vmul.f32 %v2013_v44, %v529_v35  ;;  %vm523_vm7 = vmor %vm521_vm2, %vm522_vm5  ;;  %vm551_vm8 = vweird.f32 %v2037_v18  ;;  %v1566_v35 = vld [vmem:[%s2556_s5 + $0x30] sm:$0xff] }
 0x12a   : > { %v558_v32 = vmul.f32 %v514_v29, %v1963_v46  ;;  %v494_v33 = vsel %vm493_vm13, %v1691_v52, %v490_v26  ;;  %v517_v46 = vmul.f32 %v1695_v28, %v516_v34  ;;  %v579_v52 = vadd.f32 %v1676_v37, %v567_v31  ;;  %v1567_v29 = vld [vmem:[%s2556_s5 + $0x38] sm:$0xff] }
 0x12b   : > { %v556_v36 = vmul.f32 %v494_v33, %v1966_v47  ;;  %v538_v39 = vmul.f32 0.5, %v537_v30  ;;  %v534_v2 = vsel %vm2070_vm4, %v2013_v44, %v530_v49  ;;  %1076 = vmatpush.bf16.msra.mxu1 %v1567_v29 }
 0x12c   : > { %v570_v40 = vmul.f32 %v2046_v24, %v558_v32  ;;  %v518_v42 = vmul.f32 0.5, %v517_v46  ;;  %v560_v44 = vmul.f32 %v534_v2, %v1960_v45 }
 0x12d   : > { %v568_v47 = vmul.f32 %v2046_v24, %v556_v36  ;;  %v539_v41 = vsub.f32 1.5, %v538_v39 }
 0x12e   : > { %v582_v43 = vadd.f32 %v1676_v37, %v570_v40  ;;  %v1697_v48 = vpop.eup %1696  ;;  %v519_v58 = vsub.f32 1.5, %v518_v42  ;;  %v572_v20 = vmul.f32 %v2046_v24, %v560_v44 }
 0x12f   : > { %v580_v53 = vadd.f32 %v1676_v37, %v568_v47  ;;  %v540_v57 = vmul.f32 %v2039_v19, %v539_v41  ;;  %v546_v59 = vmul.f32 %v1697_v48, %v2037_v18  ;;  %vm552_vm9 = vweird.f32 %v1697_v48  ;;  %1077 = vmatpush.bf16.msra.mxu1 %v1566_v35  ;;  %v1565_v41 = vld [vmem:[%s2556_s5 + $0x28] sm:$0xff] }
 0x130   : > { %v588_v0 = vpack.c.bf16 %v582_v43, %v581_v54  ;;  %v520_v1 = vmul.f32 %v1695_v28, %v519_v58  ;;  %vm553_vm10 = vmor %vm551_vm8, %vm552_vm9  ;;  %v1564_v58 = vld [vmem:[%s2556_s5 + $0x20] sm:$0xff] }
 0x131   : > { %v587_v63 = vpack.c.bf16 %v580_v53, %v579_v52  ;;  %v547_v27 = vmul.f32 %v1697_v48, %v546_v59  ;;  %v544_v51 = vsel %vm2078_vm6, %v2039_v19, %v540_v57 }
 0x132   : > { %1465 = vmatmul.msk.bf16.vlgmr.msra.gmra.mxu2 %vm379_vm0, %v588_v0  ;;  %v524_v6 = vsel %vm523_vm7, %v1695_v28, %v520_v1  ;;  %v561_v55 = vmul.f32 %v544_v51, %v1985_v60  ;;  %v2106_v60 = vld [vmem:[%s2555_s4] ss:$0 sm:$0xff]  ;;  %v1563_v51 = vld [vmem:[%s2556_s5 + $0x18] sm:$0xff] }
 0x133   : > { %1464 = vmatmul.msk.bf16.vlgmr.msra.gmra.mxu0 %vm379_vm0, %v587_v63  ;;  %v548_v7 = vmul.f32 0.5, %v547_v27  ;;  %v559_v8 = vmul.f32 %v524_v6, %v1973_v50  ;;  %v584_v50 = vadd.f32 %v1676_v37, %v572_v20  ;;  %1078 = vmatpush.bf16.msra.mxu1 %v1565_v41  ;;  %v1562_v20 = vld [vmem:[%s2556_s5 + $0x10] sm:$0xff] }
 0x134   : > { %v573_v19 = vmul.f32 %v2046_v24, %v561_v55 }
 0x135   : > { %v549_v12 = vsub.f32 1.5, %v548_v7  ;;  %v571_v14 = vmul.f32 %v2046_v24, %v559_v8 }
 0x136   : > { %v585_v23 = vadd.f32 %v1676_v37, %v573_v19 }
 0x137   : > { %v550_v13 = vmul.f32 %v1697_v48, %v549_v12  ;;  %v583_v21 = vadd.f32 %v1676_v37, %v571_v14  ;;  %1079 = vmatpush.bf16.msra.mxu1 %v1564_v58 }
 0x139   : > { %v554_v15 = vsel %vm553_vm10, %v1697_v48, %v550_v13  ;;  %v589_v45 = vpack.c.bf16 %v584_v50, %v583_v21 }
 0x13a   : > { %v562_v18 = vmul.f32 %v554_v15, %v1988_v61 }
 0x13b   : > { %1080 = vmatpush.bf16.msra.mxu1 %v1563_v51 }
 0x13c   : > { %v574_v22 = vmul.f32 %v2046_v24, %v562_v18 }
 0x13e   : > { %v586_v26 = vadd.f32 %v1676_v37, %v574_v22 }
 0x13f   : > { %1081 = vmatpush.bf16.msra.mxu1 %v1562_v20 }
 0x140   : > { %v590_v25 = vpack.c.bf16 %v586_v26, %v585_v23 }
 0x142   : > { %1466 = vmatmul.msk.bf16.gmra.mxu2 %vm379_vm0, %v589_v45  ;;  %1467 = vmatmul.msk.bf16.vlgmr.msra.gmra.mxu3 %vm379_vm0, %v590_v25 }
 0x1b0   : > { %v632_v61 = vpop.f32.mrf.mxu0 }
 0x1b1   : > { %v2109_v28 = vadd.f32 %v2106_v60, %v632_v61 }
 0x1b3   : > { %v2112_v24 = vmul.f32 0.70710677, %v2109_v28 }
 0x1b5   : > { %v668_v32 = vmul.f32 %v2112_v24, %v2112_v24  ;;  %v637_v33 = vpop.f32.mrf.mxu2 }
 0x1b6   : > { %v2122_v34 = vadd.f32 %v2106_v60, %v637_v33  ;;  %v1561_v33 = vld [vmem:[%s2556_s5 + $0x8] sm:$0xff] }
 0x1b7   : > { %v2119_v30 = vmin.f32 %v668_v32, 16.0  ;;  %1082 = vmatpush.bf16.msra.mxu1 %v1561_v33 }
 0x1b8   : > { %v634_v36 = vpop.f32.mrf.mxu0  ;;  %v2129_v37 = vmul.f32 0.70710677, %v2122_v34 }
 0x1b9   : > { %v670_v31 = vmul.f32 2.1237322e-06, %v2119_v30  ;;  %v2132_v38 = vadd.f32 %v2106_v60, %v634_v36  ;;  %v681_v39 = vmul.f32 3.8918573e-05, %v2119_v30 }
 0x1ba   : > { %v748_v40 = vmul.f32 %v2129_v37, %v2129_v37 }
 0x1bb   : > { %v671_v46 = vadd.f32 0.00028619796, %v670_v31  ;;  %v2138_v47 = vmul.f32 0.70710677, %v2132_v38  ;;  %v682_v42 = vadd.f32 0.001143296, %v681_v39 }
 0x1bc   : > { %v2143_v43 = vmin.f32 %v748_v40, 16.0 }
 0x1bd   : > { %v708_v48 = vmul.f32 %v2138_v47, %v2138_v47  ;;  %v672_v49 = vmul.f32 %v671_v46, %v2119_v30  ;;  %v639_v52 = vpop.f32.mrf.mxu2  ;;  %v683_v53 = vmul.f32 %v682_v42, %v2119_v30 }
 0x1be   : > { %v750_v54 = vmul.f32 2.1237322e-06, %v2143_v43  ;;  %v2153_v57 = vadd.f32 %v2106_v60, %v639_v52  ;;  %v761_v21 = vmul.f32 3.8918573e-05, %v2143_v43  ;;  %v1560_v52 = vld [vmem:[%s2556_s5] sm:$0xff] }
 0x1bf   : > { %v2150_v56 = vmin.f32 %v708_v48, 16.0  ;;  %v684_v59 = vadd.f32 0.014752088, %v683_v53  ;;  %v673_v63 = vadd.f32 0.0036580483, %v672_v49  ;;  %1083 = vmatpush.bf16.msra.mxu1 %v1560_v52 }
 0x1c0   : > { %v2160_v0 = vmul.f32 0.70710677, %v2153_v57  ;;  %v751_v27 = vadd.f32 0.00028619796, %v750_v54  ;;  %v762_v36 = vadd.f32 0.001143296, %v761_v21 }
 0x1c1   : > { %v710_v62 = vmul.f32 2.1237322e-06, %v2150_v56  ;;  %v685_v1 = vmul.f32 %v684_v59, %v2119_v30  ;;  %v721_v8 = vmul.f32 3.8918573e-05, %v2150_v56  ;;  %v674_v12 = vmul.f32 %v673_v63, %v2119_v30 }
 0x1c2   : > { %v788_v6 = vmul.f32 %v2160_v0, %v2160_v0  ;;  %v752_v14 = vmul.f32 %v751_v27, %v2143_v43  ;;  %v763_v54 = vmul.f32 %v762_v36, %v2143_v43 }
 0x1c3   : > { %v711_v2 = vadd.f32 0.00028619796, %v710_v62  ;;  %v686_v7 = vadd.f32 0.112945676, %v685_v1  ;;  %v722_v23 = vadd.f32 0.001143296, %v721_v8 }
 0x1c4   : > { %v2170_v44 = vmin.f32 %v788_v6, 16.0  ;;  %v675_v26 = vadd.f32 0.05243302, %v674_v12  ;;  %v753_v61 = vadd.f32 0.0036580483, %v752_v14 }
 0x1c5   : > { %v642_v55 = vpop.f32.mrf.mxu2  ;;  %v687_v13 = vmul.f32 %v686_v7, %v2119_v30  ;;  %v712_v15 = vmul.f32 %v711_v2, %v2150_v56  ;;  %v647_v50 = vpop.f32.mrf.mxu3  ;;  %v723_v46 = vmul.f32 %v722_v23, %v2150_v56  ;;  %v764_v12 = vadd.f32 0.014752088, %v763_v54 }
 0x1c6   : > { %v2176_v18 = vadd.f32 %v2106_v60, %v642_v55  ;;  %v790_v22 = vmul.f32 2.1237322e-06, %v2170_v44  ;;  %v2188_v32 = vadd.f32 %v2106_v60, %v647_v50  ;;  %v676_v40 = vmul.f32 %v675_v26, %v2119_v30 }
 0x1c7   : > { %v688_v19 = vadd.f32 0.4994258, %v687_v13  ;;  %v713_v29 = vadd.f32 0.0036580483, %v712_v15  ;;  %v754_v42 = vmul.f32 %v753_v61, %v2143_v43  ;;  %v724_v62 = vadd.f32 0.014752088, %v723_v46 }
 0x1c8   : > { %v2184_v45 = vmul.f32 0.70710677, %v2176_v18  ;;  %v791_v31 = vadd.f32 0.00028619796, %v790_v22  ;;  %v2209_v53 = vmul.f32 0.70710677, %v2188_v32  ;;  %v765_v61 = vmul.f32 %v764_v12, %v2143_v43 }
 0x1c9   : > { %v689_v25 = vmul.f32 %v688_v19, %v2119_v30  ;;  %v714_v48 = vmul.f32 %v713_v29, %v2150_v56  ;;  %v677_v63 = vadd.f32 0.18741608, %v676_v40  ;;  %v755_v27 = vadd.f32 0.05243302, %v754_v42 }
 0x1ca   : > { %v828_v39 = vmul.f32 %v2184_v45, %v2184_v45  ;;  %v792_v58 = vmul.f32 %v791_v31, %v2170_v44  ;;  %v908_v7 = vmul.f32 %v2209_v53, %v2209_v53  ;;  %v725_v15 = vmul.f32 %v724_v62, %v2150_v56 }
 0x1cb   : > { %v2193_v35 = vadd.f32 1.0, %v689_v25  ;;  %v715_v2 = vadd.f32 0.05243302, %v714_v48  ;;  %v678_v20 = vmul.f32 %v677_v63, %v2119_v30  ;;  %v756_v22 = vmul.f32 %v755_v27, %v2143_v43 }
 0x1cc   : > { %v2213_v59 = vmin.f32 %v828_v39, 16.0  ;;  %v793_v55 = vadd.f32 0.0036580483, %v792_v58  ;;  %v2233_v26 = vmin.f32 %v908_v7, 16.0  ;;  %v726_v36 = vadd.f32 0.112945676, %v725_v15 }
 0x1cd   : > { %v644_v41 = vpop.f32.mrf.mxu2  ;;  %1698 = vrcp.f32 %v2193_v35  ;;  %v649_v51 = vpop.f32.mrf.mxu3  ;;  %v716_v50 = vmul.f32 %v715_v2, %v2150_v56  ;;  %v679_v31 = vadd.f32 1.1283791, %v678_v20  ;;  %v757_v39 = vadd.f32 0.18741608, %v756_v22 }
 0x1ce   : > { %v2203_v49 = vadd.f32 %v2106_v60, %v644_v41  ;;  %v830_v13 = vmul.f32 2.1237322e-06, %v2213_v59  ;;  %v2229_v21 = vadd.f32 %v2106_v60, %v649_v51  ;;  %v794_v29 = vmul.f32 %v793_v55, %v2170_v44 }
 0x1cf   : > { %v717_v46 = vadd.f32 0.18741608, %v716_v50  ;;  %v727_v41 = vmul.f32 %v726_v36, %v2150_v56  ;;  %v910_v42 = vmul.f32 2.1237322e-06, %v2233_v26  ;;  %v766_v52 = vadd.f32 0.112945676, %v765_v61 }
 0x1d0   : > { %v2216_v1 = vmul.f32 0.70710677, %v2203_v49  ;;  %v831_v33 = vadd.f32 0.00028619796, %v830_v13  ;;  %v2239_v60 = vmul.f32 0.70710677, %v2229_v21  ;;  %vm696_vm12 = vweird.f32 %v2193_v35 }
 0x1d1   : > { %v795_v54 = vadd.f32 0.05243302, %v794_v29  ;;  %v702_v62 = vand.u32 2147483648, %v2193_v35  ;;  %v728_v63 = vadd.f32 0.4994258, %v727_v41  ;;  %v767_v51 = vmul.f32 %v766_v52, %v2143_v43 }
 0x1d2   : > { %v868_v8 = vmul.f32 %v2216_v1, %v2216_v1  ;;  %v832_v58 = vmul.f32 %v831_v33, %v2213_v59  ;;  %v948_v27 = vmul.f32 %v2239_v60, %v2239_v60  ;;  %v700_v2 = vand.u32 2147483647, %v2193_v35 }
 0x1d3   : > { %v1699_v6 = vpop.eup %1698  ;;  %v758_v7 = vmul.f32 %v757_v39, %v2143_v43  ;;  %v729_v13 = vmul.f32 %v728_v63, %v2150_v56  ;;  %v768_v20 = vadd.f32 0.4994258, %v767_v51  ;;  %v796_v22 = vmul.f32 %v795_v54, %v2170_v44 }
 0x1d4   : > { %v692_v14 = vmul.f32 %v1699_v6, %v2193_v35  ;;  %v2226_v19 = vmin.f32 %v868_v8, 16.0  ;;  %vm697_vm11 = vweird.f32 %v1699_v6  ;;  %v718_v8 = vmul.f32 %v717_v46, %v2150_v56 }
 0x1d5   : > { %vm2253_vm13 = vmor %vm696_vm12, %vm697_vm11  ;;  %v801_v35 = vmul.f32 3.8918573e-05, %v2170_v44  ;;  %v833_v50 = vadd.f32 0.0036580483, %v832_v58  ;;  %v2262_v61 = vmin.f32 %v948_v27, 16.0  ;;  %vm701_vm14 = vcmp.eq.f32.partialorder %v700_v2, 8.507059e+37 }
 0x1d6   : > { %v693_v23 = vsub.f32 1.0, %v692_v14  ;;  %v870_v25 = vmul.f32 2.1237322e-06, %v2226_v19  ;;  %v911_v14 = vadd.f32 0.00028619796, %v910_v42  ;;  %v769_v29 = vmul.f32 %v768_v20, %v2143_v43 }
 0x1d7   : > { %v802_v33 = vadd.f32 0.001143296, %v801_v35  ;;  %v680_v36 = vmul.f32 %v679_v31, %v2112_v24  ;;  %v719_v39 = vadd.f32 1.1283791, %v718_v8  ;;  %v797_v46 = vadd.f32 0.18741608, %v796_v22 }
 0x1d8   : > { %v694_v30 = vmul.f32 %v1699_v6, %v693_v23  ;;  %v871_v40 = vadd.f32 0.00028619796, %v870_v25  ;;  %v703_v23 = vor.u32 1.1754944e-38, %v702_v62  ;;  %v730_v25 = vadd.f32 1.0, %v729_v13 }
 0x1d9   : > { %v2267_v41 = vadd.f32 1.0, %v769_v29  ;;  %v834_v42 = vmul.f32 %v833_v50, %v2213_v59  ;;  %v803_v43 = vmul.f32 %v802_v33, %v2170_v44  ;;  %v2275_v54 = vmul.f32 0.5, %v2109_v28 }
 0x1da   : > { %v695_v48 = vadd.f32 %v1699_v6, %v694_v30  ;;  %v872_v12 = vmul.f32 %v871_v40, %v2226_v19  ;;  %1700 = vrcp.f32 %v730_v25  ;;  %v912_v40 = vmul.f32 %v911_v14, %v2233_v26 }
 0x1db   : > { %1702 = vrcp.f32 %v2267_v41  ;;  %v2283_v58 = vmul.f32 0.5, %v2132_v38  ;;  %v720_v62 = vmul.f32 %v719_v39, %v2138_v47  ;;  %v804_v63 = vadd.f32 0.014752088, %v803_v43 }
 0x1dc   : > { %v699_v15 = vsel %vm2253_vm13, %v1699_v6, %v695_v48  ;;  %v873_v30 = vadd.f32 0.0036580483, %v872_v12  ;;  %v759_v6 = vadd.f32 1.1283791, %v758_v7  ;;  %v950_v48 = vmul.f32 2.1237322e-06, %v2262_v61 }
 0x1dd   : > { %v704_v56 = vsel %vm701_vm14, %v703_v23, %v699_v15  ;;  %v2287_v2 = vmul.f32 %v797_v46, %v2170_v44  ;;  %v2289_v51 = vadd.f32 0.0036580483, %v912_v40  ;;  %v841_v28 = vmul.f32 3.8918573e-05, %v2213_v59 }
 0x1de   : > { %v2271_v52 = vmul.f32 %v704_v56, %v680_v36  ;;  %v874_v24 = vmul.f32 %v873_v30, %v2226_v19  ;;  %v2280_v31 = vmul.f32 %v759_v6, %v2129_v37  ;;  %v881_v7 = vmul.f32 3.8918573e-05, %v2226_v19 }
 0x1df   : > { %v835_v8 = vadd.f32 0.05243302, %v834_v42  ;;  %v951_v12 = vadd.f32 0.00028619796, %v950_v48  ;;  %v740_v13 = vand.u32 2147483647, %v730_v25  ;;  %v805_v47 = vmul.f32 %v804_v63, %v2170_v44 }
 0x1e0   : > { %v1701_v27 = vpop.eup %1700  ;;  %v1468_v37 = vclamps-f32 %v2271_v52, 1.0  ;;  %v875_v38 = vadd.f32 0.05243302, %v874_v24  ;;  %v842_v14 = vadd.f32 0.001143296, %v841_v28  ;;  %vm736_vm15 = vweird.f32 %v730_v25 }
 0x1e1   : > { %v732_v55 = vmul.f32 %v1701_v27, %v730_v25  ;;  %v882_v20 = vadd.f32 0.001143296, %v881_v7  ;;  %v921_v35 = vmul.f32 3.8918573e-05, %v2233_v26  ;;  %v2296_v22 = vpop.eup %1702  ;;  %v742_v50 = vand.u32 2147483648, %v730_v25 }
 0x1e2   : > { %v806_v23 = vadd.f32 0.112945676, %v805_v47  ;;  %v843_v29 = vmul.f32 %v842_v14, %v2213_v59  ;;  %v961_v33 = vmul.f32 3.8918573e-05, %v2262_v61  ;;  %vm737_vm1 = vweird.f32 %v1701_v27 }
 0x1e3   : > { %v733_v15 = vsub.f32 1.0, %v732_v55  ;;  %v772_v56 = vmul.f32 %v2296_v22, %v2267_v41  ;;  %v883_v36 = vmul.f32 %v882_v20, %v2226_v19  ;;  %vm2303_vm2 = vcmp.eq.f32.partialorder %v740_v13, 8.507059e+37  ;;  %vm738_vm3 = vmor %vm736_vm15, %vm737_vm1 }
 0x1e4   : > { %v807_v39 = vmul.f32 %v806_v23, %v2170_v44  ;;  %v844_v46 = vadd.f32 0.014752088, %v843_v29  ;;  %v922_v40 = vadd.f32 0.001143296, %v921_v35  ;;  %v962_v43 = vadd.f32 0.001143296, %v961_v33 }
 0x1e5   : > { %v734_v30 = vmul.f32 %v1701_v27, %v733_v15  ;;  %v773_v48 = vsub.f32 1.0, %v772_v56  ;;  %v884_v52 = vadd.f32 0.014752088, %v883_v36  ;;  %v743_v24 = vor.u32 1.1754944e-38, %v742_v50 }
 0x1e6   : > { %v808_v63 = vadd.f32 0.4994258, %v807_v39  ;;  %v845_v28 = vmul.f32 %v844_v46, %v2213_v59  ;;  %v923_v7 = vmul.f32 %v922_v40, %v2233_v26  ;;  %v963_v14 = vmul.f32 %v962_v43, %v2262_v61 }
 0x1e7   : > { %v735_v42 = vadd.f32 %v1701_v27, %v734_v30  ;;  %v774_v13 = vmul.f32 %v2296_v22, %v773_v48  ;;  %v885_v47 = vmul.f32 %v884_v52, %v2226_v19  ;;  %vm777_vm4 = vweird.f32 %v2296_v22 }
 0x1e8   : > { %v809_v20 = vmul.f32 %v808_v63, %v2170_v44  ;;  %v846_v25 = vadd.f32 0.112945676, %v845_v28  ;;  %v924_v35 = vadd.f32 0.014752088, %v923_v7  ;;  %v964_v29 = vadd.f32 0.014752088, %v963_v14 }
 0x1e9   : > { %v739_v55 = vsel %vm738_vm3, %v1701_v27, %v735_v42  ;;  %v886_v23 = vadd.f32 0.112945676, %v885_v47  ;;  %v775_v27 = vadd.f32 %v2296_v22, %v774_v13  ;;  %v988_v6 = vadd.f32 1.0, %v1468_v37 }
 0x1ea   : > { %v744_v15 = vsel %vm2303_vm2, %v743_v24, %v739_v55  ;;  %v2319_v33 = vadd.f32 1.0, %v809_v20  ;;  %v847_v30 = vmul.f32 %v846_v25, %v2213_v59  ;;  %v925_v56 = vmul.f32 %v924_v35, %v2233_v26 }
 0x1eb   : > { %v745_v50 = vmul.f32 %v744_v15, %v720_v62  ;;  %v782_v39 = vand.u32 2147483648, %v2267_v41  ;;  %v887_v44 = vmul.f32 %v886_v23, %v2226_v19  ;;  %vm776_vm5 = vweird.f32 %v2267_v41 }
 0x1ec   : > { %v780_v62 = vand.u32 2147483647, %v2267_v41  ;;  %1704 = vrcp.f32 %v2319_v33  ;;  %v965_v46 = vmul.f32 %v964_v29, %v2262_v61  ;;  %v836_v40 = vmul.f32 %v835_v8, %v2213_v59  ;;  %vm2333_vm6 = vmor %vm776_vm5, %vm777_vm4 }
 0x1ed   : > { %v1469_v36 = vclamps-f32 %v745_v50, 1.0  ;;  %v952_v42 = vmul.f32 %v951_v12, %v2262_v61  ;;  %v848_v52 = vadd.f32 0.4994258, %v847_v30  ;;  %v876_v43 = vmul.f32 %v875_v38, %v2226_v19 }
 0x1ee   : > { %v779_v41 = vsel %vm2333_vm6, %v2296_v22, %v775_v27  ;;  %v888_v24 = vadd.f32 0.4994258, %v887_v44  ;;  %v926_v63 = vadd.f32 0.112945676, %v925_v56  ;;  %v996_v8 = vmul.f32 %v988_v6, %v2275_v54 }
 0x1ef   : > { %v989_v48 = vadd.f32 1.0, %v1469_v36  ;;  %v783_v28 = vor.u32 1.1754944e-38, %v782_v39  ;;  %v849_v7 = vmul.f32 %v848_v52, %v2213_v59  ;;  %vm781_vm7 = vcmp.eq.f32.partialorder %v780_v62, 8.507059e+37 }
 0x1f0   : > { %v889_v55 = vmul.f32 %v888_v24, %v2226_v19  ;;  %v927_v13 = vmul.f32 %v926_v63, %v2233_v26  ;;  %v966_v47 = vadd.f32 0.112945676, %v965_v46  ;;  %v837_v38 = vadd.f32 0.18741608, %v836_v40 }
 0x1f1   : > { %v997_v12 = vmul.f32 %v989_v48, %v2283_v58  ;;  %v784_v15 = vsel %vm781_vm7, %v783_v28, %v779_v41  ;;  %v2346_v20 = vadd.f32 1.0, %v849_v7  ;;  %v953_v25 = vadd.f32 0.0036580483, %v952_v42 }
 0x1f2   : > { %v1705_v22 = vpop.eup %1704  ;;  %v2348_v35 = vadd.f32 1.0, %v889_v55  ;;  %v928_v54 = vadd.f32 0.4994258, %v927_v13  ;;  %v967_v58 = vmul.f32 %v966_v47, %v2262_v61  ;;  %v877_v50 = vadd.f32 0.18741608, %v876_v43 }
 0x1f3   : > { %v1004_v14 = vpack.c.bf16 %v997_v12, %v996_v8  ;;  %v812_v23 = vmul.f32 %v1705_v22, %v2319_v33  ;;  %1706 = vrcp.f32 %v2346_v20  ;;  %v654_v29 = vmul.f32 0.5, %v2122_v34 }
 0x1f4   : > { %v914_v27 = vmul.f32 %v2289_v51, %v2233_v26  ;;  %v785_v30 = vmul.f32 %v784_v15, %v2280_v31  ;;  %1708 = vrcp.f32 %v2348_v35  ;;  %v655_v56 = vmul.f32 0.5, %v2153_v57 }
 0x1f5   : > { %1084 = vmatmul.bf16.vlgmr.msra.gmra.mxu1 %v1004_v14  ;;  %v799_v36 = vadd.f32 1.1283791, %v2287_v2  ;;  %v838_v6 = vmul.f32 %v837_v38, %v2213_v59  ;;  %v813_v39 = vsub.f32 1.0, %v812_v23  ;;  %v954_v44 = vmul.f32 %v953_v25, %v2262_v61 }
 0x1f6   : > { %v822_v62 = vand.u32 2147483648, %v2319_v33  ;;  %v929_v34 = vmul.f32 %v928_v54, %v2233_v26  ;;  %v968_v46 = vadd.f32 0.4994258, %v967_v58  ;;  %v878_v51 = vmul.f32 %v877_v50, %v2226_v19 }
 0x1f7   : > { %v814_v40 = vmul.f32 %v1705_v22, %v813_v39  ;;  %vm817_vm8 = vweird.f32 %v1705_v22  ;;  %v820_v31 = vand.u32 2147483647, %v2319_v33  ;;  %v915_v42 = vadd.f32 0.05243302, %v914_v27 }
 0x1f8   : > { %v1470_v57 = vclamps-f32 %v785_v30, 1.0  ;;  %v2366_v48 = vadd.f32 1.0, %v929_v34  ;;  %v969_v59 = vmul.f32 %v968_v46, %v2262_v61  ;;  %v800_v37 = vmul.f32 %v799_v36, %v2160_v0 }
 0x1f9   : > { %v1707_v2 = vpop.eup %1706  ;;  %v839_v52 = vadd.f32 1.1283791, %v838_v6  ;;  %v815_v43 = vadd.f32 %v1705_v22, %v814_v40  ;;  %vm816_vm9 = vweird.f32 %v2319_v33  ;;  %v955_v24 = vadd.f32 0.05243302, %v954_v44 }
 0x1fa   : > { %v1709_v41 = vpop.eup %1708  ;;  %vm818_vm10 = vmor %vm816_vm9, %vm817_vm8  ;;  %v823_v19 = vor.u32 1.1754944e-38, %v822_v62  ;;  %v852_v63 = vmul.f32 %v1707_v2, %v2346_v20  ;;  %1710 = vrcp.f32 %v2366_v48  ;;  %v879_v8 = vadd.f32 1.1283791, %v878_v51 }
 0x1fb   : > { %v819_v12 = vsel %vm818_vm10, %v1705_v22, %v815_v43  ;;  %vm821_vm11 = vcmp.eq.f32.partialorder %v820_v31, 8.507059e+37  ;;  %v892_v28 = vmul.f32 %v1709_v41, %v2348_v35  ;;  %v990_v55 = vadd.f32 1.0, %v1470_v57 }
 0x1fc   : > { %v824_v7 = vsel %vm821_vm11, %v823_v19, %v819_v12  ;;  %v853_v0 = vsub.f32 1.0, %v852_v63  ;;  %v2374_v13 = vadd.f32 1.0, %v969_v59  ;;  %v860_v33 = vand.u32 2147483647, %v2346_v20 }
 0x1fd   : > { %v825_v47 = vmul.f32 %v824_v7, %v800_v37  ;;  %v862_v38 = vand.u32 2147483648, %v2346_v20  ;;  %v893_v14 = vsub.f32 1.0, %v892_v28  ;;  %vm857_vm12 = vweird.f32 %v1707_v2 }
 0x1fe   : > { %v854_v15 = vmul.f32 %v1707_v2, %v853_v0  ;;  %v902_v25 = vand.u32 2147483648, %v2348_v35  ;;  %1712 = vrcp.f32 %v2374_v13  ;;  %vm897_vm13 = vweird.f32 %v1709_v41 }
 0x1ff   : > { %v1471_v22 = vclamps-f32 %v825_v47, 1.0  ;;  %v894_v54 = vmul.f32 %v1709_v41, %v893_v14  ;;  %v900_v58 = vand.u32 2147483647, %v2348_v35  ;;  %v880_v23 = vmul.f32 %v879_v8, %v2216_v1 }
 0x200   : > { %v2381_v50 = vpop.eup %1710  ;;  %v956_v27 = vmul.f32 %v955_v24, %v2262_v61  ;;  %v855_v30 = vadd.f32 %v1707_v2, %v854_v15  ;;  %vm856_vm14 = vweird.f32 %v2346_v20  ;;  %vm896_vm1 = vweird.f32 %v2348_v35 }
 0x201   : > { %v991_v36 = vadd.f32 1.0, %v1471_v22  ;;  %vm2386_vm15 = vmor %vm856_vm14, %vm857_vm12  ;;  %v895_v39 = vadd.f32 %v1709_v41, %v894_v54  ;;  %v932_v44 = vmul.f32 %v2381_v50, %v2366_v48  ;;  %v998_v62 = vmul.f32 %v990_v55, %v654_v29 }
 0x202   : > { %v859_v1 = vsel %vm2386_vm15, %v1707_v2, %v855_v30  ;;  %v863_v34 = vor.u32 1.1754944e-38, %v862_v38  ;;  %vm898_vm2 = vmor %vm896_vm1, %vm897_vm13  ;;  %v903_v46 = vor.u32 1.1754944e-38, %v902_v25  ;;  %vm861_vm3 = vcmp.eq.f32.partialorder %v860_v33, 8.507059e+37 }
 0x203   : > { %v999_v20 = vmul.f32 %v991_v36, %v655_v56  ;;  %v899_v51 = vsel %vm898_vm2, %v1709_v41, %v895_v39  ;;  %vm901_vm4 = vcmp.eq.f32.partialorder %v900_v58, 8.507059e+37  ;;  %v840_v31 = vmul.f32 %v839_v52, %v2184_v45  ;;  %v1569_v56 = vld [vmem:[%s2558_s7 + $0x18] sm:$0xff]  ;;  %v1568_v52 = vld [vmem:[%s2558_s7 + $0x10] sm:$0xff] }
 0x204   : > { %v1713_v40 = vpop.eup %1712  ;;  %v916_v35 = vmul.f32 %v915_v42, %v2233_v26  ;;  %v864_v57 = vsel %vm861_vm3, %v863_v34, %v859_v1  ;;  %v904_v59 = vsel %vm901_vm4, %v903_v46, %v899_v51  ;;  %v933_v43 = vsub.f32 1.0, %v932_v44  ;;  %1144 = vmatpush.bf16.msrb.mxu2 %v1569_v56 }
 0x205   : > { %v1005_v37 = vpack.c.bf16 %v999_v20, %v998_v62  ;;  %v905_v29 = vmul.f32 %v904_v59, %v880_v23  ;;  %v972_v2 = vmul.f32 %v1713_v40, %v2374_v13  ;;  %v957_v24 = vadd.f32 0.18741608, %v956_v27  ;;  %v1678_v59 = vld [vmem:[%s2557_s6] ss:$0 sm:$0xff] }
 0x206   : > { %v865_v19 = vmul.f32 %v864_v57, %v840_v31  ;;  %v917_v41 = vadd.f32 0.18741608, %v916_v35  ;;  %v934_v45 = vmul.f32 %v2381_v50, %v933_v43  ;;  %vm977_vm5 = vweird.f32 %v1713_v40  ;;  %v1573_v35 = vld [vmem:[%s2558_s7 + $0x28] sm:$0xff] }
 0x207   : > { %1089 = vmatmul.bf16.gmra.mxu1 %v1005_v37  ;;  %v973_v63 = vsub.f32 1.0, %v972_v2  ;;  %v1473_v8 = vclamps-f32 %v905_v29, 1.0  ;;  %v958_v12 = vmul.f32 %v957_v24, %v2262_v61  ;;  %vm976_vm6 = vweird.f32 %v2374_v13  ;;  %1272 = vmatpush.bf16.msrb.mxu0 %v1573_v35 }
 0x208   : > { %v1472_v28 = vclamps-f32 %v865_v19, 1.0  ;;  %v918_v55 = vmul.f32 %v917_v41, %v2233_v26  ;;  %v982_v0 = vand.u32 2147483648, %v2374_v13  ;;  %v935_v33 = vadd.f32 %v2381_v50, %v934_v45  ;;  %1145 = vmatpush.bf16.msrb.mxu2 %v1568_v52  ;;  %vm978_vm8 = vmor %vm976_vm6, %vm977_vm5 }
 0x209   : > { %v974_v42 = vmul.f32 %v1713_v40, %v973_v63  ;;  %v993_v47 = vadd.f32 1.0, %v1473_v8  ;;  %vm937_vm7 = vweird.f32 %v2381_v50  ;;  %v980_v38 = vand.u32 2147483647, %v2374_v13 }
 0x20a   : > { %v657_v14 = vmul.f32 0.5, %v2203_v49  ;;  %v959_v61 = vadd.f32 1.1283791, %v958_v12  ;;  %v942_v15 = vand.u32 2147483648, %v2366_v48  ;;  %v992_v25 = vadd.f32 1.0, %v1472_v28 }
 0x20b   : > { %v975_v7 = vadd.f32 %v1713_v40, %v974_v42  ;;  %vm936_vm9 = vweird.f32 %v2366_v48  ;;  %v940_v26 = vand.u32 2147483647, %v2366_v48  ;;  %v656_v54 = vmul.f32 0.5, %v2176_v18 }
 0x20c   : > { %vm938_vm10 = vmor %vm936_vm9, %vm937_vm7  ;;  %v983_v58 = vor.u32 1.1754944e-38, %v982_v0  ;;  %v919_v23 = vadd.f32 1.1283791, %v918_v55  ;;  %v1001_v27 = vmul.f32 %v993_v47, %v657_v14  ;;  %vm981_vm11 = vcmp.eq.f32.partialorder %v980_v38, 8.507059e+37  ;;  %v2453_v38 = vld [vmem:[%s2559_s8] ss:$0 sm:$0xff] }
 0x20d   : > { %v979_v22 = vsel %vm978_vm8, %v1713_v40, %v975_v7  ;;  %v939_v13 = vsel %vm938_vm10, %v2381_v50, %v935_v33  ;;  %v943_v49 = vor.u32 1.1754944e-38, %v942_v15  ;;  %v960_v36 = vmul.f32 %v959_v61, %v2239_v60 }
 0x20e   : > { %v984_v30 = vsel %vm981_vm11, %v983_v58, %v979_v22  ;;  %v1000_v6 = vmul.f32 %v992_v25, %v656_v54  ;;  %vm941_vm12 = vcmp.eq.f32.partialorder %v940_v26, 8.507059e+37  ;;  %v920_v44 = vmul.f32 %v919_v23, %v2209_v53  ;;  %v1571_v53 = vld [vmem:[%s2558_s7 + $0x8] sm:$0xff] }
 0x20f   : > { %v944_v39 = vsel %vm941_vm12, %v943_v49, %v939_v13  ;;  %v985_v62 = vmul.f32 %v984_v30, %v960_v36  ;;  %v659_v20 = vmul.f32 0.5, %v2229_v21  ;;  %v658_v51 = vmul.f32 0.5, %v2188_v32  ;;  %1209 = vmatpush.bf16.msrb.mxu3 %v1571_v53  ;;  %v1570_v21 = vld [vmem:[%s2558_s7] sm:$0xff] }
 0x210   : > { %v1006_v48 = vpack.c.bf16 %v1001_v27, %v1000_v6  ;;  %v945_v18 = vmul.f32 %v944_v39, %v920_v44  ;;  %v1572_v32 = vld [vmem:[%s2558_s7 + $0x20] sm:$0xff] }
 0x211   : > { %v1475_v1 = vclamps-f32 %v985_v62, 1.0  ;;  %1273 = vmatpush.bf16.msrb.mxu0 %v1572_v32 }
 0x212   : > { %v1474_v34 = vclamps-f32 %v945_v18, 1.0 }
 0x213   : > { %v995_v46 = vadd.f32 1.0, %v1475_v1  ;;  %1210 = vmatpush.bf16.msrb.mxu3 %v1570_v21 }
 0x214   : > { %v994_v50 = vadd.f32 1.0, %v1474_v34 }
 0x215   : > { %v1003_v40 = vmul.f32 %v995_v46, %v659_v20 }
 0x216   : > { %v1002_v31 = vmul.f32 %v994_v50, %v658_v51 }
 0x217   : > { %1094 = vmatmul.bf16.gmra.mxu1 %v1006_v48 }
 0x218   : > { %v1007_v60 = vpack.c.bf16 %v1003_v40, %v1002_v31 }
 0x227   : > { %1099 = vmatmul.bf16.gmra.mxu1 %v1007_v60 }
 0x272   : > { %v1085_v57 = vpop.f32.mrf.mxu1 }
 0x273   : > { %v1086_v29 = vadd.f32 %v1678_v59, %v1085_v57 }
 0x27a   : > { %v1087_v37 = vpop.f32.mrf.mxu1 }
 0x27b   : > { %v1088_v43 = vadd.f32 %v1678_v59, %v1087_v37 }
 0x27d   : > { %v1105_v2 = vpack.c.bf16 %v1088_v43, %v1086_v29 }
 0x27f   : > { %1520 = vmatmul.msk.bf16.vlgmr.msrb.gmra.mxu2 %vm379_vm0, %v1105_v2  ;;  %1532 = vmatmul.msk.bf16.vlgmr.msrb.gmra.mxu3 %vm379_vm0, %v1105_v2 }
 0x280   : > { %1548 = vmatmul.msk.bf16.vlgmr.msrb.gmra.mxu0 %vm379_vm0, %v1105_v2 }
 0x284   : > { %v1090_v24 = vpop.f32.mrf.mxu1 }
 0x285   : > { %v1091_v63 = vadd.f32 %v1678_v59, %v1090_v24 }
 0x28c   : > { %v1092_v19 = vpop.f32.mrf.mxu1 }
 0x28d   : > { %v1093_v56 = vadd.f32 %v1678_v59, %v1092_v19 }
 0x28f   : > { %v1106_v41 = vpack.c.bf16 %v1093_v56, %v1091_v63 }
 0x291   : > { %1521 = vmatmul.msk.bf16.gmra.mxu2 %vm379_vm0, %v1106_v41  ;;  %1533 = vmatmul.msk.bf16.gmra.mxu3 %vm379_vm0, %v1106_v41 }
 0x292   : > { %1549 = vmatmul.msk.bf16.gmra.mxu0 %vm379_vm0, %v1106_v41 }
 0x294   : > { %v1095_v8 = vpop.f32.mrf.mxu1 }
 0x295   : > { %v1096_v42 = vadd.f32 %v1678_v59, %v1095_v8 }
 0x29c   : > { %v1097_v45 = vpop.f32.mrf.mxu1 }
 0x29d   : > { %v1098_v52 = vadd.f32 %v1678_v59, %v1097_v45 }
 0x29f   : > { %v1107_v12 = vpack.c.bf16 %v1098_v52, %v1096_v42 }
 0x2a1   : > { %1522 = vmatmul.msk.bf16.gmra.mxu2 %vm379_vm0, %v1107_v12  ;;  %1534 = vmatmul.msk.bf16.gmra.mxu3 %vm379_vm0, %v1107_v12 }
 0x2a2   : > { %1550 = vmatmul.msk.bf16.gmra.mxu0 %vm379_vm0, %v1107_v12 }
 0x2a4   : > { %v1100_v28 = vpop.f32.mrf.mxu1 }
 0x2a5   : > { %v1101_v55 = vadd.f32 %v1678_v59, %v1100_v28 }
 0x2ac   : > { %v1102_v7 = vpop.f32.mrf.mxu1 }
 0x2ad   : > { %v1103_v0 = vadd.f32 %v1678_v59, %v1102_v7 }
 0x2af   : > { %v1108_v47 = vpack.c.bf16 %v1103_v0, %v1101_v55 }
 0x2b1   : > { %1523 = vmatmul.msk.bf16.gmra.mxu2 %vm379_vm0, %v1108_v47  ;;  %1535 = vmatmul.msk.bf16.gmra.mxu3 %vm379_vm0, %v1108_v47 }
 0x2b2   : > { %1551 = vmatmul.msk.bf16.gmra.mxu0 %vm379_vm0, %v1108_v47 }
 0x2fd   : > { %v1275_v33 = vpop.f32.mrf.mxu0 }
 0x302   : > { %v1147_v14 = vpop.f32.mrf.mxu2  ;;  %v1212_v61 = vpop.f32.mrf.mxu3 }
 0x303   : > { %v1171_v15 = vadd.f32 %v2453_v38, %v1147_v14 }
 0x305   : > { %1179 = vst.msk [vmem:[#allocation2] sm:$0xff] %vm379_vm0, %v1171_v15  ;;  %v1276_v25 = vpop.f32.mrf.mxu0 }
 0x30a   : > { %v1149_v26 = vpop.f32.mrf.mxu2  ;;  %v1214_v54 = vpop.f32.mrf.mxu3 }
 0x30b   : > { %v1172_v22 = vadd.f32 %v2453_v38, %v1149_v26 }
 0x30c   : > { %v1293_v58 = vld [vmem:[#allocation2] sm:$0xff] }
 0x30d   : > { %1180 = vst.msk [vmem:[#allocation2 + $0x8] sm:$0xff] %vm379_vm0, %v1172_v22 }
 0x30f   : > { %v1278_v23 = vpop.f32.mrf.mxu0 }
 0x310   : > { %v1299_v27 = vadd.f32 %v1293_v58, %v1278_v23 }
 0x312   : > { %1305 = vst.msk [vmem:[#allocation2] sm:$0xff] %vm379_vm0, %v1299_v27 }
 0x314   : > { %v1152_v13 = vpop.f32.mrf.mxu2  ;;  %v1217_v49 = vpop.f32.mrf.mxu3  ;;  %v1294_v36 = vld [vmem:[#allocation2 + $0x8] sm:$0xff] }
 0x315   : > { %v1173_v30 = vadd.f32 %v2453_v38, %v1152_v13 }
 0x317   : > { %1181 = vst.msk [vmem:[#allocation2 + $0x10] sm:$0xff] %vm379_vm0, %v1173_v30  ;;  %v1280_v6 = vpop.f32.mrf.mxu0 }
 0x318   : > { %v1300_v39 = vadd.f32 %v1294_v36, %v1280_v6 }
 0x319   : > { %v1327_v44 = vld [vmem:[#allocation2] sm:$0xff] }
 0x31a   : > { %v1335_v48 = vadd.f32 %v1909_v4, %v1327_v44  ;;  %1306 = vst.msk [vmem:[#allocation2 + $0x8] sm:$0xff] %vm379_vm0, %v1300_v39 }
 0x31c   : > { %v1154_v62 = vpop.f32.mrf.mxu2  ;;  %v1219_v18 = vpop.f32.mrf.mxu3  ;;  %1343 = vst.msk [vmem:[%s2467_s28] sm:$0xff] %vm379_vm0, %v1335_v48 }
 0x31d   : > { %v1174_v1 = vadd.f32 %v2453_v38, %v1154_v62 }
 0x31e   : > { %v1231_v34 = vld [vmem:[#allocation2 + $0x10] sm:$0xff] }
 0x31f   : > { %v1237_v46 = vadd.f32 %v1231_v34, %v1212_v61  ;;  %1182 = vst.msk [vmem:[#allocation2 + $0x18] sm:$0xff] %vm379_vm0, %v1174_v1  ;;  %v1283_v4 = vpop.f32.mrf.mxu0 }
 0x321   : > { %1243 = vst.msk [vmem:[#allocation2 + $0x10] sm:$0xff] %vm379_vm0, %v1237_v46  ;;  %v1328_v20 = vld [vmem:[#allocation2 + $0x8] sm:$0xff] }
 0x322   : > { %v1336_v50 = vadd.f32 %v1923_v11, %v1328_v20 }
 0x324   : > { %v1157_v51 = vpop.f32.mrf.mxu2  ;;  %v1222_v40 = vpop.f32.mrf.mxu3  ;;  %1344 = vst.msk [vmem:[%s2467_s28 + $0x8] sm:$0xff] %vm379_vm0, %v1336_v50 }
 0x325   : > { %v1175_v31 = vadd.f32 %v2453_v38, %v1157_v51 }
 0x326   : > { %v1232_v60 = vld [vmem:[#allocation2 + $0x18] sm:$0xff] }
 0x327   : > { %v1238_v53 = vadd.f32 %v1232_v60, %v1214_v54  ;;  %1183 = vst.msk [vmem:[#allocation2 + $0x20] sm:$0xff] %vm379_vm0, %v1175_v31  ;;  %v1285_v32 = vpop.f32.mrf.mxu0 }
 0x328   : > { %v1295_v35 = vld [vmem:[#allocation2 + $0x10] sm:$0xff] }
 0x329   : > { %1244 = vst.msk [vmem:[#allocation2 + $0x18] sm:$0xff] %vm379_vm0, %v1238_v53  ;;  %v1301_v21 = vadd.f32 %v1295_v35, %v1283_v4 }
 0x32b   : > { %1307 = vst.msk [vmem:[#allocation2 + $0x10] sm:$0xff] %vm379_vm0, %v1301_v21 }
 0x32c   : > { %v1159_v57 = vpop.f32.mrf.mxu2  ;;  %v1224_v11 = vpop.f32.mrf.mxu3 }
 0x32d   : > { %v1176_v59 = vadd.f32 %v2453_v38, %v1159_v57 }
 0x32e   : > { %v1233_v37 = vld [vmem:[#allocation2 + $0x20] sm:$0xff] }
 0x32f   : > { %v1239_v29 = vadd.f32 %v1233_v37, %v1217_v49  ;;  %1184 = vst.msk [vmem:[#allocation2 + $0x28] sm:$0xff] %vm379_vm0, %v1176_v59  ;;  %v1288_v45 = vpop.f32.mrf.mxu0 }
 0x330   : > { %v1296_v43 = vld [vmem:[#allocation2 + $0x18] sm:$0xff] }
 0x331   : > { %1245 = vst.msk [vmem:[#allocation2 + $0x20] sm:$0xff] %vm379_vm0, %v1239_v29  ;;  %v1302_v2 = vadd.f32 %v1296_v43, %v1285_v32 }
 0x332   : > { %v1329_v24 = vld [vmem:[#allocation2 + $0x10] sm:$0xff] }
 0x333   : > { %v1337_v19 = vadd.f32 %v1911_v5, %v1329_v24  ;;  %1308 = vst.msk [vmem:[#allocation2 + $0x18] sm:$0xff] %vm379_vm0, %v1302_v2 }
 0x334   : > { %v1162_v63 = vpop.f32.mrf.mxu2  ;;  %v1227_v56 = vpop.f32.mrf.mxu3 }
 0x335   : > { %v1177_v41 = vadd.f32 %v2453_v38, %v1162_v63  ;;  %1345 = vst.msk [vmem:[%s2467_s28 + $0x10] sm:$0xff] %vm379_vm0, %v1337_v19 }
 0x336   : > { %v1234_v8 = vld [vmem:[#allocation2 + $0x28] sm:$0xff] }
 0x337   : > { %v1240_v42 = vadd.f32 %v1234_v8, %v1219_v18  ;;  %1185 = vst.msk [vmem:[#allocation2 + $0x30] sm:$0xff] %vm379_vm0, %v1177_v41  ;;  %v1290_v14 = vpop.f32.mrf.mxu0 }
 0x338   : > { %v1297_v52 = vld [vmem:[#allocation2 + $0x20] sm:$0xff] }
 0x339   : > { %1246 = vst.msk [vmem:[#allocation2 + $0x28] sm:$0xff] %vm379_vm0, %v1240_v42  ;;  %v1303_v12 = vadd.f32 %v1297_v52, %v1288_v45 }
 0x33a   : > { %v1330_v28 = vld [vmem:[#allocation2 + $0x18] sm:$0xff] }
 0x33b   : > { %v1338_v5 = vadd.f32 %v1919_v9, %v1330_v28  ;;  %1309 = vst.msk [vmem:[#allocation2 + $0x20] sm:$0xff] %vm379_vm0, %v1303_v12 }
 0x33c   : > { %v1164_v7 = vpop.f32.mrf.mxu2  ;;  %v1228_v55 = vpop.f32.mrf.mxu3 }
 0x33d   : > { %v1178_v0 = vadd.f32 %v2453_v38, %v1164_v7  ;;  %1346 = vst.msk [vmem:[%s2467_s28 + $0x18] sm:$0xff] %vm379_vm0, %v1338_v5 }
 0x33e   : > { %v1235_v47 = vld [vmem:[#allocation2 + $0x30] sm:$0xff] }
 0x33f   : > { %v1241_v33 = vadd.f32 %v1235_v47, %v1222_v40  ;;  %1186 = vst.msk [vmem:[#allocation2 + $0x38] sm:$0xff] %vm379_vm0, %v1178_v0 }
 0x340   : > { %v1298_v61 = vld [vmem:[#allocation2 + $0x28] sm:$0xff] }
 0x341   : > { %1247 = vst.msk [vmem:[#allocation2 + $0x30] sm:$0xff] %vm379_vm0, %v1241_v33  ;;  %v1304_v9 = vadd.f32 %v1298_v61, %v1290_v14 }
 0x342   : > { %v1331_v15 = vld [vmem:[#allocation2 + $0x20] sm:$0xff] }
 0x343   : > { %v1339_v25 = vadd.f32 %v1907_v3, %v1331_v15  ;;  %1310 = vst.msk [vmem:[#allocation2 + $0x28] sm:$0xff] %vm379_vm0, %v1304_v9 }
 0x345   : > { %1347 = vst.msk [vmem:[%s2467_s28 + $0x20] sm:$0xff] %vm379_vm0, %v1339_v25 }
 0x346   : > { %v1236_v38 = vld [vmem:[#allocation2 + $0x38] sm:$0xff] }
 0x347   : > { %v1242_v26 = vadd.f32 %v1236_v38, %v1224_v11 }
 0x348   : > { %v1333_v22 = vld [vmem:[#allocation2 + $0x30] sm:$0xff] }
 0x349   : > { %v1341_v54 = vadd.f32 %v1933_v17, %v1333_v22  ;;  %1248 = vst.msk [vmem:[#allocation2 + $0x38] sm:$0xff] %vm379_vm0, %v1242_v26 }
 0x34a   : > { %v1332_v58 = vld [vmem:[#allocation2 + $0x28] sm:$0xff] }
 0x34b   : > { %v1340_v3 = vadd.f32 %v1921_v10, %v1332_v58  ;;  %1349 = vst.msk [vmem:[%s2467_s28 + $0x30] sm:$0xff] %vm379_vm0, %v1341_v54 }
 0x34d   : > { %1348 = vst.msk [vmem:[%s2467_s28 + $0x28] sm:$0xff] %vm379_vm0, %v1340_v3 }
 0x350   : > { %v1334_v23 = vld [vmem:[#allocation2 + $0x38] sm:$0xff] }
 0x351   : > { %v1342_v17 = vadd.f32 %v1931_v16, %v1334_v23 }
 0x353   : > { %1350 = vst.msk [vmem:[%s2467_s28 + $0x38] sm:$0xff] %vm379_vm0, %v1342_v17 }
 0x354   : > { %1741 = shalt.err (!%p1738_p5)
}
 0x355   : > { %s1795_s26 = smov 128   ;;  %s1796_s28 = smov 8  }
 0x356   : > { %1617 = dma.vmem_to_hbm [thread:$0]  (%p1887_p4), %s1367_s20, 1024, %s1369_s12, %s1352_s23, %s1795_s26, %s1795_s26, %s1796_s28  }
 0x357 PF: > { %p1623_p6 = scmp.ge.s32.totalorder %s1792_s14, 2  ;;  %s1383_s27 = sand.u32 1, %s1772_s30  }
 0x358   : > { %s1384_s29 = scalar_lea.sflag [#allocation4], %s1383_s27 }
 0x359   : > { %p1620_p7 = pnand %p1623_p6, %p1894_p8 }
 0x35b   : > { %p1621_p9 = pneg %p1620_p7 }
 0x35d   : > { %1767 = dma.done.wait (%p1621_p9), %s1384_s29, 1024  }
 0x35e   : > { %1769 = vsyncadd (%p1621_p9), %s1384_s29, 4294966272  ;;  %s22_s14 = sadd.s32 1, %s1792_s14   ;;  %s2579_s30 = smov %s1776_s10 }
 0x35f   : > { %p19_p10 = scmp.ge.s32.totalorder %s22_s14, 4   ;;  %s2580_s10 = smov %s1780_s11 }
 0x360   : > { %s2581_s11 = smov %s1900_s22  ;;  %s2582_s12 = smov %s1788_s13 }
 0x361   : > { %s2583_s13 = smov %s2585_s17  ;;  %21 = sbr.rel (!%p19_p10) target bundleno = 4 (0x4), region = 94 }
 0x366   :  { %1390 = vsyncpa [#allocation4], 1 }
 0x367   :  { %1392 = vsyncpa [#allocation4 + $0x1], 1 }

// kernel: block_forward.2
= control target key start
LH: loop header
LB: loop body
LE: loop exit
PB: predicated region body
PF: predicated region fallthrough
CT: control target
= control target key end

     0   :  { %11 = vsyncpa [#allocation7], 0  ;;  %s4572_s0 = inlined_call_operand.hbm [shape: f32[8,16,32], index: 0, kind: input, shape index: {}]   ;;  %s4573_s1 = inlined_call_operand.vmem [shape: f32[1,32], index: 1, kind: input, shape index: {}]   ;;  %s4574_s2 = inlined_call_operand.vmem [shape: f32[1,32], index: 2, kind: input, shape index: {}]   ;;  %s4575_s3 = inlined_call_operand.hbm [shape: bf16[32,96], index: 3, kind: input, shape index: {}]   ;;  %s4576_s4 = inlined_call_operand.hbm [shape: bf16[32,32], index: 4, kind: input, shape index: {}]   ;;  %s4577_s5 = inlined_call_operand.vmem [shape: f32[1,32], index: 5, kind: input, shape index: {}]   ;;  %s4578_s6 = inlined_call_operand.vmem [shape: bf16[8,16,32], index: 6, kind: output, shape index: {}]  }
   0x1   :  { %13 = vsyncpa [#allocation7 + $0x1], 0 }
   0x2   :  { %14 = vsyncpa [#allocation9], 0  ;;  %s3521_s21 = smov 0   ;;  %s3523_s22 = smov 0  }
   0x3   :  { %s3525_s23 = smov 0   ;;  %s3527_s24 = smov 0  }
   0x4 LB: > { %s2759_s25 = sadd.s32 4294967295, %s3463_s24   ;;  %p40_p0 = scmp.ne.s32.totalorder %s3455_s22, %s3451_s21  ;;  %s3463_s24 = sphi %s3527_s24, %s4595_s24   ;;  %s3459_s23 = sphi %s3525_s23, %s4594_s23   ;;  %s3455_s22 = sphi %s3523_s22, %s4593_s22   ;;  %s3451_s21 = sphi %s3521_s21, %s4592_s21  }
   0x5   : > { %p3543_p1 = scmp.eq.s32.totalorder %s2759_s25, 0  ;;  %p2761_p2 = scmp.ge.s32.totalorder %s3463_s24, 1 }
   0x6   : > { %p182_p3 = scmp.lt.s32.totalorder %s3463_s24, 3  ;;  %s199_s30 = sshll.u32 %s4575_s3, 4  ;;  %s200_s30 = int_to_ptr.hbm [resolvable:$true] %s199_s30 }
   0x7   : > { %p3551_p4 = por %p3543_p1, %p40_p0  ;;  %s3465_s8 = smov [#allocation8]  }
   0x8   : > { %p3558_p5 = pnand %p2761_p2, %p182_p3  ;;  %s201_s9 = sshll.u32 %s3465_s8, 4  ;;  %s202_s9 = int_to_ptr.vmem [resolvable:$true] %s201_s9 }
   0x9   : > { %s213_s12 = sshll.u32 %s4576_s4, 4  ;;  %s3466_s13 = smov 64   ;;  %s214_s12 = int_to_ptr.hbm [resolvable:$true] %s213_s12 }
   0xa   : > { %p3117_p6 = pneg %p3558_p5  ;;  %s3467_s14 = smov 4  }
   0xb   : > { %s3468_s15 = smov [#allocation10]   ;;  %s3570_s17 = sadd.s32 1, %s3463_s24  }
   0xc   : > { %p3118_p7 = pnand %p3117_p6, %p3543_p1  ;;  %s215_s16 = sshll.u32 %s3468_s15, 4  ;;  %s216_s16 = int_to_ptr.vmem [resolvable:$true] %s215_s16 }
   0xd   : > { %s27_s18 = sadd.s32 1, %s3459_s23  ;;  %s24_s19 = ssub.s32 %s3463_s24, %s3570_s17 }
   0xe   : > { %3120 = dma.hbm_to_vmem [thread:$0]  (!%p3118_p7), %s200_s30, 256, %s202_s9, [#allocation9], %s3466_s13, %s3466_s13, %s3467_s14  }
   0xf   : > { %3123 = dma.hbm_to_vmem [thread:$0]  (!%p3118_p7), %s214_s12, 256, %s216_s16, [#allocation9], %s3466_s13, %s3466_s13, %s3467_s14  }
  0x10   : > { %p34_p8 = scmp.ne.s32.totalorder %s3459_s23, %s3455_s22  ;;  %p25_p9 = scmp.eq.s32.totalorder %s24_s19, 0 }
  0x11   : > { %p35_p10 = scmp.eq.s32.totalorder %s3463_s24, 0  ;;  %p3130_p11 = scmp.lt.s32.totalorder %s3463_s24, 2 }
  0x12   : > { %s232_s20 = sand.u32 1, %s3459_s23   ;;  %s3043_s29 = sshll.u32 %s3463_s24, 6 }
  0x13   : > { %s3581_s21 = scalar_select %p25_p9, %s3459_s23, %s27_s18  }
  0x14   : > { %p36_p12 = por %p35_p10, %p34_p8  ;;  %s2765_s28 = sshll.u32 %s232_s20, 6 }
  0x15   : > { %s242_s9 = scalar_lea.hbm %s4572_s0, %s3043_s29  ;;  %s236_s11 = scalar_lea.vmem [#allocation6], %s2765_s28 }
  0x16   : > { %s243_s10 = sshll.u32 %s242_s9, 4  ;;  %s245_s12 = sshll.u32 %s236_s11, 4  ;;  %s244_s10 = int_to_ptr.hbm [resolvable:$true] %s243_s10  ;;  %s246_s12 = int_to_ptr.vmem [resolvable:$true] %s245_s12 }
  0x17   : > { %p3587_p13 = pnand %p3130_p11, %p36_p12  ;;  %s233_s14 = scalar_lea.sflag [#allocation7], %s232_s20 }
  0x18   : > { %s3395_s15 = sshra.s32 %s244_s10, 4  ;;  %s3402_s28 = scalar_lea.hbm %s4572_s0, 128  ;;  %s3396_s15 = int_to_ptr.hbm [resolvable:$true] %s3395_s15 }
  0x19   : > { %s3397_s16 = scalar_lea.hbm %s3396_s15, 64  ;;  %p3399_p2 = pneg %p3587_p13 }
  0x1a   : > { %p3398_p0 = scmp.ne.s32.totalorder %s3396_s15, %s3397_s16  ;;  %p3403_p7 = scmp.lt.s32.totalorder %s3396_s15, %s4572_s0 }
  0x1b   : > { %p3404_p8 = scmp.lt.s32.totalorder %s3402_s28, %s3397_s16 }
  0x1c   : > { %p3400_p3 = pnand %p3399_p2, %p3398_p0 }
  0x1d   : > { %p3405_p9 = por %p3404_p8, %p3403_p7 }
  0x1e   : > { %p3401_p6 = pneg %p3400_p3 }
  0x20   : > { %p3406_p10 = pnand %p3405_p9, %p3401_p6 }
  0x22   : > { %3409 = shalt.err (!%p3406_p10)
}
  0x23   : > { %s3469_s20 = smov 128   ;;  %s3470_s8 = smov 8  }
  0x24   : > { %3127 = dma.hbm_to_vmem [thread:$0]  (!%p3587_p13), %s244_s10, 1024, %s246_s12, %s233_s14, %s3469_s20, %s3469_s20, %s3470_s8  }
  0x25   : > { %257 = sbr.rel (%p3558_p5) target bundleno = 1644 (0x66c), region = 44  ;;  %s259_s9 = sand.u32 (!%p3558_p5), 1, %s3455_s22  }
  0x26   : > { %s2770_s11 = sshll.u32 (!%p3558_p5), %s259_s9, 6  ;;  %s260_s18 = scalar_lea.sflag (!%p3558_p5), [#allocation7], %s259_s9 }
  0x27   : > { %s3604_s19 = scalar_lea.vmem (!%p3558_p5), [#allocation6], %s2770_s11 }
  0x2a   : > { %3442 = dma.done.wait (%p3551_p4), %s260_s18, 1024  }
  0x2b   : > { %3444 = vsyncadd (%p3551_p4), %s260_s18, 4294966272 }
  0x2c   : > { %3446 = dma.done.wait (%p3543_p1), [#allocation9], 512  }
  0x2d   : > { %3448 = vsyncadd (%p3543_p1), [#allocation9], 4294966784  ;;  %vm321_vm0 = vcmask 261120   ;;  %v317_v0 = vld [vmem:[%s3604_s19 + $0x20] sm:$0xff]  ;;  %v315_v1 = vld [vmem:[%s3604_s19 + $0x10] sm:$0xff]  ;;  %v3471_v16 = vmov 32.0  }
  0x2e   : > { %v313_v2 = vld [vmem:[%s3604_s19] sm:$0xff]  ;;  %v334_v3 = vsel %vm321_vm0, %v317_v0, 0.0  ;;  %v328_v4 = vsel %vm321_vm0, %v315_v1, 0.0  ;;  %v318_v6 = vld [vmem:[%s3604_s19 + $0x28] sm:$0xff]  ;;  %v316_v7 = vld [vmem:[%s3604_s19 + $0x18] sm:$0xff]  ;;  %3189 = vrcp.f32 %v3471_v16  ;;  %s3472_s12 = smov 88  }
  0x2f   : > { %v322_v5 = vsel %vm321_vm0, %v313_v2, 0.0  ;;  %335 = vadd.xlane.f32.xlu0 %v334_v3  ;;  %329 = vadd.xlane.f32.xlu1 %v328_v4  ;;  %v314_v8 = vld [vmem:[%s3604_s19 + $0x8] sm:$0xff]  ;;  %v337_v9 = vsel %vm321_vm0, %v318_v6, 0.0  ;;  %v331_v10 = vsel %vm321_vm0, %v316_v7, 0.0  ;;  %v319_v12 = vld [vmem:[%s3604_s19 + $0x30] sm:$0xff]  ;;  %v320_v13 = vld [vmem:[%s3604_s19 + $0x38] sm:$0xff] }
  0x30   : > { %323 = vadd.xlane.f32.xlu2 %v322_v5  ;;  %v325_v11 = vsel %vm321_vm0, %v314_v8, 0.0  ;;  %v340_v14 = vsel %vm321_vm0, %v319_v12, 0.0  ;;  %v343_v15 = vsel %vm321_vm0, %v320_v13, 0.0  ;;  %s3473_s13 = smov 96   ;;  %s3474_s14 = smov 120  }
  0x31   : > { %s3475_s15 = smov 112   ;;  %s3476_s16 = smov 80  }
  0x32   : > { %s3477_s28 = smov 72   ;;  %s3478_s29 = smov 104  }
  0x33   : > { %s3479_s30 = smov 64   ;;  %s3480_s20 = smov 56  }
  0x34   : > { %v3190_v17 = vpop.eup %3189  ;;  %s3481_s8 = smov 48   ;;  %s3482_s9 = smov 40  }
  0x35   : > { %v347_v18 = vmul.f32 32.0, %v3190_v17  ;;  %vm351_vm1 = vweird.f32 %v3190_v17  ;;  %s3483_s11 = smov 8   ;;  %s3484_s18 = smov 16  }
  0x36   : > { %s3485_s26 = smov 24   ;;  %s2773_s27 = sshll.u32 %s2759_s25, 2 }
  0x37   : > { %338 = vadd.xlane.f32.xlu0 %v337_v9  ;;  %332 = vadd.xlane.f32.xlu1 %v331_v10  ;;  %v348_v19 = vsub.f32 1.0, %v347_v18  ;;  %p306_p1 = scmp.lt.s32.totalorder %s2773_s27, 7 }
  0x38   : > { %326 = vadd.xlane.f32.xlu2 %v325_v11 }
  0x39   : > { %v349_v20 = vmul.f32 %v3190_v17, %v348_v19  ;;  %s4597_s27 = smov (!%p306_p1, %s2773_s27), 7 }
  0x3b   : > { %v350_v21 = vadd.f32 %v3190_v17, %v349_v20 }
  0x3d   : > { %v3630_v22 = vsel %vm351_vm1, %v3190_v17, %v350_v21 }
  0x3f   : > { %341 = vadd.xlane.f32.xlu0 %v340_v14  ;;  %344 = vadd.xlane.f32.xlu1 %v343_v15 }
  0xa2   : > { %v336_v23 = vpop.xlane.xlu0 %335  ;;  %v330_v24 = vpop.xlane.xlu1 %329 }
  0xa3   : > { %v357_v25 = vmul.f32 %v3630_v22, %v336_v23  ;;  %v355_v26 = vmul.f32 %v3630_v22, %v330_v24  ;;  %v324_v27 = vpop.xlane.xlu2 %323 }
  0xa4   : > { %v353_v40 = vmul.f32 %v3630_v22, %v324_v27 }
  0xa5   : > { %v3634_v28 = vsub.f32 %v317_v0, %v357_v25  ;;  %v3636_v29 = vsub.f32 %v315_v1, %v355_v26  ;;  %v3046_v1 = vld [vmem:[#allocation8 + $0x8] sm:$0xff] }
  0xa6   : > { %v3660_v47 = vsub.f32 %v313_v2, %v353_v40  ;;  %3101 = vmatpush.bf16.msra.mxu1 %v3046_v1  ;;  %3102 = vmatpush.bf16.msra.mxu2 %v3046_v1 }
  0xa7   : > { %v371_v30 = vmul.f32 %v3636_v29, %v3636_v29  ;;  %v373_v31 = vmul.f32 %v3634_v28, %v3634_v28  ;;  %567 = vmatpush.bf16.msra.mxu0 %v3046_v1  ;;  %3103 = vmatpush.bf16.msra.mxu3 %v3046_v1  ;;  %v3732_v1 = vld [vmem:[%s4573_s1] ss:$0 sm:$0xff] }
  0xa8   : > { %v369_v56 = vmul.f32 %v3660_v47, %v3660_v47 }
  0xa9   : > { %v383_v32 = vsel %vm321_vm0, %v371_v30, 0.0  ;;  %v389_v33 = vsel %vm321_vm0, %v373_v31, 0.0 }
  0xaa   : > { %v339_v34 = vpop.xlane.xlu0 %338  ;;  %384 = vadd.xlane.f32.xlu1 %v383_v32  ;;  %v333_v35 = vpop.xlane.xlu1 %332  ;;  %390 = vadd.xlane.f32.xlu2 %v389_v33  ;;  %v377_v60 = vsel %vm321_vm0, %v369_v56, 0.0 }
  0xab   : > { %v358_v36 = vmul.f32 %v3630_v22, %v339_v34  ;;  %v356_v37 = vmul.f32 %v3630_v22, %v333_v35  ;;  %v327_v38 = vpop.xlane.xlu2 %326 }
  0xac   : > { %v354_v39 = vmul.f32 %v3630_v22, %v327_v38 }
  0xad   : > { %v3648_v41 = vsub.f32 %v318_v6, %v358_v36  ;;  %v3650_v42 = vsub.f32 %v316_v7, %v356_v37  ;;  %v3045_v6 = vld [vmem:[#allocation8] sm:$0xff] }
  0xae   : > { %v3652_v43 = vsub.f32 %v314_v8, %v354_v39  ;;  %3104 = vmatpush.bf16.msra.mxu1 %v3045_v6  ;;  %3105 = vmatpush.bf16.msra.mxu2 %v3045_v6 }
  0xaf   : > { %v374_v44 = vmul.f32 %v3648_v41, %v3648_v41  ;;  %v372_v45 = vmul.f32 %v3650_v42, %v3650_v42  ;;  %568 = vmatpush.bf16.msra.mxu0 %v3045_v6  ;;  %3106 = vmatpush.bf16.msra.mxu3 %v3045_v6 }
  0xb0   : > { %v370_v46 = vmul.f32 %v3652_v43, %v3652_v43 }
  0xb1   : > { %v392_v48 = vsel %vm321_vm0, %v374_v44, 0.0  ;;  %v386_v49 = vsel %vm321_vm0, %v372_v45, 0.0 }
  0xb2   : > { %393 = vadd.xlane.f32.xlu0 %v392_v48  ;;  %v342_v50 = vpop.xlane.xlu0 %341  ;;  %387 = vadd.xlane.f32.xlu2 %v386_v49  ;;  %v380_v51 = vsel %vm321_vm0, %v370_v46, 0.0  ;;  %v345_v52 = vpop.xlane.xlu1 %344 }
  0xb3   : > { %v359_v53 = vmul.f32 %v3630_v22, %v342_v50  ;;  %381 = vadd.xlane.f32.xlu1 %v380_v51  ;;  %v360_v54 = vmul.f32 %v3630_v22, %v345_v52 }
  0xb5   : > { %v3667_v55 = vsub.f32 %v319_v12, %v359_v53  ;;  %v3671_v57 = vsub.f32 %v320_v13, %v360_v54 }
  0xb7   : > { %v375_v58 = vmul.f32 %v3667_v55, %v3667_v55  ;;  %v376_v61 = vmul.f32 %v3671_v57, %v3671_v57 }
  0xb9   : > { %v395_v59 = vsel %vm321_vm0, %v375_v58, 0.0  ;;  %v398_v62 = vsel %vm321_vm0, %v376_v61, 0.0 }
  0xba   : > { %396 = vadd.xlane.f32.xlu2 %v395_v59  ;;  %378 = vadd.xlane.f32.xlu0 %v377_v60 }
  0xc2   : > { %399 = vadd.xlane.f32.xlu0 %v398_v62 }
 0x11d   : > { %v385_v63 = vpop.xlane.xlu1 %384  ;;  %v391_v0 = vpop.xlane.xlu2 %390 }
 0x11e   : > { %v403_v2 = vmul.f32 %v385_v63, %v3630_v22  ;;  %v405_v3 = vmul.f32 %v391_v0, %v3630_v22 }
 0x120   : > { %v411_v4 = vadd.f32 1e-05, %v403_v2  ;;  %v413_v5 = vadd.f32 1e-05, %v405_v3 }
 0x122   : > { %3191 = vrsqrt.f32 %v411_v4  ;;  %vm463_vm3 = vweird.f32 %v413_v5  ;;  %vm443_vm6 = vweird.f32 %v411_v4 }
 0x123   : > { %3193 = vrsqrt.f32 %v413_v5 }
 0x125   : > { %v394_v7 = vpop.xlane.xlu0 %393  ;;  %v388_v8 = vpop.xlane.xlu2 %387 }
 0x126   : > { %v406_v9 = vmul.f32 %v394_v7, %v3630_v22  ;;  %v382_v10 = vpop.xlane.xlu1 %381  ;;  %v404_v11 = vmul.f32 %v388_v8, %v3630_v22 }
 0x127   : > { %v402_v12 = vmul.f32 %v382_v10, %v3630_v22 }
 0x128   : > { %v3685_v13 = vpop.eup %3191  ;;  %v414_v14 = vadd.f32 1e-05, %v406_v9  ;;  %v3687_v15 = vadd.f32 1e-05, %v404_v11 }
 0x129   : > { %v3194_v16 = vpop.eup %3193  ;;  %v438_v17 = vmul.f32 %v3685_v13, %v411_v4  ;;  %v3690_v18 = vadd.f32 1e-05, %v402_v12  ;;  %vm444_vm4 = vweird.f32 %v3685_v13 }
 0x12a   : > { %v458_v19 = vmul.f32 %v3194_v16, %v413_v5  ;;  %3195 = vrsqrt.f32 %v414_v14  ;;  %vm464_vm2 = vweird.f32 %v3194_v16  ;;  %vm3717_vm7 = vmor %vm443_vm6, %vm444_vm4  ;;  %vm473_vm8 = vweird.f32 %v414_v14 }
 0x12b   : > { %v439_v20 = vmul.f32 %v3685_v13, %v438_v17  ;;  %3197 = vrsqrt.f32 %v3690_v18  ;;  %vm3709_vm5 = vmor %vm463_vm3, %vm464_vm2  ;;  %vm433_vm9 = vweird.f32 %v3690_v18  ;;  %vm453_vm14 = vweird.f32 %v3687_v15 }
 0x12c   : > { %v459_v21 = vmul.f32 %v3194_v16, %v458_v19  ;;  %3199 = vrsqrt.f32 %v3687_v15 }
 0x12d   : > { %v440_v23 = vmul.f32 0.5, %v439_v20  ;;  %v379_v24 = vpop.xlane.xlu0 %378  ;;  %v397_v25 = vpop.xlane.xlu2 %396 }
 0x12e   : > { %v460_v26 = vmul.f32 0.5, %v459_v21  ;;  %v401_v27 = vmul.f32 %v379_v24, %v3630_v22  ;;  %v407_v30 = vmul.f32 %v397_v25, %v3630_v22 }
 0x12f   : > { %v441_v31 = vsub.f32 1.5, %v440_v23 }
 0x130   : > { %v3196_v32 = vpop.eup %3195  ;;  %v461_v33 = vsub.f32 1.5, %v460_v26  ;;  %v3697_v34 = vadd.f32 1e-05, %v401_v27  ;;  %v3699_v35 = vadd.f32 1e-05, %v407_v30 }
 0x131   : > { %v3701_v36 = vpop.eup %3197  ;;  %v468_v37 = vmul.f32 %v3196_v32, %v414_v14  ;;  %v442_v44 = vmul.f32 %v3685_v13, %v441_v31  ;;  %vm474_vm10 = vweird.f32 %v3196_v32 }
 0x132   : > { %v3200_v38 = vpop.eup %3199  ;;  %v462_v39 = vmul.f32 %v3194_v16, %v461_v33  ;;  %v428_v40 = vmul.f32 %v3701_v36, %v3690_v18  ;;  %3201 = vrsqrt.f32 %v3697_v34  ;;  %vm434_vm11 = vweird.f32 %v3701_v36  ;;  %vm475_vm13 = vmor %vm473_vm8, %vm474_vm10 }
 0x133   : > { %v469_v45 = vmul.f32 %v3196_v32, %v468_v37  ;;  %v448_v46 = vmul.f32 %v3200_v38, %v3687_v15  ;;  %3203 = vrsqrt.f32 %v3699_v35  ;;  %v446_v59 = vsel %vm3717_vm7, %v3685_v13, %v442_v44  ;;  %vm3745_vm15 = vmor %vm433_vm9, %vm434_vm11 }
 0x134   : > { %v429_v49 = vmul.f32 %v3701_v36, %v428_v40  ;;  %v466_v50 = vsel %vm3709_vm5, %v3194_v16, %v462_v39  ;;  %vm454_vm12 = vweird.f32 %v3200_v38  ;;  %v499_v7 = vmul.f32 %v446_v59, %v3636_v29  ;;  %v3187_v29 = vld [vmem:[%s4574_s2] ss:$0 sm:$0xff] }
 0x135   : > { %v470_v51 = vmul.f32 0.5, %v469_v45  ;;  %v449_v52 = vmul.f32 %v3200_v38, %v448_v46  ;;  %v400_v53 = vpop.xlane.xlu0 %399  ;;  %vm455_vm1 = vmor %vm453_vm14, %vm454_vm12  ;;  %vm423_vm2 = vweird.f32 %v3697_v34  ;;  %vm483_vm4 = vweird.f32 %v3699_v35 }
 0x136   : > { %v430_v56 = vmul.f32 0.5, %v429_v49  ;;  %v408_v58 = vmul.f32 %v400_v53, %v3630_v22  ;;  %v501_v22 = vmul.f32 %v466_v50, %v3634_v28  ;;  %v511_v19 = vmul.f32 %v3732_v1, %v499_v7 }
 0x137   : > { %v471_v60 = vsub.f32 1.5, %v470_v51  ;;  %v450_v61 = vmul.f32 0.5, %v449_v52  ;;  %vm598_vm11 = vcmask 60416   ;;  %vm1082_vm12 = vcmask 64512  }
 0x138   : > { %v3202_v62 = vpop.eup %3201  ;;  %v431_v63 = vsub.f32 1.5, %v430_v56  ;;  %v3727_v0 = vadd.f32 1e-05, %v408_v58  ;;  %v513_v13 = vmul.f32 %v3732_v1, %v501_v22  ;;  %v523_v33 = vadd.f32 %v3187_v29, %v511_v19 }
 0x139   : > { %v472_v2 = vmul.f32 %v3196_v32, %v471_v60  ;;  %v451_v3 = vsub.f32 1.5, %v450_v61  ;;  %v418_v4 = vmul.f32 %v3202_v62, %v3697_v34  ;;  %v3204_v5 = vpop.eup %3203  ;;  %vm424_vm3 = vweird.f32 %v3202_v62 }
 0x13a   : > { %v432_v6 = vmul.f32 %v3701_v36, %v431_v63  ;;  %3205 = vrsqrt.f32 %v3727_v0  ;;  %v478_v11 = vmul.f32 %v3204_v5, %v3699_v35  ;;  %vm484_vm5 = vweird.f32 %v3204_v5  ;;  %vm425_vm6 = vmor %vm423_vm2, %vm424_vm3 }
 0x13b   : > { %v476_v8 = vsel %vm475_vm13, %v3196_v32, %v472_v2  ;;  %v452_v9 = vmul.f32 %v3200_v38, %v451_v3  ;;  %v419_v10 = vmul.f32 %v3202_v62, %v418_v4  ;;  %v525_v25 = vadd.f32 %v3187_v29, %v513_v13  ;;  %vm3768_vm7 = vmor %vm483_vm4, %vm484_vm5 }
 0x13c   : > { %v502_v12 = vmul.f32 %v476_v8, %v3648_v41  ;;  %v436_v14 = vsel %vm3745_vm15, %v3701_v36, %v432_v6  ;;  %v479_v17 = vmul.f32 %v3204_v5, %v478_v11  ;;  %vm493_vm8 = vweird.f32 %v3727_v0 }
 0x13d   : > { %v456_v15 = vsel %vm455_vm1, %v3200_v38, %v452_v9  ;;  %v420_v16 = vmul.f32 0.5, %v419_v10  ;;  %v498_v27 = vmul.f32 %v436_v14, %v3652_v43  ;;  %vm1553_vm13 = vcmask 130048  }
 0x13e   : > { %v500_v18 = vmul.f32 %v456_v15, %v3650_v42  ;;  %v514_v20 = vmul.f32 %v3732_v1, %v502_v12  ;;  %v480_v23 = vmul.f32 0.5, %v479_v17  ;;  %vm2458_vm14 = vcmask 126016  }
 0x13f   : > { %v421_v21 = vsub.f32 1.5, %v420_v16  ;;  %v510_v34 = vmul.f32 %v3732_v1, %v498_v27  ;;  %vm2499_vm15 = vcmask 191616   ;;  %vm2540_vm1 = vcmask 257216  }
 0x140   : > { %v3206_v41 = vpop.eup %3205  ;;  %v512_v24 = vmul.f32 %v3732_v1, %v500_v18  ;;  %v526_v26 = vadd.f32 %v3187_v29, %v514_v20  ;;  %v481_v42 = vsub.f32 1.5, %v480_v23 }
 0x141   : > { %v422_v30 = vmul.f32 %v3202_v62, %v421_v21  ;;  %v488_v31 = vmul.f32 %v3206_v41, %v3727_v0  ;;  %vm494_vm9 = vweird.f32 %v3206_v41  ;;  %v522_v50 = vadd.f32 %v3187_v29, %v510_v34 }
 0x142   : > { %v524_v35 = vadd.f32 %v3187_v29, %v512_v24  ;;  %v531_v36 = vpack.c.bf16 %v526_v26, %v525_v25  ;;  %v482_v38 = vmul.f32 %v3204_v5, %v481_v42  ;;  %vm495_vm10 = vmor %vm493_vm8, %vm494_vm9 }
 0x143   : > { %v426_v37 = vsel %vm425_vm6, %v3202_v62, %v422_v30  ;;  %v489_v39 = vmul.f32 %v3206_v41, %v488_v31 }
 0x144   : > { %v530_v40 = vpack.c.bf16 %v524_v35, %v523_v33  ;;  %2786 = vmatmul.msk.bf16.vlgmr.msra.gmra.mxu2 %vm321_vm0, %v531_v36  ;;  %v497_v43 = vmul.f32 %v426_v37, %v3660_v47  ;;  %v486_v44 = vsel %vm3768_vm7, %v3204_v5, %v482_v38 }
 0x145   : > { %v490_v45 = vmul.f32 0.5, %v489_v39  ;;  %v503_v51 = vmul.f32 %v486_v44, %v3667_v55 }
 0x146   : > { %2785 = vmatmul.msk.bf16.vlgmr.msra.gmra.mxu1 %vm321_vm0, %v530_v40  ;;  %v509_v46 = vmul.f32 %v3732_v1, %v497_v43 }
 0x147   : > { %v491_v48 = vsub.f32 1.5, %v490_v45  ;;  %v515_v56 = vmul.f32 %v3732_v1, %v503_v51 }
 0x148   : > { %v521_v49 = vadd.f32 %v3187_v29, %v509_v46 }
 0x149   : > { %v492_v52 = vmul.f32 %v3206_v41, %v491_v48  ;;  %v527_v59 = vadd.f32 %v3187_v29, %v515_v56 }
 0x14a   : > { %v529_v47 = vpack.c.bf16 %v522_v50, %v521_v49 }
 0x14b   : > { %v496_v53 = vsel %vm495_vm10, %v3206_v41, %v492_v52 }
 0x14c   : > { %2784 = vmatmul.msk.bf16.vlgmr.msra.gmra.mxu0 %vm321_vm0, %v529_v47  ;;  %v504_v54 = vmul.f32 %v496_v53, %v3671_v57 }
 0x14e   : > { %v516_v58 = vmul.f32 %v3732_v1, %v504_v54 }
 0x150   : > { %v528_v60 = vadd.f32 %v3187_v29, %v516_v58 }
 0x152   : > { %v532_v61 = vpack.c.bf16 %v528_v60, %v527_v59 }
 0x154   : > { %2787 = vmatmul.msk.bf16.vlgmr.msra.gmra.mxu3 %vm321_vm0, %v532_v61 }
 0x1c3   : > { %v575_v62 = vpop.f32.mrf.mxu1 }
 0x1c4   : > { %v3786_v55 = vpack.c.bf16 %v575_v62, %v575_v62 }
 0x1c6   : > { %716 = vrot.lane.b32.xlu0 %v3786_v55, %s3472_s12  ;;  %619 = vrot.lane.b32.xlu1 %v3786_v55, %s3473_s13  ;;  %601 = vst.msk [vmem:[#allocation2 + $0x8] sm:$0xf] %vm598_vm11, %v3786_v55 }
 0x1c7   : > { %v580_v57 = vpop.f32.mrf.mxu2 }
 0x1c8   : > { %v3794_v63 = vpack.c.bf16 %v580_v57, %v580_v57 }
 0x1c9   : > { %v570_v0 = vpop.f32.mrf.mxu0 }
 0x1ca   : > { %v3796_v1 = vpack.c.bf16 %v570_v0, %v570_v0  ;;  %603 = vst.msk [vmem:[#allocation2 + $0x10] sm:$0xf] %vm598_vm11, %v3794_v63 }
 0x1cb   : > { %v577_v22 = vpop.f32.mrf.mxu1 }
 0x1cc   : > { %v3800_v2 = vpack.c.bf16 %v577_v22, %v577_v22  ;;  %712 = vrot.lane.b32.xlu2 %v3796_v1, %s3472_s12  ;;  %599 = vst.msk [vmem:[#allocation2] sm:$0xf] %vm598_vm11, %v3796_v1 }
 0x1ce   : > { %683 = vrot.lane.b32.xlu0 %v3786_v55, %s3474_s14  ;;  %615 = vrot.lane.b32.xlu1 %v3796_v1, %s3473_s13  ;;  %602 = vst.msk [vmem:[#allocation2 + $0xc] sm:$0xf] %vm598_vm11, %v3800_v2 }
 0x1cf   : > { %v582_v3 = vpop.f32.mrf.mxu2 }
 0x1d0   : > { %v3812_v4 = vpack.c.bf16 %v582_v3, %v582_v3 }
 0x1d1   : > { %v572_v5 = vpop.f32.mrf.mxu0 }
 0x1d2   : > { %v3814_v6 = vpack.c.bf16 %v572_v5, %v572_v5  ;;  %604 = vst.msk [vmem:[#allocation2 + $0x14] sm:$0xf] %vm598_vm11, %v3812_v4 }
 0x1d4   : > { %679 = vrot.lane.b32.xlu2 %v3796_v1, %s3474_s14  ;;  %600 = vst.msk [vmem:[#allocation2 + $0x4] sm:$0xf] %vm598_vm11, %v3814_v6 }
 0x1d5   : > { %v3048_v40 = vld [vmem:[#allocation2 + $0x8] sm:$0xff] }
 0x1d6   : > { %778 = vrot.lane.b32.xlu0 %v3796_v1, %s3475_s15  ;;  %811 = vrot.lane.b32.xlu1 %v3796_v1, %s3476_s16 }
 0x1d7   : > { %v585_v7 = vpop.f32.mrf.mxu3 }
 0x1d8   : > { %v3826_v8 = vpack.c.bf16 %v585_v7, %v585_v7 }
 0x1d9   : > { %v3049_v22 = vld [vmem:[#allocation2 + $0x10] sm:$0xff] }
 0x1da   : > { %605 = vst.msk [vmem:[#allocation2 + $0x18] sm:$0xf] %vm598_vm11, %v3826_v8 }
 0x1db   : > { %v3047_v59 = vld [vmem:[#allocation2] sm:$0xff] }
 0x1dc   : > { %910 = vrot.lane.b32.xlu2 %v3796_v1, %s3477_s28 }
 0x1de   : > { %623 = vrot.lane.b32.xlu0 %v3794_v63, %s3473_s13  ;;  %815 = vrot.lane.b32.xlu1 %v3786_v55, %s3476_s16 }
 0x1df   : > { %v587_v28 = vpop.f32.mrf.mxu3 }
 0x1e0   : > { %v3836_v9 = vpack.c.bf16 %v587_v28, %v587_v28 }
 0x1e2   : > { %606 = vst.msk [vmem:[#allocation2 + $0x1c] sm:$0xf] %vm598_vm11, %v3836_v9 }
 0x1e4   : > { %877 = vrot.lane.b32.xlu2 %v3796_v1, %s3478_s29 }
 0x1e6   : > { %782 = vrot.lane.b32.xlu1 %v3786_v55, %s3475_s15  ;;  %691 = vrot.lane.b32.xlu0 %v3826_v8, %s3474_s14 }
 0x1ec   : > { %720 = vrot.lane.b32.xlu2 %v3794_v63, %s3472_s12 }
 0x1ee   : > { %914 = vrot.lane.b32.xlu1 %v3786_v55, %s3477_s28  ;;  %819 = vrot.lane.b32.xlu0 %v3794_v63, %s3476_s16 }
 0x1f4   : > { %687 = vrot.lane.b32.xlu2 %v3794_v63, %s3474_s14 }
 0x1f6   : > { %881 = vrot.lane.b32.xlu1 %v3786_v55, %s3478_s29  ;;  %786 = vrot.lane.b32.xlu0 %v3794_v63, %s3475_s15 }
 0x1fc   : > { %823 = vrot.lane.b32.xlu2 %v3826_v8, %s3476_s16 }
 0x1fe   : > { %918 = vrot.lane.b32.xlu0 %v3794_v63, %s3477_s28  ;;  %627 = vrot.lane.b32.xlu1 %v3826_v8, %s3473_s13 }
 0x204   : > { %790 = vrot.lane.b32.xlu2 %v3826_v8, %s3475_s15 }
 0x206   : > { %885 = vrot.lane.b32.xlu0 %v3794_v63, %s3478_s29  ;;  %724 = vrot.lane.b32.xlu1 %v3826_v8, %s3472_s12 }
 0x20c   : > { %621 = vrot.lane.b32.xlu2 %v3800_v2, %s3473_s13 }
 0x20e   : > { %617 = vrot.lane.b32.xlu0 %v3814_v6, %s3473_s13  ;;  %922 = vrot.lane.b32.xlu1 %v3826_v8, %s3477_s28 }
 0x214   : > { %718 = vrot.lane.b32.xlu2 %v3800_v2, %s3472_s12 }
 0x216   : > { %813 = vrot.lane.b32.xlu0 %v3814_v6, %s3476_s16  ;;  %714 = vrot.lane.b32.xlu1 %v3814_v6, %s3472_s12 }
 0x21c   : > { %685 = vrot.lane.b32.xlu2 %v3800_v2, %s3474_s14 }
 0x21e   : > { %817 = vrot.lane.b32.xlu0 %v3800_v2, %s3476_s16  ;;  %681 = vrot.lane.b32.xlu1 %v3814_v6, %s3474_s14 }
 0x224   : > { %780 = vrot.lane.b32.xlu2 %v3814_v6, %s3475_s15 }
 0x226   : > { %784 = vrot.lane.b32.xlu0 %v3800_v2, %s3475_s15  ;;  %912 = vrot.lane.b32.xlu1 %v3814_v6, %s3477_s28  ;;  %v713_v10 = vpop.permute.xlu2 %712 }
 0x227   : > { %737 = vst.msk [vmem:[#allocation3 + $0x20] sm:$0xf] %vm598_vm11, %v713_v10 }
 0x22c   : > { %625 = vrot.lane.b32.xlu2 %v3812_v4, %s3473_s13 }
 0x22e   : > { %916 = vrot.lane.b32.xlu0 %v3800_v2, %s3477_s28  ;;  %879 = vrot.lane.b32.xlu1 %v3814_v6, %s3478_s29  ;;  %v680_v11 = vpop.permute.xlu2 %679 }
 0x22f   : > { %704 = vst.msk [vmem:[#allocation2 + $0x20] sm:$0xf] %vm598_vm11, %v680_v11 }
 0x234   : > { %889 = vrot.lane.b32.xlu2 %v3826_v8, %s3478_s29 }
 0x236   : > { %883 = vrot.lane.b32.xlu0 %v3800_v2, %s3478_s29  ;;  %649 = vrot.lane.b32.xlu1 %v3814_v6, %s3479_s30  ;;  %v911_v29 = vpop.permute.xlu2 %910 }
 0x237   : > { %935 = vst.msk [vmem:[#allocation3 + $0x60] sm:$0xf] %vm598_vm11, %v911_v29 }
 0x238   : > { %v717_v12 = vpop.permute.xlu0 %716  ;;  %v620_v13 = vpop.permute.xlu1 %619 }
 0x239   : > { %739 = vst.msk [vmem:[#allocation3 + $0x28] sm:$0xf] %vm598_vm11, %v717_v12 }
 0x23a   : > { %641 = vst.msk [vmem:[#allocation3 + $0x8] sm:$0xf] %vm598_vm11, %v620_v13 }
 0x23c   : > { %647 = vrot.lane.b32.xlu2 %v3796_v1, %s3479_s30 }
 0x23e   : > { %653 = vrot.lane.b32.xlu0 %v3800_v2, %s3479_s30  ;;  %722 = vrot.lane.b32.xlu1 %v3812_v4, %s3472_s12  ;;  %v878_v14 = vpop.permute.xlu2 %877 }
 0x23f   : > { %902 = vst.msk [vmem:[#allocation2 + $0x60] sm:$0xf] %vm598_vm11, %v878_v14 }
 0x240   : > { %v684_v15 = vpop.permute.xlu0 %683  ;;  %v616_v16 = vpop.permute.xlu1 %615 }
 0x241   : > { %706 = vst.msk [vmem:[#allocation2 + $0x28] sm:$0xf] %vm598_vm11, %v684_v15 }
 0x242   : > { %639 = vst.msk [vmem:[#allocation3] sm:$0xf] %vm598_vm11, %v616_v16 }
 0x244   : > { %651 = vrot.lane.b32.xlu2 %v3786_v55, %s3479_s30 }
 0x246   : > { %689 = vrot.lane.b32.xlu1 %v3812_v4, %s3474_s14  ;;  %629 = vrot.lane.b32.xlu0 %v3836_v9, %s3473_s13  ;;  %v721_v17 = vpop.permute.xlu2 %720 }
 0x247   : > { %741 = vst.msk [vmem:[#allocation3 + $0x30] sm:$0xf] %vm598_vm11, %v721_v17 }
 0x248   : > { %v779_v18 = vpop.permute.xlu0 %778  ;;  %v812_v19 = vpop.permute.xlu1 %811 }
 0x249   : > { %803 = vst.msk [vmem:[#allocation2 + $0x40] sm:$0xf] %vm598_vm11, %v779_v18 }
 0x24a   : > { %836 = vst.msk [vmem:[#allocation3 + $0x40] sm:$0xf] %vm598_vm11, %v812_v19 }
 0x24c   : > { %751 = vrot.lane.b32.xlu2 %v3800_v2, %s3480_s20 }
 0x24e   : > { %745 = vrot.lane.b32.xlu1 %v3796_v1, %s3480_s20  ;;  %726 = vrot.lane.b32.xlu0 %v3836_v9, %s3472_s12  ;;  %v688_v20 = vpop.permute.xlu2 %687  ;;  %s3044_s12 = sshll.u32 %s4597_s27, 3 }
 0x24f   : > { %708 = vst.msk [vmem:[#allocation2 + $0x30] sm:$0xf] %vm598_vm11, %v688_v20 }
 0x250   : > { %v624_v21 = vpop.permute.xlu0 %623  ;;  %v816_v23 = vpop.permute.xlu1 %815 }
 0x251   : > { %643 = vst.msk [vmem:[#allocation3 + $0x10] sm:$0xf] %vm598_vm11, %v624_v21 }
 0x252   : > { %838 = vst.msk [vmem:[#allocation3 + $0x48] sm:$0xf] %vm598_vm11, %v816_v23 }
 0x254   : > { %693 = vrot.lane.b32.xlu2 %v3836_v9, %s3474_s14 }
 0x256   : > { %749 = vrot.lane.b32.xlu1 %v3786_v55, %s3480_s20  ;;  %747 = vrot.lane.b32.xlu0 %v3814_v6, %s3480_s20  ;;  %v824_v41 = vpop.permute.xlu2 %823 }
 0x257   : > { %842 = vst.msk [vmem:[#allocation3 + $0x58] sm:$0xf] %vm598_vm11, %v824_v41 }
 0x258   : > { %v783_v24 = vpop.permute.xlu1 %782  ;;  %v692_v25 = vpop.permute.xlu0 %691 }
 0x259   : > { %805 = vst.msk [vmem:[#allocation2 + $0x48] sm:$0xf] %vm598_vm11, %v783_v24 }
 0x25a   : > { %710 = vst.msk [vmem:[#allocation2 + $0x38] sm:$0xf] %vm598_vm11, %v692_v25 }
 0x25c   : > { %821 = vrot.lane.b32.xlu2 %v3812_v4, %s3476_s16 }
 0x25e   : > { %825 = vrot.lane.b32.xlu1 %v3836_v9, %s3476_s16  ;;  %655 = vrot.lane.b32.xlu0 %v3794_v63, %s3479_s30  ;;  %v791_v26 = vpop.permute.xlu2 %790 }
 0x25f   : > { %809 = vst.msk [vmem:[#allocation2 + $0x58] sm:$0xf] %vm598_vm11, %v791_v26 }
 0x260   : > { %v915_v27 = vpop.permute.xlu1 %914  ;;  %v820_v30 = vpop.permute.xlu0 %819 }
 0x261   : > { %937 = vst.msk [vmem:[#allocation3 + $0x68] sm:$0xf] %vm598_vm11, %v915_v27 }
 0x262   : > { %840 = vst.msk [vmem:[#allocation3 + $0x50] sm:$0xf] %vm598_vm11, %v820_v30 }
 0x264   : > { %788 = vrot.lane.b32.xlu2 %v3812_v4, %s3475_s15 }
 0x266   : > { %792 = vrot.lane.b32.xlu1 %v3836_v9, %s3475_s15  ;;  %924 = vrot.lane.b32.xlu0 %v3836_v9, %s3477_s28  ;;  %v622_v42 = vpop.permute.xlu2 %621  ;;  %s4534_s15 = scalar_lea.vmem %s4578_s6, %s3044_s12 }
 0x267   : > { %642 = vst.msk [vmem:[#allocation3 + $0xc] sm:$0xf] %vm598_vm11, %v622_v42 }
 0x268   : > { %v882_v31 = vpop.permute.xlu1 %881  ;;  %v787_v32 = vpop.permute.xlu0 %786 }
 0x269   : > { %904 = vst.msk [vmem:[#allocation2 + $0x68] sm:$0xf] %vm598_vm11, %v882_v31 }
 0x26a   : > { %807 = vst.msk [vmem:[#allocation2 + $0x50] sm:$0xf] %vm598_vm11, %v787_v32 }
 0x26c   : > { %920 = vrot.lane.b32.xlu2 %v3812_v4, %s3477_s28 }
 0x26e   : > { %844 = vrot.lane.b32.xlu1 %v3796_v1, %s3481_s8  ;;  %659 = vrot.lane.b32.xlu0 %v3826_v8, %s3479_s30  ;;  %v719_v33 = vpop.permute.xlu2 %718  ;;  %v3064_v35 = vld [vmem:[#allocation3 + $0x8] sm:$0xff] }
 0x26f   : > { %740 = vst.msk [vmem:[#allocation3 + $0x2c] sm:$0xf] %vm598_vm11, %v719_v33  ;;  %v1117_v38 = vsel %vm1082_vm12, %v3064_v35, 0 }
 0x270   : > { %v919_v36 = vpop.permute.xlu0 %918  ;;  %v628_v37 = vpop.permute.xlu1 %627  ;;  %1126 = vmatpush.bf16.xpose.msrb.mxu2 %v1117_v38  ;;  %v3050_v38 = vld [vmem:[#allocation2 + $0x18] sm:$0xff] }
 0x271   : > { %939 = vst.msk [vmem:[#allocation3 + $0x70] sm:$0xf] %vm598_vm11, %v919_v36 }
 0x272   : > { %645 = vst.msk [vmem:[#allocation3 + $0x18] sm:$0xf] %vm598_vm11, %v628_v37 }
 0x274   : > { %887 = vrot.lane.b32.xlu2 %v3812_v4, %s3478_s29 }
 0x276   : > { %891 = vrot.lane.b32.xlu1 %v3836_v9, %s3478_s29  ;;  %850 = vrot.lane.b32.xlu0 %v3800_v2, %s3481_s8  ;;  %v686_v39 = vpop.permute.xlu2 %685  ;;  %v3068_v47 = vld [vmem:[#allocation3 + $0x28] sm:$0xff] }
 0x277   : > { %707 = vst.msk [vmem:[#allocation2 + $0x2c] sm:$0xf] %vm598_vm11, %v686_v39  ;;  %2805 = vmatmul.msk.bf16.vlgmr.msrb.gmra.mxu2 %vm1082_vm12, %v3048_v40  ;;  %v1237_v62 = vsel %vm1082_vm12, %v3068_v47, 0 }
 0x278   : > { %v886_v43 = vpop.permute.xlu0 %885  ;;  %v725_v34 = vpop.permute.xlu1 %724 }
 0x279   : > { %906 = vst.msk [vmem:[#allocation2 + $0x70] sm:$0xf] %vm598_vm11, %v886_v43 }
 0x27a   : > { %743 = vst.msk [vmem:[#allocation3 + $0x38] sm:$0xf] %vm598_vm11, %v725_v34 }
 0x27c   : > { %753 = vrot.lane.b32.xlu2 %v3794_v63, %s3480_s20 }
 0x27e   : > { %846 = vrot.lane.b32.xlu1 %v3814_v6, %s3481_s8  ;;  %945 = vrot.lane.b32.xlu0 %v3814_v6, %s3482_s9  ;;  %v781_v44 = vpop.permute.xlu2 %780  ;;  %v3052_v12 = vld [vmem:[#allocation2 + $0x28] sm:$0xff] }
 0x27f   : > { %804 = vst.msk [vmem:[#allocation2 + $0x44] sm:$0xf] %vm598_vm11, %v781_v44 }
 0x280   : > { %v618_v45 = vpop.permute.xlu0 %617  ;;  %v923_v46 = vpop.permute.xlu1 %922 }
 0x281   : > { %640 = vst.msk [vmem:[#allocation3 + $0x4] sm:$0xf] %vm598_vm11, %v618_v45 }
 0x282   : > { %941 = vst.msk [vmem:[#allocation3 + $0x78] sm:$0xf] %vm598_vm11, %v923_v46 }
 0x284   : > { %943 = vrot.lane.b32.xlu2 %v3796_v1, %s3482_s9 }
 0x286   : > { %848 = vrot.lane.b32.xlu1 %v3786_v55, %s3481_s8  ;;  %757 = vrot.lane.b32.xlu0 %v3826_v8, %s3480_s20  ;;  %v626_v48 = vpop.permute.xlu2 %625  ;;  %v3055_v21 = vld [vmem:[#allocation2 + $0x40] sm:$0xff] }
 0x287   : > { %644 = vst.msk [vmem:[#allocation3 + $0x14] sm:$0xf] %vm598_vm11, %v626_v48 }
 0x288   : > { %v814_v49 = vpop.permute.xlu0 %813  ;;  %v715_v50 = vpop.permute.xlu1 %714  ;;  %v3063_v51 = vld [vmem:[#allocation3] sm:$0xff] }
 0x289   : > { %837 = vst.msk [vmem:[#allocation3 + $0x44] sm:$0xf] %vm598_vm11, %v814_v49  ;;  %v1087_v52 = vsel %vm1082_vm12, %v3063_v51, 0 }
 0x28a   : > { %738 = vst.msk [vmem:[#allocation3 + $0x24] sm:$0xf] %vm598_vm11, %v715_v50  ;;  %1096 = vmatpush.bf16.xpose.msrb.mxu1 %v1087_v52 }
 0x28c   : > { %759 = vrot.lane.b32.xlu2 %v3836_v9, %s3480_s20 }
 0x28e   : > { %852 = vrot.lane.b32.xlu1 %v3794_v63, %s3481_s8  ;;  %856 = vrot.lane.b32.xlu0 %v3826_v8, %s3481_s8  ;;  %v890_v53 = vpop.permute.xlu2 %889  ;;  %v3065_v54 = vld [vmem:[#allocation3 + $0x10] sm:$0xff] }
 0x28f   : > { %908 = vst.msk [vmem:[#allocation2 + $0x78] sm:$0xf] %vm598_vm11, %v890_v53  ;;  %v1147_v60 = vsel %vm1082_vm12, %v3065_v54, 0 }
 0x290   : > { %v818_v56 = vpop.permute.xlu0 %817  ;;  %v682_v58 = vpop.permute.xlu1 %681  ;;  %1156 = vmatpush.bf16.xpose.msrb.mxu3 %v1147_v60  ;;  %v3071_v0 = vld [vmem:[#allocation3 + $0x40] sm:$0xff] }
 0x291   : > { %839 = vst.msk [vmem:[#allocation3 + $0x4c] sm:$0xf] %vm598_vm11, %v818_v56  ;;  %v3067_v61 = vld [vmem:[#allocation3 + $0x20] sm:$0xff]  ;;  %2796 = vmatmul.msk.bf16.vlgmr.msrb.gmra.mxu1 %vm1082_vm12, %v3047_v59  ;;  %v1327_v6 = vsel %vm1082_vm12, %v3071_v0, 0 }
 0x292   : > { %705 = vst.msk [vmem:[#allocation2 + $0x24] sm:$0xf] %vm598_vm11, %v682_v58  ;;  %v1207_v57 = vsel %vm1082_vm12, %v3067_v61, 0 }
 0x293   : > { %1216 = vmatpush.bf16.xpose.msra.mxu2 %v1207_v57 }
 0x296   : > { %947 = vrot.lane.b32.xlu1 %v3786_v55, %s3482_s9  ;;  %755 = vrot.lane.b32.xlu0 %v3812_v4, %s3480_s20  ;;  %v648_v1 = vpop.permute.xlu2 %647 }
 0x297   : > { %671 = vst.msk [vmem:[#allocation4] sm:$0xf] %vm598_vm11, %v648_v1  ;;  %2814 = vmatmul.msk.bf16.vlgmr.msrb.gmra.mxu3 %vm1082_vm12, %v3049_v22 }
 0x298   : > { %1246 = vmatpush.bf16.xpose.msra.mxu3 %v1237_v62  ;;  %v785_v3 = vpop.permute.xlu0 %784  ;;  %v913_v5 = vpop.permute.xlu1 %912  ;;  %v3072_v33 = vld [vmem:[#allocation3 + $0x48] sm:$0xff] }
 0x299   : > { %806 = vst.msk [vmem:[#allocation2 + $0x4c] sm:$0xf] %vm598_vm11, %v785_v3  ;;  %v3051_v7 = vld [vmem:[#allocation2 + $0x20] sm:$0xff]  ;;  %v1357_v43 = vsel %vm1082_vm12, %v3072_v33, 0 }
 0x29a   : > { %936 = vst.msk [vmem:[#allocation3 + $0x64] sm:$0xf] %vm598_vm11, %v913_v5  ;;  %2832 = vmatmul.msk.bf16.vlgmr.msra.gmra.mxu2 %vm1082_vm12, %v3051_v7 }
 0x29e   : > { %949 = vrot.lane.b32.xlu1 %v3800_v2, %s3482_s9  ;;  %854 = vrot.lane.b32.xlu0 %v3812_v4, %s3481_s8  ;;  %v652_v55 = vpop.permute.xlu2 %651 }
 0x29f   : > { %673 = vst.msk [vmem:[#allocation4 + $0x8] sm:$0xf] %vm598_vm11, %v652_v55 }
 0x2a0   : > { %1336 = vmatpush.bf16.xpose.msrb.mxu3 %v1327_v6  ;;  %v917_v28 = vpop.permute.xlu0 %916  ;;  %v880_v10 = vpop.permute.xlu1 %879  ;;  %v3056_v55 = vld [vmem:[#allocation2 + $0x48] sm:$0xff] }
 0x2a1   : > { %938 = vst.msk [vmem:[#allocation3 + $0x6c] sm:$0xf] %vm598_vm11, %v917_v28  ;;  %v3075_v11 = vld [vmem:[#allocation3 + $0x60] sm:$0xff] }
 0x2a2   : > { %903 = vst.msk [vmem:[#allocation2 + $0x64] sm:$0xf] %vm598_vm11, %v880_v10  ;;  %v1447_v29 = vsel %vm1082_vm12, %v3075_v11, 0 }
 0x2a3   : > { %1456 = vmatpush.bf16.xpose.msrb.mxu0 %v1447_v29 }
 0x2a6   : > { %657 = vrot.lane.b32.xlu1 %v3812_v4, %s3479_s30  ;;  %v752_v2 = vpop.permute.xlu2 %751 }
 0x2a7   : > { %773 = vst.msk [vmem:[#allocation4 + $0x2c] sm:$0xf] %vm598_vm11, %v752_v2  ;;  %2841 = vmatmul.msk.bf16.vlgmr.msra.gmra.mxu3 %vm1082_vm12, %v3052_v12 }
 0x2a8   : > { %v884_v13 = vpop.permute.xlu0 %883  ;;  %v650_v14 = vpop.permute.xlu1 %649  ;;  %v3076_v47 = vld [vmem:[#allocation3 + $0x68] sm:$0xff] }
 0x2a9   : > { %905 = vst.msk [vmem:[#allocation2 + $0x6c] sm:$0xf] %vm598_vm11, %v884_v13  ;;  %v3059_v15 = vld [vmem:[#allocation2 + $0x60] sm:$0xff]  ;;  %v1477_v60 = vsel %vm1082_vm12, %v3076_v47, 0 }
 0x2aa   : > { %672 = vst.msk [vmem:[#allocation4 + $0x4] sm:$0xf] %vm598_vm11, %v650_v14  ;;  %2904 = vmatmul.msk.bf16.vlgmr.msrb.gmra.mxu0 %vm1082_vm12, %v3059_v15 }
 0x2ae   : > { %661 = vrot.lane.b32.xlu1 %v3836_v9, %s3479_s30  ;;  %v694_v16 = vpop.permute.xlu2 %693 }
 0x2af   : > { %711 = vst.msk [vmem:[#allocation2 + $0x3c] sm:$0xf] %vm598_vm11, %v694_v16 }
 0x2b0   : > { %v654_v17 = vpop.permute.xlu0 %653  ;;  %v723_v18 = vpop.permute.xlu1 %722  ;;  %v3060_v14 = vld [vmem:[#allocation2 + $0x68] sm:$0xff] }
 0x2b1   : > { %674 = vst.msk [vmem:[#allocation4 + $0xc] sm:$0xf] %vm598_vm11, %v654_v17  ;;  %v3079_v19 = vld [vmem:[#allocation4] sm:$0xff] }
 0x2b2   : > { %742 = vst.msk [vmem:[#allocation3 + $0x34] sm:$0xf] %vm598_vm11, %v723_v18  ;;  %1959 = vmatpush.bf16.msra.mxu0 %v3079_v19 }
 0x2b6   : > { %v822_v20 = vpop.permute.xlu2 %821  ;;  %v3054_v49 = vld [vmem:[#allocation2 + $0x38] sm:$0xff] }
 0x2b7   : > { %841 = vst.msk [vmem:[#allocation3 + $0x54] sm:$0xf] %vm598_vm11, %v822_v20  ;;  %2868 = vmatmul.msk.bf16.vlgmr.msrb.gmra.mxu3 %vm1082_vm12, %v3055_v21 }
 0x2b8   : > { %v690_v23 = vpop.permute.xlu1 %689  ;;  %v630_v41 = vpop.permute.xlu0 %629  ;;  %v3080_v28 = vld [vmem:[#allocation4 + $0x8] sm:$0xff] }
 0x2b9   : > { %709 = vst.msk [vmem:[#allocation2 + $0x34] sm:$0xf] %vm598_vm11, %v690_v23  ;;  %v3069_v27 = vld [vmem:[#allocation3 + $0x30] sm:$0xff] }
 0x2ba   : > { %646 = vst.msk [vmem:[#allocation3 + $0x1c] sm:$0xf] %vm598_vm11, %v630_v41  ;;  %v1267_v31 = vsel %vm1082_vm12, %v3069_v27, 0 }
 0x2be   : > { %v789_v24 = vpop.permute.xlu2 %788  ;;  %v3073_v37 = vld [vmem:[#allocation3 + $0x50] sm:$0xff] }
 0x2bf   : > { %808 = vst.msk [vmem:[#allocation2 + $0x54] sm:$0xf] %vm598_vm11, %v789_v24  ;;  %v1387_v34 = vsel %vm1082_vm12, %v3073_v37, 0 }
 0x2c0   : > { %v746_v25 = vpop.permute.xlu1 %745  ;;  %v727_v26 = vpop.permute.xlu0 %726  ;;  %v3053_v58 = vld [vmem:[#allocation2 + $0x30] sm:$0xff] }
 0x2c1   : > { %770 = vst.msk [vmem:[#allocation4 + $0x20] sm:$0xf] %vm598_vm11, %v746_v25  ;;  %v3066_v30 = vld [vmem:[#allocation3 + $0x18] sm:$0xff] }
 0x2c2   : > { %744 = vst.msk [vmem:[#allocation3 + $0x3c] sm:$0xf] %vm598_vm11, %v727_v26  ;;  %v1177_v42 = vsel %vm1082_vm12, %v3066_v30, 0 }
 0x2c3   : > { %1186 = vmatpush.bf16.xpose.msra.mxu1 %v1177_v42 }
 0x2c6   : > { %v921_v32 = vpop.permute.xlu2 %920  ;;  %v3057_v1 = vld [vmem:[#allocation2 + $0x50] sm:$0xff] }
 0x2c7   : > { %940 = vst.msk [vmem:[#allocation3 + $0x74] sm:$0xf] %vm598_vm11, %v921_v32 }
 0x2c8   : > { %v750_v35 = vpop.permute.xlu1 %749  ;;  %v748_v36 = vpop.permute.xlu0 %747 }
 0x2c9   : > { %772 = vst.msk [vmem:[#allocation4 + $0x28] sm:$0xf] %vm598_vm11, %v750_v35  ;;  %v3070_v39 = vld [vmem:[#allocation3 + $0x38] sm:$0xff] }
 0x2ca   : > { %771 = vst.msk [vmem:[#allocation4 + $0x24] sm:$0xf] %vm598_vm11, %v748_v36  ;;  %2823 = vmatmul.msk.bf16.vlgmr.msra.gmra.mxu1 %vm1082_vm12, %v3050_v38  ;;  %v1297_v40 = vsel %vm1082_vm12, %v3070_v39, 0 }
 0x2cb   : > { %1276 = vmatpush.bf16.xpose.msrb.mxu1 %v1267_v31  ;;  %1306 = vmatpush.bf16.xpose.msrb.mxu2 %v1297_v40 }
 0x2ce   : > { %v888_v44 = vpop.permute.xlu2 %887  ;;  %v3077_v45 = vld [vmem:[#allocation3 + $0x70] sm:$0xff] }
 0x2cf   : > { %907 = vst.msk [vmem:[#allocation2 + $0x74] sm:$0xf] %vm598_vm11, %v888_v44  ;;  %v1507_v51 = vsel %vm1082_vm12, %v3077_v45, 0 }
 0x2d0   : > { %v826_v46 = vpop.permute.xlu1 %825  ;;  %v656_v48 = vpop.permute.xlu0 %655  ;;  %v3084_v15 = vld [vmem:[#allocation4 + $0x28] sm:$0xff] }
 0x2d1   : > { %843 = vst.msk [vmem:[#allocation3 + $0x5c] sm:$0xf] %vm598_vm11, %v826_v46  ;;  %v3083_v50 = vld [vmem:[#allocation4 + $0x20] sm:$0xff] }
 0x2d2   : > { %675 = vst.msk [vmem:[#allocation4 + $0x10] sm:$0xf] %vm598_vm11, %v656_v48  ;;  %2859 = vmatmul.msk.bf16.vlgmr.msrb.gmra.mxu2 %vm1082_vm12, %v3054_v49  ;;  %2071 = vmatpush.bf16.msrb.mxu0 %v3083_v50 }
 0x2d3   : > { %1366 = vmatpush.bf16.xpose.msra.mxu1 %v1357_v43  ;;  %1396 = vmatpush.bf16.xpose.msra.mxu2 %v1387_v34 }
 0x2d6   : > { %v754_v52 = vpop.permute.xlu2 %753  ;;  %v3061_v2 = vld [vmem:[#allocation2 + $0x70] sm:$0xff] }
 0x2d7   : > { %774 = vst.msk [vmem:[#allocation4 + $0x30] sm:$0xf] %vm598_vm11, %v754_v52 }
 0x2d8   : > { %v793_v53 = vpop.permute.xlu1 %792  ;;  %v925_v54 = vpop.permute.xlu0 %924  ;;  %v3074_v56 = vld [vmem:[#allocation3 + $0x58] sm:$0xff] }
 0x2d9   : > { %810 = vst.msk [vmem:[#allocation2 + $0x5c] sm:$0xf] %vm598_vm11, %v793_v53  ;;  %v1417_v59 = vsel %vm1082_vm12, %v3074_v56, 0 }
 0x2da   : > { %942 = vst.msk [vmem:[#allocation3 + $0x7c] sm:$0xf] %vm598_vm11, %v925_v54  ;;  %2850 = vmatmul.msk.bf16.vlgmr.msrb.gmra.mxu1 %vm1082_vm12, %v3053_v58  ;;  %1426 = vmatpush.bf16.xpose.msra.mxu3 %v1417_v59 }
 0x2db   : > { %1516 = vmatpush.bf16.xpose.msrb.mxu2 %v1507_v51  ;;  %1486 = vmatpush.bf16.xpose.msrb.mxu1 %v1477_v60 }
 0x2de   : > { %v944_v61 = vpop.permute.xlu2 %943 }
 0x2df   : > { %968 = vst.msk [vmem:[#allocation4 + $0x60] sm:$0xf] %vm598_vm11, %v944_v61 }
 0x2e0   : > { %v845_v62 = vpop.permute.xlu1 %844  ;;  %v660_v57 = vpop.permute.xlu0 %659  ;;  %v3058_v0 = vld [vmem:[#allocation2 + $0x58] sm:$0xff] }
 0x2e1   : > { %869 = vst.msk [vmem:[#allocation4 + $0x40] sm:$0xf] %vm598_vm11, %v845_v62  ;;  %v3078_v22 = vld [vmem:[#allocation3 + $0x78] sm:$0xff]  ;;  %2895 = vmatmul.msk.bf16.vlgmr.msra.gmra.mxu3 %vm1082_vm12, %v3058_v0 }
 0x2e2   : > { %677 = vst.msk [vmem:[#allocation4 + $0x18] sm:$0xf] %vm598_vm11, %v660_v57  ;;  %2886 = vmatmul.msk.bf16.vlgmr.msra.gmra.mxu2 %vm1082_vm12, %v3057_v1  ;;  %v1537_v3 = vsel %vm1082_vm12, %v3078_v22, 0 }
 0x2e3   : > { %1546 = vmatpush.bf16.xpose.msrb.mxu3 %v1537_v3 }
 0x2e6   : > { %v760_v5 = vpop.permute.xlu2 %759 }
 0x2e7   : > { %777 = vst.msk [vmem:[#allocation4 + $0x3c] sm:$0xf] %vm598_vm11, %v760_v5 }
 0x2e8   : > { %v892_v6 = vpop.permute.xlu1 %891  ;;  %v851_v7 = vpop.permute.xlu0 %850 }
 0x2e9   : > { %909 = vst.msk [vmem:[#allocation2 + $0x7c] sm:$0xf] %vm598_vm11, %v892_v6 }
 0x2ea   : > { %872 = vst.msk [vmem:[#allocation4 + $0x4c] sm:$0xf] %vm598_vm11, %v851_v7  ;;  %2877 = vmatmul.msk.bf16.vlgmr.msra.gmra.mxu1 %vm1082_vm12, %v3056_v55 }
 0x2eb   : > { %1987 = vmatpush.bf16.msra.mxu1 %v3080_v28 }
 0x2f0   : > { %v847_v10 = vpop.permute.xlu1 %846  ;;  %v946_v11 = vpop.permute.xlu0 %945  ;;  %v3062_v29 = vld [vmem:[#allocation2 + $0x78] sm:$0xff] }
 0x2f1   : > { %870 = vst.msk [vmem:[#allocation4 + $0x44] sm:$0xf] %vm598_vm11, %v847_v10  ;;  %2931 = vmatmul.msk.bf16.vlgmr.msrb.gmra.mxu3 %vm1082_vm12, %v3062_v29 }
 0x2f2   : > { %969 = vst.msk [vmem:[#allocation4 + $0x64] sm:$0xf] %vm598_vm11, %v946_v11  ;;  %2922 = vmatmul.msk.bf16.vlgmr.msrb.gmra.mxu2 %vm1082_vm12, %v3061_v2 }
 0x2f8   : > { %v849_v12 = vpop.permute.xlu1 %848  ;;  %v758_v13 = vpop.permute.xlu0 %757 }
 0x2f9   : > { %871 = vst.msk [vmem:[#allocation4 + $0x48] sm:$0xf] %vm598_vm11, %v849_v12 }
 0x2fa   : > { %776 = vst.msk [vmem:[#allocation4 + $0x38] sm:$0xf] %vm598_vm11, %v758_v13  ;;  %2913 = vmatmul.msk.bf16.vlgmr.msrb.gmra.mxu1 %vm1082_vm12, %v3060_v14  ;;  %v4091_v16 = vpop.f32.mrf.mxu2 }
 0x2fb   : > { %2099 = vmatpush.bf16.msrb.mxu1 %v3084_v15  ;;  %v1560_v17 = vsel %vm1553_vm13, %v4091_v16, -inf }
 0x2fc   : > { %1561 = vmax.xlane.f32.xlu1 %v1560_v17 }
 0x300   : > { %v853_v18 = vpop.permute.xlu1 %852  ;;  %v857_v19 = vpop.permute.xlu0 %856 }
 0x301   : > { %873 = vst.msk [vmem:[#allocation4 + $0x50] sm:$0xf] %vm598_vm11, %v853_v18  ;;  %v3086_v43 = vld [vmem:[#allocation4 + $0x38] sm:$0xff] }
 0x302   : > { %875 = vst.msk [vmem:[#allocation4 + $0x58] sm:$0xf] %vm598_vm11, %v857_v19  ;;  %v4112_v31 = vpop.f32.mrf.mxu2 }
 0x303   : > { %v1563_v51 = vsel %vm1553_vm13, %v4112_v31, -inf }
 0x308   : > { %v948_v20 = vpop.permute.xlu1 %947  ;;  %v756_v21 = vpop.permute.xlu0 %755 }
 0x309   : > { %970 = vst.msk [vmem:[#allocation4 + $0x68] sm:$0xf] %vm598_vm11, %v948_v20 }
 0x30a   : > { %775 = vst.msk [vmem:[#allocation4 + $0x34] sm:$0xf] %vm598_vm11, %v756_v21 }
 0x30e   : > { %v4099_v23 = vpop.f32.mrf.mxu1 }
 0x30f   : > { %v1554_v25 = vsel %vm1553_vm13, %v4099_v23, -inf }
 0x310   : > { %v950_v41 = vpop.permute.xlu1 %949  ;;  %v855_v24 = vpop.permute.xlu0 %854  ;;  %1555 = vmax.xlane.f32.xlu0 %v1554_v25 }
 0x311   : > { %971 = vst.msk [vmem:[#allocation4 + $0x6c] sm:$0xf] %vm598_vm11, %v950_v41  ;;  %v3085_v35 = vld [vmem:[#allocation4 + $0x30] sm:$0xff] }
 0x312   : > { %874 = vst.msk [vmem:[#allocation4 + $0x54] sm:$0xf] %vm598_vm11, %v855_v24 }
 0x316   : > { %v4105_v26 = vpop.f32.mrf.mxu1 }
 0x317   : > { %v1557_v30 = vsel %vm1553_vm13, %v4105_v26, -inf }
 0x318   : > { %v658_v27 = vpop.permute.xlu1 %657  ;;  %1558 = vmax.xlane.f32.xlu2 %v1557_v30 }
 0x319   : > { %676 = vst.msk [vmem:[#allocation4 + $0x14] sm:$0xf] %vm598_vm11, %v658_v27 }
 0x31a   : > { %v4110_v42 = vpop.f32.mrf.mxu3 }
 0x31b   : > { %v1566_v49 = vsel %vm1553_vm13, %v4110_v42, -inf }
 0x31d   : > { %v4117_v37 = vpop.f32.mrf.mxu2 }
 0x31e   : > { %v1578_v47 = vsel %vm1553_vm13, %v4117_v37, -inf }
 0x320   : > { %v662_v32 = vpop.permute.xlu1 %661  ;;  %v3081_v33 = vld [vmem:[#allocation4 + $0x10] sm:$0xff] }
 0x321   : > { %678 = vst.msk [vmem:[#allocation4 + $0x1c] sm:$0xf] %vm598_vm11, %v662_v32  ;;  %2015 = vmatpush.bf16.msra.mxu2 %v3081_v33 }
 0x322   : > { %v4115_v36 = vpop.f32.mrf.mxu3 }
 0x323   : > { %v1569_v52 = vsel %vm1553_vm13, %v4115_v36, -inf }
 0x325   : > { %2127 = vmatpush.bf16.msrb.mxu2 %v3085_v35  ;;  %v4129_v46 = vpop.f32.mrf.mxu2 }
 0x326   : > { %v1581_v50 = vsel %vm1553_vm13, %v4129_v46, -inf }
 0x327   : > { %v4119_v38 = vpop.f32.mrf.mxu0 }
 0x328   : > { %v3082_v39 = vld [vmem:[#allocation4 + $0x18] sm:$0xff]  ;;  %v1626_v40 = vsel %vm1553_vm13, %v4119_v38, -inf }
 0x329   : > { %1627 = vmax.xlane.f32.xlu0 %v1626_v40  ;;  %2043 = vmatpush.bf16.msra.mxu3 %v3082_v39 }
 0x32a   : > { %v4123_v34 = vpop.f32.mrf.mxu3 }
 0x32b   : > { %v1584_v44 = vsel %vm1553_vm13, %v4123_v34, -inf }
 0x32c   : > { %1585 = vmax.xlane.f32.xlu1 %v1584_v44 }
 0x32d   : > { %2155 = vmatpush.bf16.msrb.mxu3 %v3086_v43 }
 0x32f   : > { %v4127_v45 = vpop.f32.mrf.mxu0 }
 0x330   : > { %v1629_v48 = vsel %vm1553_vm13, %v4127_v45, -inf }
 0x331   : > { %1630 = vmax.xlane.f32.xlu2 %v1629_v48  ;;  %1567 = vmax.xlane.f32.xlu0 %v1566_v49 }
 0x332   : > { %v4147_v56 = vpop.f32.mrf.mxu3 }
 0x333   : > { %v1587_v60 = vsel %vm1553_vm13, %v4147_v56, -inf }
 0x334   : > { %1582 = vmax.xlane.f32.xlu1 %v1581_v50 }
 0x339   : > { %1564 = vmax.xlane.f32.xlu0 %v1563_v51  ;;  %1570 = vmax.xlane.f32.xlu2 %v1569_v52 }
 0x33a   : > { %v4155_v61 = vpop.f32.mrf.mxu3 }
 0x33b   : > { %v1602_v1 = vsel %vm1553_vm13, %v4155_v61, -inf }
 0x341   : > { %1579 = vmax.xlane.f32.xlu2 %v1578_v47 }
 0x342   : > { %v4167_v3 = vpop.f32.mrf.mxu3 }
 0x343   : > { %v1605_v7 = vsel %vm1553_vm13, %v4167_v3, -inf }
 0x347   : > { %v4143_v53 = vpop.f32.mrf.mxu1 }
 0x348   : > { %v1572_v54 = vsel %vm1553_vm13, %v4143_v53, -inf }
 0x349   : > { %1573 = vmax.xlane.f32.xlu0 %v1572_v54 }
 0x34f   : > { %v4149_v58 = vpop.f32.mrf.mxu1 }
 0x350   : > { %v1575_v59 = vsel %vm1553_vm13, %v4149_v58, -inf }
 0x351   : > { %1576 = vmax.xlane.f32.xlu2 %v1575_v59  ;;  %1588 = vmax.xlane.f32.xlu0 %v1587_v60 }
 0x355   : > { %v4157_v62 = vpop.f32.mrf.mxu2 }
 0x356   : > { %v1596_v22 = vsel %vm1553_vm13, %v4157_v62, -inf }
 0x357   : > { %v4159_v57 = vpop.f32.mrf.mxu1 }
 0x358   : > { %v1590_v0 = vsel %vm1553_vm13, %v4159_v57, -inf }
 0x359   : > { %1591 = vmax.xlane.f32.xlu1 %v1590_v0  ;;  %1603 = vmax.xlane.f32.xlu2 %v1602_v1 }
 0x35a   : > { %1597 = vmax.xlane.f32.xlu0 %v1596_v22 }
 0x35d   : > { %v4169_v5 = vpop.f32.mrf.mxu2 }
 0x35e   : > { %v1599_v2 = vsel %vm1553_vm13, %v4169_v5, -inf }
 0x35f   : > { %v4171_v6 = vpop.f32.mrf.mxu1 }
 0x360   : > { %v1593_v55 = vsel %vm1553_vm13, %v4171_v6, -inf }
 0x361   : > { %1606 = vmax.xlane.f32.xlu1 %v1605_v7 }
 0x362   : > { %1594 = vmax.xlane.f32.xlu0 %v1593_v55 }
 0x364   : > { %v4179_v10 = vpop.f32.mrf.mxu3 }
 0x365   : > { %v4177_v28 = vpop.f32.mrf.mxu2  ;;  %v1620_v15 = vsel %vm1553_vm13, %v4179_v10, -inf }
 0x366   : > { %v1614_v18 = vsel %vm1553_vm13, %v4177_v28, -inf }
 0x367   : > { %v4181_v11 = vpop.f32.mrf.mxu1 }
 0x368   : > { %v1608_v29 = vsel %vm1553_vm13, %v4181_v11, -inf }
 0x369   : > { %1609 = vmax.xlane.f32.xlu2 %v1608_v29 }
 0x36a   : > { %1600 = vmax.xlane.f32.xlu0 %v1599_v2 }
 0x36c   : > { %v4195_v17 = vpop.f32.mrf.mxu3 }
 0x36d   : > { %v4187_v12 = vpop.f32.mrf.mxu2  ;;  %v1623_v32 = vsel %vm1553_vm13, %v4195_v17, -inf }
 0x36e   : > { %v1617_v41 = vsel %vm1553_vm13, %v4187_v12, -inf }
 0x36f   : > { %v4189_v13 = vpop.f32.mrf.mxu1  ;;  %v1562_v52 = vpop.xlane.xlu1 %1561 }
 0x370   : > { %v1611_v14 = vsel %vm1553_vm13, %v4189_v13, -inf  ;;  %v1652_v59 = vsub.f32 %v4091_v16, %v1562_v52 }
 0x371   : > { %1612 = vmax.xlane.f32.xlu1 %v1611_v14  ;;  %1621 = vmax.xlane.f32.xlu2 %v1620_v15 }
 0x372   : > { %1615 = vmax.xlane.f32.xlu0 %v1614_v18  ;;  %v1686_v0 = vmul.f32 1.442695, %v1652_v59 }
 0x374   : > { %v4209_v25 = vpop.f32.mrf.mxu3 }
 0x375   : > { %v4199_v19 = vpop.f32.mrf.mxu2  ;;  %v1644_v48 = vsel %vm1553_vm13, %v4209_v25, -inf }
 0x376   : > { %v1638_v24 = vsel %vm1553_vm13, %v4199_v19, -inf }
 0x377   : > { %v4201_v20 = vpop.f32.mrf.mxu1 }
 0x378   : > { %v1632_v21 = vsel %vm1553_vm13, %v4201_v20, -inf }
 0x379   : > { %1633 = vmax.xlane.f32.xlu1 %v1632_v21  ;;  %1618 = vmax.xlane.f32.xlu2 %v1617_v41 }
 0x37a   : > { %1639 = vmax.xlane.f32.xlu0 %v1638_v24 }
 0x37c   : > { %v4222_v43 = vpop.f32.mrf.mxu3 }
 0x37d   : > { %v4211_v27 = vpop.f32.mrf.mxu2  ;;  %v1647_v49 = vsel %vm1553_vm13, %v4222_v43, -inf }
 0x37e   : > { %v1641_v35 = vsel %vm1553_vm13, %v4211_v27, -inf }
 0x37f   : > { %v4213_v30 = vpop.f32.mrf.mxu1 }
 0x380   : > { %v1635_v33 = vsel %vm1553_vm13, %v4213_v30, -inf }
 0x381   : > { %1624 = vmax.xlane.f32.xlu1 %v1623_v32  ;;  %1642 = vmax.xlane.f32.xlu2 %v1641_v35 }
 0x382   : > { %1636 = vmax.xlane.f32.xlu0 %v1635_v33 }
 0x383   : > { %v1556_v39 = vpop.xlane.xlu0 %1555 }
 0x384   : > { %v1650_v40 = vsub.f32 %v4099_v23, %v1556_v39 }
 0x386   : > { %v1682_v44 = vmul.f32 1.442695, %v1650_v40 }
 0x388   : > { %3207 = vpow2.f32 %v1682_v44 }
 0x389   : > { %1645 = vmax.xlane.f32.xlu1 %v1644_v48  ;;  %1648 = vmax.xlane.f32.xlu2 %v1647_v49 }
 0x38b   : > { %v1559_v23 = vpop.xlane.xlu2 %1558 }
 0x38c   : > { %v1651_v2 = vsub.f32 %v4105_v26, %v1559_v23 }
 0x38e   : > { %v4228_v50 = vpop.eup %3207  ;;  %v1684_v16 = vmul.f32 1.442695, %v1651_v2 }
 0x38f   : > { %v1746_v51 = vsel %vm1553_vm13, %v4228_v50, 0.0 }
 0x391   : > { %1747 = vadd.xlane.f32.xlu1 %v1746_v51 }
 0x39c   : > { %v1628_v47 = vpop.xlane.xlu0 %1627 }
 0x39d   : > { %v1674_v54 = vsub.f32 %v4119_v38, %v1628_v47 }
 0x39f   : > { %v1730_v60 = vmul.f32 1.442695, %v1674_v54 }
 0x3a1   : > { %3209 = vpow2.f32 %v1730_v60 }
 0x3a2   : > { %3211 = vpow2.f32 %v1686_v0 }
 0x3a4   : > { %v1568_v1 = vpop.xlane.xlu0 %1567  ;;  %v1631_v22 = vpop.xlane.xlu2 %1630 }
 0x3a5   : > { %v1654_v7 = vsub.f32 %v4110_v42, %v1568_v1  ;;  %v1675_v55 = vsub.f32 %v4127_v45, %v1631_v22  ;;  %v1586_v42 = vpop.xlane.xlu1 %1585 }
 0x3a6   : > { %v1660_v35 = vsub.f32 %v4123_v34, %v1586_v42 }
 0x3a7   : > { %v4236_v29 = vpop.eup %3209  ;;  %v1690_v14 = vmul.f32 1.442695, %v1654_v7  ;;  %v1732_v15 = vmul.f32 1.442695, %v1675_v55 }
 0x3a8   : > { %v1818_v38 = vsel %vm1553_vm13, %v4236_v29, 0.0  ;;  %v4241_v41 = vpop.eup %3211 }
 0x3a9   : > { %3213 = vpow2.f32 %v1690_v14  ;;  %1819 = vadd.xlane.f32.xlu0 %v1818_v38  ;;  %v1752_v40 = vsel %vm1553_vm13, %v4241_v41, 0.0 }
 0x3aa   : > { %3215 = vpow2.f32 %v1732_v15 }
 0x3ab   : > { %3217 = vpow2.f32 %v1684_v16 }
 0x3ac   : > { %v1565_v18 = vpop.xlane.xlu0 %1564  ;;  %v1571_v21 = vpop.xlane.xlu2 %1570 }
 0x3ad   : > { %v1655_v45 = vsub.f32 %v4115_v36, %v1571_v21  ;;  %v1653_v26 = vsub.f32 %v4112_v31, %v1565_v18  ;;  %v1702_v31 = vmul.f32 1.442695, %v1660_v35  ;;  %v1583_v16 = vpop.xlane.xlu1 %1582 }
 0x3af   : > { %v4244_v24 = vpop.eup %3213  ;;  %v1692_v32 = vmul.f32 1.442695, %v1655_v45  ;;  %v1688_v44 = vmul.f32 1.442695, %v1653_v26 }
 0x3b0   : > { %v4247_v33 = vpop.eup %3215  ;;  %v1758_v39 = vsel %vm1553_vm13, %v4244_v24, 0.0 }
 0x3b1   : > { %1759 = vadd.xlane.f32.xlu1 %v1758_v39  ;;  %1753 = vadd.xlane.f32.xlu0 %v1752_v40  ;;  %v1821_v36 = vsel %vm1553_vm13, %v4247_v33, 0.0  ;;  %3219 = vpow2.f32 %v1692_v32  ;;  %v4256_v48 = vpop.eup %3217 }
 0x3b2   : > { %1822 = vadd.xlane.f32.xlu2 %v1821_v36  ;;  %3221 = vpow2.f32 %v1688_v44  ;;  %v1749_v34 = vsel %vm1553_vm13, %v4256_v48, 0.0 }
 0x3b3   : > { %3223 = vpow2.f32 %v1702_v31 }
 0x3b4   : > { %v1580_v52 = vpop.xlane.xlu2 %1579 }
 0x3b5   : > { %v1658_v60 = vsub.f32 %v4117_v37, %v1580_v52 }
 0x3b7   : > { %v4258_v49 = vpop.eup %3219  ;;  %v1698_v7 = vmul.f32 1.442695, %v1658_v60 }
 0x3b8   : > { %v1761_v51 = vsel %vm1553_vm13, %v4258_v49, 0.0  ;;  %v4264_v47 = vpop.eup %3221 }
 0x3b9   : > { %1750 = vadd.xlane.f32.xlu0 %v1749_v34  ;;  %v4267_v59 = vpop.eup %3223  ;;  %v1755_v1 = vsel %vm1553_vm13, %v4264_v47, 0.0 }
 0x3ba   : > { %1762 = vadd.xlane.f32.xlu2 %v1761_v51  ;;  %v1776_v22 = vsel %vm1553_vm13, %v4267_v59, 0.0 }
 0x3bc   : > { %v1574_v23 = vpop.xlane.xlu0 %1573 }
 0x3bd   : > { %v1656_v54 = vsub.f32 %v4143_v53, %v1574_v23 }
 0x3bf   : > { %v1694_v0 = vmul.f32 1.442695, %v1656_v54 }
 0x3c1   : > { %3225 = vpow2.f32 %v1694_v0  ;;  %1756 = vadd.xlane.f32.xlu0 %v1755_v1 }
 0x3c2   : > { %1777 = vadd.xlane.f32.xlu2 %v1776_v22  ;;  %3227 = vpow2.f32 %v1698_v7 }
 0x3c4   : > { %v1589_v55 = vpop.xlane.xlu0 %1588  ;;  %v1577_v2 = vpop.xlane.xlu2 %1576 }
 0x3c5   : > { %v1661_v14 = vsub.f32 %v4147_v56, %v1589_v55  ;;  %v1657_v37 = vsub.f32 %v4149_v58, %v1577_v2  ;;  %v1659_v56 = vsub.f32 %v4129_v46, %v1583_v16 }
 0x3c7   : > { %v4275_v53 = vpop.eup %3225  ;;  %v1704_v15 = vmul.f32 1.442695, %v1661_v14  ;;  %v1696_v18 = vmul.f32 1.442695, %v1657_v37  ;;  %v1700_v40 = vmul.f32 1.442695, %v1659_v56 }
 0x3c8   : > { %v1764_v38 = vsel %vm1553_vm13, %v4275_v53, 0.0  ;;  %v4280_v21 = vpop.eup %3227 }
 0x3c9   : > { %3229 = vpow2.f32 %v1704_v15  ;;  %1765 = vadd.xlane.f32.xlu0 %v1764_v38  ;;  %v1770_v35 = vsel %vm1553_vm13, %v4280_v21, 0.0 }
 0x3ca   : > { %3231 = vpow2.f32 %v1696_v18 }
 0x3cc   : > { %v1592_v39 = vpop.xlane.xlu1 %1591  ;;  %v1604_v36 = vpop.xlane.xlu2 %1603 }
 0x3cd   : > { %v1598_v42 = vpop.xlane.xlu0 %1597  ;;  %v1662_v46 = vsub.f32 %v4159_v57, %v1592_v39  ;;  %v1666_v18 = vsub.f32 %v4155_v61, %v1604_v36 }
 0x3ce   : > { %v1664_v45 = vsub.f32 %v4157_v62, %v1598_v42 }
 0x3cf   : > { %v4283_v26 = vpop.eup %3229  ;;  %v1706_v52 = vmul.f32 1.442695, %v1662_v46 }
 0x3d0   : > { %v1710_v32 = vmul.f32 1.442695, %v1664_v45  ;;  %v1779_v58 = vsel %vm1553_vm13, %v4283_v26, 0.0  ;;  %v4290_v44 = vpop.eup %3231 }
 0x3d1   : > { %1780 = vadd.xlane.f32.xlu2 %v1779_v58  ;;  %1771 = vadd.xlane.f32.xlu0 %v1770_v35  ;;  %v1767_v34 = vsel %vm1553_vm13, %v4290_v44, 0.0 }
 0x3d2   : > { %3233 = vpow2.f32 %v1710_v32 }
 0x3d3   : > { %3235 = vpow2.f32 %v1700_v40 }
 0x3d4   : > { %v1607_v23 = vpop.xlane.xlu1 %1606  ;;  %3237 = vpow2.f32 %v1706_v52 }
 0x3d5   : > { %v1595_v62 = vpop.xlane.xlu0 %1594  ;;  %v1667_v7 = vsub.f32 %v4167_v3, %v1607_v23 }
 0x3d6   : > { %v1663_v57 = vsub.f32 %v4171_v6, %v1595_v62 }
 0x3d7   : > { %v1716_v14 = vmul.f32 1.442695, %v1667_v7 }
 0x3d8   : > { %v4293_v31 = vpop.eup %3233  ;;  %v1708_v2 = vmul.f32 1.442695, %v1663_v57 }
 0x3d9   : > { %v1788_v51 = vsel %vm1553_vm13, %v4293_v31, 0.0  ;;  %1768 = vadd.xlane.f32.xlu0 %v1767_v34  ;;  %v4299_v60 = vpop.eup %3235 }
 0x3da   : > { %1789 = vadd.xlane.f32.xlu1 %v1788_v51  ;;  %v1773_v55 = vsel %vm1553_vm13, %v4299_v60, 0.0  ;;  %v4306_v38 = vpop.eup %3237 }
 0x3db   : > { %v1782_v56 = vsel %vm1553_vm13, %v4306_v38, 0.0 }
 0x3dc   : > { %v1610_v54 = vpop.xlane.xlu2 %1609 }
 0x3dd   : > { %v1601_v0 = vpop.xlane.xlu0 %1600  ;;  %v1668_v1 = vsub.f32 %v4181_v11, %v1610_v54 }
 0x3df   : > { %v1718_v22 = vmul.f32 1.442695, %v1668_v1 }
 0x3e1   : > { %3239 = vpow2.f32 %v1718_v22  ;;  %1774 = vadd.xlane.f32.xlu0 %v1773_v55 }
 0x3e2   : > { %3241 = vpow2.f32 %v1708_v2 }
 0x3e3   : > { %3243 = vpow2.f32 %v1716_v14 }
 0x3e4   : > { %v1613_v15 = vpop.xlane.xlu1 %1612  ;;  %v1622_v37 = vpop.xlane.xlu2 %1621 }
 0x3e5   : > { %v1669_v16 = vsub.f32 %v4189_v13, %v1613_v15  ;;  %v1616_v11 = vpop.xlane.xlu0 %1615  ;;  %v1672_v42 = vsub.f32 %v4179_v10, %v1622_v37  ;;  %v1714_v13 = vmul.f32 1.442695, %v1666_v18 }
 0x3e6   : > { %v1670_v45 = vsub.f32 %v4177_v28, %v1616_v11  ;;  %v1665_v28 = vsub.f32 %v4169_v5, %v1601_v0 }
 0x3e7   : > { %v4310_v6 = vpop.eup %3239  ;;  %v1720_v3 = vmul.f32 1.442695, %v1669_v16  ;;  %v1726_v61 = vmul.f32 1.442695, %v1672_v42 }
 0x3e8   : > { %v1800_v32 = vsel %vm1553_vm13, %v4310_v6, 0.0  ;;  %v1722_v58 = vmul.f32 1.442695, %v1670_v45  ;;  %v4318_v40 = vpop.eup %3241  ;;  %v1712_v5 = vmul.f32 1.442695, %v1665_v28 }
 0x3e9   : > { %3245 = vpow2.f32 %v1720_v3  ;;  %1783 = vadd.xlane.f32.xlu0 %v1782_v56  ;;  %1801 = vadd.xlane.f32.xlu2 %v1800_v32  ;;  %v4320_v10 = vpop.eup %3243  ;;  %v1785_v51 = vsel %vm1553_vm13, %v4318_v40, 0.0 }
 0x3ea   : > { %3247 = vpow2.f32 %v1714_v13  ;;  %v1797_v52 = vsel %vm1553_vm13, %v4320_v10, 0.0 }
 0x3eb   : > { %3249 = vpow2.f32 %v1726_v61 }
 0x3ec   : > { %v1634_v35 = vpop.xlane.xlu1 %1633  ;;  %v1619_v39 = vpop.xlane.xlu2 %1618  ;;  %3251 = vpow2.f32 %v1722_v58 }
 0x3ed   : > { %v1671_v62 = vsub.f32 %v4187_v12, %v1619_v39  ;;  %v1676_v46 = vsub.f32 %v4201_v20, %v1634_v35  ;;  %v1640_v23 = vpop.xlane.xlu0 %1639  ;;  %3253 = vpow2.f32 %v1712_v5 }
 0x3ee   : > { %v1678_v22 = vsub.f32 %v4199_v19, %v1640_v23 }
 0x3ef   : > { %v4323_v36 = vpop.eup %3245  ;;  %v1724_v54 = vmul.f32 1.442695, %v1671_v62  ;;  %v1734_v12 = vmul.f32 1.442695, %v1676_v46 }
 0x3f0   : > { %v1803_v34 = vsel %vm1553_vm13, %v4323_v36, 0.0  ;;  %v4333_v0 = vpop.eup %3247  ;;  %v1738_v15 = vmul.f32 1.442695, %v1678_v22 }
 0x3f1   : > { %1804 = vadd.xlane.f32.xlu1 %v1803_v34  ;;  %1786 = vadd.xlane.f32.xlu0 %v1785_v51  ;;  %v4335_v1 = vpop.eup %3249  ;;  %3255 = vpow2.f32 %v1724_v54  ;;  %v1794_v55 = vsel %vm1553_vm13, %v4333_v0, 0.0 }
 0x3f2   : > { %1798 = vadd.xlane.f32.xlu2 %v1797_v52  ;;  %v4337_v57 = vpop.eup %3251  ;;  %3257 = vpow2.f32 %v1734_v12  ;;  %v1812_v2 = vsel %vm1553_vm13, %v4335_v1, 0.0 }
 0x3f3   : > { %v1806_v14 = vsel %vm1553_vm13, %v4337_v57, 0.0  ;;  %v4347_v37 = vpop.eup %3253  ;;  %3259 = vpow2.f32 %v1738_v15 }
 0x3f4   : > { %v1625_v20 = vpop.xlane.xlu1 %1624  ;;  %v1791_v45 = vsel %vm1553_vm13, %v4347_v37, 0.0 }
 0x3f5   : > { %v1673_v7 = vsub.f32 %v4195_v17, %v1625_v20  ;;  %v1637_v16 = vpop.xlane.xlu0 %1636  ;;  %v1643_v17 = vpop.xlane.xlu2 %1642 }
 0x3f6   : > { %v1677_v3 = vsub.f32 %v4213_v30, %v1637_v16  ;;  %v1679_v42 = vsub.f32 %v4211_v27, %v1643_v17 }
 0x3f7   : > { %v1728_v19 = vmul.f32 1.442695, %v1673_v7  ;;  %v4349_v11 = vpop.eup %3255 }
 0x3f8   : > { %v4351_v18 = vpop.eup %3257  ;;  %v1809_v56 = vsel %vm1553_vm13, %v4349_v11, 0.0  ;;  %v1736_v13 = vmul.f32 1.442695, %v1677_v3  ;;  %v1740_v61 = vmul.f32 1.442695, %v1679_v42 }
 0x3f9   : > { %1795 = vadd.xlane.f32.xlu0 %v1794_v55  ;;  %1813 = vadd.xlane.f32.xlu1 %v1812_v2  ;;  %3261 = vpow2.f32 %v1728_v19  ;;  %v1824_v32 = vsel %vm1553_vm13, %v4351_v18, 0.0  ;;  %v4361_v58 = vpop.eup %3259 }
 0x3fa   : > { %1807 = vadd.xlane.f32.xlu2 %v1806_v14  ;;  %3263 = vpow2.f32 %v1736_v13  ;;  %v1830_v27 = vsel %vm1553_vm13, %v4361_v58, 0.0 }
 0x3fb   : > { %3265 = vpow2.f32 %v1740_v61 }
 0x3fc   : > { %v4377_v34 = vpop.xlane.xlu1 %1645 }
 0x3fd   : > { %v4381_v52 = vpop.xlane.xlu2 %1648 }
 0x3ff   : > { %v4363_v30 = vpop.eup %3261 }
 0x400   : > { %v1815_v35 = vsel %vm1553_vm13, %v4363_v30, 0.0  ;;  %v4369_v39 = vpop.eup %3263 }
 0x401   : > { %1792 = vadd.xlane.f32.xlu0 %v1791_v45  ;;  %1810 = vadd.xlane.f32.xlu1 %v1809_v56  ;;  %v4371_v28 = vpop.eup %3265  ;;  %v1827_v62 = vsel %vm1553_vm13, %v4369_v39, 0.0 }
 0x402   : > { %1825 = vadd.xlane.f32.xlu2 %v1824_v32  ;;  %v1833_v46 = vsel %vm1553_vm13, %v4371_v28, 0.0 }
 0x404   : > { %v1748_v5 = vpop.xlane.xlu1 %1747 }
 0x409   : > { %1831 = vadd.xlane.f32.xlu0 %v1830_v27 }
 0x40a   : > { %1816 = vadd.xlane.f32.xlu2 %v1815_v35 }
 0x411   : > { %1828 = vadd.xlane.f32.xlu0 %v1827_v62 }
 0x412   : > { %1834 = vadd.xlane.f32.xlu2 %v1833_v46 }
 0x41a   : > { %951 = vrot.lane.b32.xlu1 %v3794_v63, %s3482_s9 }
 0x41c   : > { %v1820_v51 = vpop.xlane.xlu0 %1819 }
 0x41d   : > { %3267 = vrcp.f32 %v1820_v51 }
 0x41e   : > { %3269 = vrcp.f32 %v1748_v5 }
 0x422   : > { %955 = vrot.lane.b32.xlu1 %v3826_v8, %s3482_s9 }
 0x423   : > { %v3268_v20 = vpop.eup %3267 }
 0x424   : > { %v1754_v23 = vpop.xlane.xlu0 %1753  ;;  %v1760_v54 = vpop.xlane.xlu1 %1759  ;;  %v1898_v63 = vmul.f32 %v3268_v20, %v4236_v29 }
 0x425   : > { %v1823_v12 = vpop.xlane.xlu2 %1822  ;;  %953 = vrot.lane.b32.xlu0 %v3812_v4, %s3482_s9  ;;  %v3270_v22 = vpop.eup %3269 }
 0x426   : > { %3271 = vrcp.f32 %v1823_v12  ;;  %v1930_v14 = vpack.c.bf16 %v1898_v63, %v1898_v63  ;;  %v1874_v15 = vmul.f32 %v3270_v22, %v4228_v50  ;;  %v3087_v12 = vld [vmem:[#allocation4 + $0x40] sm:$0xff]  ;;  %v3089_v22 = vld [vmem:[#allocation4 + $0x50] sm:$0xff] }
 0x427   : > { %3273 = vrcp.f32 %v1760_v54 }
 0x428   : > { %v4395_v16 = vunpack.c.l.b16 %v1930_v14  ;;  %v1906_v42 = vpack.c.bf16 %v1874_v15, %v1874_v15 }
 0x42a   : > { %858 = vrot.lane.b32.xlu2 %v3836_v9, %s3481_s8  ;;  %957 = vrot.lane.b32.xlu1 %v3836_v9, %s3482_s9  ;;  %v1940_v27 = vunpack.c.l.b16 %v1906_v42 }
 0x42c   : > { %v1751_v8 = vpop.xlane.xlu0 %1750  ;;  %v3272_v7 = vpop.eup %3271 }
 0x42d   : > { %3275 = vrcp.f32 %v1751_v8  ;;  %v1763_v55 = vpop.xlane.xlu2 %1762  ;;  %v3274_v2 = vpop.eup %3273  ;;  %v1899_v4 = vmul.f32 %v3272_v7, %v4247_v33  ;;  %v1681_v8 = vsub.f32 %v4222_v43, %v4381_v52 }
 0x42e   : > { %3277 = vrcp.f32 %v1763_v55  ;;  %v1878_v19 = vmul.f32 %v3274_v2, %v4244_v24  ;;  %v1680_v2 = vsub.f32 %v4209_v25, %v4377_v34 }
 0x42f   : > { %3279 = vrcp.f32 %v1754_v23  ;;  %v1931_v29 = vpack.c.bf16 %v1899_v4, %v1899_v4  ;;  %v3088_v4 = vld [vmem:[#allocation4 + $0x48] sm:$0xff] }
 0x430   : > { %v1910_v13 = vpack.c.bf16 %v1878_v19, %v1878_v19  ;;  %v1742_v19 = vmul.f32 1.442695, %v1680_v2 }
 0x431   : > { %v4397_v17 = vunpack.c.l.b16 %v1931_v29 }
 0x432   : > { %v1996_v46 = vunpack.c.l.b16 %v1910_v13 }
 0x433   : > { %v3276_v9 = vpop.eup %3275  ;;  %v2278_v45 = vpack.c.b16 %v4397_v17, %v4395_v16 }
 0x434   : > { %v3278_v3 = vpop.eup %3277  ;;  %v1875_v56 = vmul.f32 %v3276_v9, %v4256_v48  ;;  %v1757_v33 = vpop.xlane.xlu0 %1756 }
 0x435   : > { %v3280_v32 = vpop.eup %3279  ;;  %v1879_v50 = vmul.f32 %v3278_v3, %v4258_v49  ;;  %3281 = vrcp.f32 %v1757_v33  ;;  %v1778_v63 = vpop.xlane.xlu2 %1777 }
 0x436   : > { %v1907_v61 = vpack.c.bf16 %v1875_v56, %v1875_v56  ;;  %v1876_v35 = vmul.f32 %v3280_v32, %v4241_v41  ;;  %3283 = vrcp.f32 %v1778_v63 }
 0x437   : > { %v1911_v24 = vpack.c.bf16 %v1879_v50, %v1879_v50 }
 0x438   : > { %v1941_v62 = vunpack.c.l.b16 %v1907_v61  ;;  %v1908_v20 = vpack.c.bf16 %v1876_v35, %v1876_v35 }
 0x439   : > { %v1997_v51 = vunpack.c.l.b16 %v1911_v24 }
 0x43a   : > { %v1942_v5 = vpack.c.b16 %v1941_v62, %v1940_v27  ;;  %v1968_v7 = vunpack.c.l.b16 %v1908_v20 }
 0x43b   : > { %v3282_v23 = vpop.eup %3281  ;;  %v1998_v54 = vpack.c.b16 %v1997_v51, %v1996_v46  ;;  %v3092_v51 = vld [vmem:[#allocation4 + $0x68] sm:$0xff] }
 0x43c   : > { %v1877_v48 = vmul.f32 %v3282_v23, %v4264_v47  ;;  %2936 = vmatmul.msk.bf16.vlgmr.msra.gmra.mxu0 %vm1553_vm13, %v1942_v5  ;;  %v1766_v49 = vpop.xlane.xlu0 %1765  ;;  %v1744_v47 = vmul.f32 1.442695, %v1681_v8  ;;  %v3284_v43 = vpop.eup %3283 }
 0x43d   : > { %2183 = vmatpush.bf16.msra.mxu0 %v3087_v12  ;;  %2946 = vmatmul.msk.bf16.vlgmr.msra.gmra.mxu2 %vm1553_vm13, %v1998_v54  ;;  %v1884_v52 = vmul.f32 %v3284_v43, %v4267_v59 }
 0x43e   : > { %v1909_v41 = vpack.c.bf16 %v1877_v48, %v1877_v48  ;;  %2239 = vmatpush.bf16.msra.mxu2 %v3089_v22  ;;  %3285 = vpow2.f32 %v1744_v47  ;;  %v3091_v47 = vld [vmem:[#allocation4 + $0x60] sm:$0xff] }
 0x43f   : > { %v1916_v42 = vpack.c.bf16 %v1884_v52, %v1884_v52 }
 0x440   : > { %v1969_v55 = vunpack.c.l.b16 %v1909_v41 }
 0x441   : > { %v2080_v59 = vunpack.c.l.b16 %v1916_v42 }
 0x442   : > { %v1970_v14 = vpack.c.b16 %v1969_v55, %v1968_v7 }
 0x444   : > { %2941 = vmatmul.msk.bf16.vlgmr.msra.gmra.mxu1 %vm1553_vm13, %v1970_v14  ;;  %v1772_v15 = vpop.xlane.xlu0 %1771  ;;  %v1781_v29 = vpop.xlane.xlu2 %1780 }
 0x445   : > { %2211 = vmatpush.bf16.msra.mxu1 %v3088_v4  ;;  %3287 = vrcp.f32 %v1781_v29  ;;  %v4413_v9 = vpop.eup %3285 }
 0x446   : > { %3289 = vrcp.f32 %v1766_v49  ;;  %v1839_v33 = vsel %vm1553_vm13, %v4413_v9, 0.0 }
 0x447   : > { %3291 = vpow2.f32 %v1742_v19 }
 0x44b   : > { %v3288_v3 = vpop.eup %3287 }
 0x44c   : > { %v1769_v25 = vpop.xlane.xlu0 %1768  ;;  %v3290_v34 = vpop.eup %3289  ;;  %v1885_v56 = vmul.f32 %v3288_v3, %v4283_v26 }
 0x44d   : > { %3293 = vrcp.f32 %v1769_v25  ;;  %v4418_v32 = vpop.eup %3291  ;;  %v1880_v50 = vmul.f32 %v3290_v34, %v4275_v53  ;;  %v1790_v63 = vpop.xlane.xlu1 %1789 }
 0x44e   : > { %3295 = vrcp.f32 %v1772_v15  ;;  %v1917_v13 = vpack.c.bf16 %v1885_v56, %v1885_v56  ;;  %v1836_v24 = vsel %vm1553_vm13, %v4418_v32, 0.0 }
 0x44f   : > { %1840 = vadd.xlane.f32.xlu0 %v1839_v33  ;;  %v1912_v26 = vpack.c.bf16 %v1880_v50, %v1880_v50 }
 0x450   : > { %v2081_v61 = vunpack.c.l.b16 %v1917_v13 }
 0x451   : > { %v2024_v53 = vunpack.c.l.b16 %v1912_v26 }
 0x452   : > { %v2082_v35 = vpack.c.b16 %v2081_v61, %v2080_v59 }
 0x453   : > { %v3294_v27 = vpop.eup %3293  ;;  %1837 = vadd.xlane.f32.xlu2 %v1836_v24 }
 0x454   : > { %v1881_v62 = vmul.f32 %v3294_v27, %v4290_v44  ;;  %v1775_v46 = vpop.xlane.xlu0 %1774  ;;  %v3296_v5 = vpop.eup %3295  ;;  %2961 = vmatmul.msk.bf16.vlgmr.msrb.gmra.mxu1 %vm1553_vm13, %v2082_v35 }
 0x455   : > { %3297 = vrcp.f32 %v1775_v46  ;;  %2323 = vmatpush.bf16.msrb.mxu1 %v3092_v51  ;;  %v1882_v54 = vmul.f32 %v3296_v5, %v4280_v21 }
 0x456   : > { %v1913_v23 = vpack.c.bf16 %v1881_v62, %v1881_v62 }
 0x457   : > { %v1914_v49 = vpack.c.bf16 %v1882_v54, %v1882_v54 }
 0x458   : > { %v2025_v12 = vunpack.c.l.b16 %v1913_v23 }
 0x459   : > { %v2052_v7 = vunpack.c.l.b16 %v1914_v49 }
 0x45a   : > { %v2026_v20 = vpack.c.b16 %v2025_v12, %v2024_v53 }
 0x45b   : > { %v3298_v48 = vpop.eup %3297 }
 0x45c   : > { %v1883_v22 = vmul.f32 %v3298_v48, %v4299_v60  ;;  %2951 = vmatmul.msk.bf16.vlgmr.msra.gmra.mxu3 %vm1553_vm13, %v2026_v20  ;;  %v1784_v44 = vpop.xlane.xlu0 %1783  ;;  %v1802_v8 = vpop.xlane.xlu2 %1801 }
 0x45d   : > { %3299 = vrcp.f32 %v1802_v8 }
 0x45e   : > { %v1915_v41 = vpack.c.bf16 %v1883_v22, %v1883_v22  ;;  %3301 = vrcp.f32 %v1784_v44 }
 0x460   : > { %v2053_v55 = vunpack.c.l.b16 %v1915_v41 }
 0x462   : > { %v2054_v2 = vpack.c.b16 %v2053_v55, %v2052_v7 }
 0x463   : > { %v3300_v4 = vpop.eup %3299 }
 0x464   : > { %v1805_v14 = vpop.xlane.xlu1 %1804  ;;  %2956 = vmatmul.msk.bf16.vlgmr.msrb.gmra.mxu0 %vm1553_vm13, %v2054_v2  ;;  %v1787_v21 = vpop.xlane.xlu0 %1786  ;;  %v1892_v29 = vmul.f32 %v3300_v4, %v4310_v6 }
 0x465   : > { %3303 = vrcp.f32 %v1805_v14  ;;  %2295 = vmatpush.bf16.msrb.mxu0 %v3091_v47  ;;  %v1799_v15 = vpop.xlane.xlu2 %1798  ;;  %v3302_v60 = vpop.eup %3301 }
 0x466   : > { %3305 = vrcp.f32 %v1787_v21  ;;  %v1886_v19 = vmul.f32 %v3302_v60, %v4306_v38  ;;  %v1924_v3 = vpack.c.bf16 %v1892_v29, %v1892_v29 }
 0x467   : > { %3307 = vrcp.f32 %v1799_v15 }
 0x468   : > { %v1918_v33 = vpack.c.bf16 %v1886_v19, %v1886_v19  ;;  %v2192_v24 = vunpack.c.l.b16 %v1924_v3 }
 0x46a   : > { %v2108_v27 = vunpack.c.l.b16 %v1918_v33 }
 0x46b   : > { %v3304_v43 = vpop.eup %3303 }
 0x46c   : > { %v3306_v52 = vpop.eup %3305  ;;  %v1893_v25 = vmul.f32 %v3304_v43, %v4323_v36  ;;  %v1796_v34 = vpop.xlane.xlu0 %1795 }
 0x46d   : > { %v1814_v42 = vpop.xlane.xlu1 %1813  ;;  %v3308_v56 = vpop.eup %3307  ;;  %v1887_v13 = vmul.f32 %v3306_v52, %v4318_v40  ;;  %3309 = vrcp.f32 %v1796_v34 }
 0x46e   : > { %v1808_v50 = vpop.xlane.xlu2 %1807  ;;  %v1925_v59 = vpack.c.bf16 %v1893_v25, %v1893_v25  ;;  %3311 = vrcp.f32 %v1790_v63  ;;  %v1891_v38 = vmul.f32 %v3308_v56, %v4320_v10 }
 0x46f   : > { %v1919_v61 = vpack.c.bf16 %v1887_v13, %v1887_v13  ;;  %3313 = vrcp.f32 %v1808_v50 }
 0x470   : > { %v2193_v6 = vunpack.c.l.b16 %v1925_v59  ;;  %v1923_v46 = vpack.c.bf16 %v1891_v38, %v1891_v38 }
 0x471   : > { %v2109_v35 = vunpack.c.l.b16 %v1919_v61 }
 0x472   : > { %v2194_v26 = vpack.c.b16 %v2193_v6, %v2192_v24  ;;  %v2165_v20 = vunpack.c.l.b16 %v1923_v46 }
 0x473   : > { %v3310_v36 = vpop.eup %3309  ;;  %v2110_v62 = vpack.c.b16 %v2109_v35, %v2108_v27 }
 0x474   : > { %v1890_v51 = vmul.f32 %v3310_v36, %v4333_v0  ;;  %v1793_v5 = vpop.xlane.xlu0 %1792  ;;  %2981 = vmatmul.msk.bf16.vlgmr.msra.gmra.mxu1 %vm1553_vm13, %v2194_v26  ;;  %v3312_v23 = vpop.eup %3311 }
 0x475   : > { %v1811_v40 = vpop.xlane.xlu1 %1810  ;;  %3315 = vrcp.f32 %v1793_v5  ;;  %2966 = vmatmul.msk.bf16.vlgmr.msrb.gmra.mxu2 %vm1553_vm13, %v2110_v62  ;;  %v3314_v54 = vpop.eup %3313  ;;  %v1888_v12 = vmul.f32 %v3312_v23, %v4293_v31 }
 0x476   : > { %v1826_v53 = vpop.xlane.xlu2 %1825  ;;  %v1922_v10 = vpack.c.bf16 %v1890_v51, %v1890_v51  ;;  %3317 = vrcp.f32 %v1811_v40  ;;  %v1894_v63 = vmul.f32 %v3314_v54, %v4337_v57 }
 0x477   : > { %v1920_v44 = vpack.c.bf16 %v1888_v12, %v1888_v12  ;;  %3319 = vrcp.f32 %v1826_v53 }
 0x478   : > { %v2164_v48 = vunpack.c.l.b16 %v1922_v10  ;;  %v1926_v7 = vpack.c.bf16 %v1894_v63, %v1894_v63 }
 0x479   : > { %v2136_v31 = vunpack.c.l.b16 %v1920_v44 }
 0x47a   : > { %v2166_v49 = vpack.c.b16 %v2165_v20, %v2164_v48  ;;  %v2220_v4 = vunpack.c.l.b16 %v1926_v7 }
 0x47b   : > { %v3316_v0 = vpop.eup %3315 }
 0x47c   : > { %v3318_v22 = vpop.eup %3317  ;;  %v1889_v8 = vmul.f32 %v3316_v0, %v4347_v37  ;;  %v1832_v41 = vpop.xlane.xlu0 %1831  ;;  %2976 = vmatmul.msk.bf16.vlgmr.msra.gmra.mxu0 %vm1553_vm13, %v2166_v49 }
 0x47d   : > { %v1895_v55 = vmul.f32 %v3318_v22, %v4349_v11  ;;  %v3320_v29 = vpop.eup %3319 }
 0x47e   : > { %v1817_v2 = vpop.xlane.xlu2 %1816  ;;  %v1921_v47 = vpack.c.bf16 %v1889_v8, %v1889_v8  ;;  %v1900_v19 = vmul.f32 %v3320_v29, %v4351_v18 }
 0x47f   : > { %v1927_v14 = vpack.c.bf16 %v1895_v55, %v1895_v55  ;;  %3321 = vrcp.f32 %v1817_v2 }
 0x480   : > { %v2137_v21 = vunpack.c.l.b16 %v1921_v47  ;;  %3323 = vrcp.f32 %v1814_v42  ;;  %v1932_v25 = vpack.c.bf16 %v1900_v19, %v1900_v19 }
 0x481   : > { %v2221_v57 = vunpack.c.l.b16 %v1927_v14 }
 0x482   : > { %v2138_v15 = vpack.c.b16 %v2137_v21, %v2136_v31  ;;  %v2304_v50 = vunpack.c.l.b16 %v1932_v25 }
 0x483   : > { %v2222_v60 = vpack.c.b16 %v2221_v57, %v2220_v4 }
 0x484   : > { %2971 = vmatmul.msk.bf16.vlgmr.msrb.gmra.mxu3 %vm1553_vm13, %v2138_v15  ;;  %v1829_v37 = vpop.xlane.xlu0 %1828 }
 0x485   : > { %3325 = vrcp.f32 %v1829_v37  ;;  %2986 = vmatmul.msk.bf16.vlgmr.msra.gmra.mxu2 %vm1553_vm13, %v2222_v60  ;;  %v3322_v43 = vpop.eup %3321 }
 0x486   : > { %v1835_v11 = vpop.xlane.xlu2 %1834  ;;  %v3324_v52 = vpop.eup %3323  ;;  %v1897_v34 = vmul.f32 %v3322_v43, %v4363_v30 }
 0x487   : > { %3327 = vrcp.f32 %v1835_v11  ;;  %v1896_v18 = vmul.f32 %v3324_v52, %v4335_v1 }
 0x488   : > { %3329 = vrcp.f32 %v1832_v41  ;;  %v1929_v30 = vpack.c.bf16 %v1897_v34, %v1897_v34 }
 0x48a   : > { %v2249_v6 = vunpack.c.l.b16 %v1929_v30 }
 0x48b   : > { %v3326_v3 = vpop.eup %3325 }
 0x48c   : > { %v1901_v56 = vmul.f32 %v3326_v3, %v4369_v39  ;;  %v952_v33 = vpop.permute.xlu1 %951  ;;  %2996 = vmatmul.msk.bf16.vlgmr.msrb.gmra.mxu0 %vm1553_vm13, %v2278_v45  ;;  %v1928_v39 = vpack.c.bf16 %v1896_v18, %v1896_v18 }
 0x48d   : > { %972 = vst.msk [vmem:[#allocation4 + $0x70] sm:$0xf] %vm598_vm11, %v952_v33  ;;  %v3328_v24 = vpop.eup %3327 }
 0x48e   : > { %v859_v42 = vpop.permute.xlu2 %858  ;;  %v1933_v13 = vpack.c.bf16 %v1901_v56, %v1901_v56  ;;  %v3330_v17 = vpop.eup %3329  ;;  %v2248_v38 = vunpack.c.l.b16 %v1928_v39  ;;  %v1903_v1 = vmul.f32 %v3328_v24, %v4371_v28 }
 0x48f   : > { %876 = vst.msk [vmem:[#allocation4 + $0x5c] sm:$0xf] %vm598_vm11, %v859_v42  ;;  %v1902_v35 = vmul.f32 %v3330_v17, %v4361_v58 }
 0x490   : > { %v2305_v59 = vunpack.c.l.b16 %v1933_v13  ;;  %v2250_v26 = vpack.c.b16 %v2249_v6, %v2248_v38  ;;  %v1935_v36 = vpack.c.bf16 %v1903_v1, %v1903_v1 }
 0x491   : > { %v1934_v62 = vpack.c.bf16 %v1902_v35, %v1902_v35 }
 0x492   : > { %v2306_v61 = vpack.c.b16 %v2305_v59, %v2304_v50  ;;  %v2333_v51 = vunpack.c.l.b16 %v1935_v36 }
 0x493   : > { %v2332_v40 = vunpack.c.l.b16 %v1934_v62 }
 0x494   : > { %v956_v16 = vpop.permute.xlu1 %955  ;;  %3001 = vmatmul.msk.bf16.vlgmr.msrb.gmra.mxu1 %vm1553_vm13, %v2306_v61 }
 0x495   : > { %974 = vst.msk [vmem:[#allocation4 + $0x78] sm:$0xf] %vm598_vm11, %v956_v16  ;;  %v2334_v23 = vpack.c.b16 %v2333_v51, %v2332_v40 }
 0x496   : > { %v3090_v45 = vld [vmem:[#allocation4 + $0x58] sm:$0xff] }
 0x497   : > { %v954_v27 = vpop.permute.xlu0 %953  ;;  %2267 = vmatpush.bf16.msra.mxu3 %v3090_v45 }
 0x498   : > { %973 = vst.msk [vmem:[#allocation4 + $0x74] sm:$0xf] %vm598_vm11, %v954_v27 }
 0x49a   : > { %2991 = vmatmul.msk.bf16.vlgmr.msra.gmra.mxu3 %vm1553_vm13, %v2250_v26 }
 0x49c   : > { %v958_v46 = vpop.permute.xlu1 %957 }
 0x49d   : > { %975 = vst.msk [vmem:[#allocation4 + $0x7c] sm:$0xf] %vm598_vm11, %v958_v46 }
 0x49f   : > { %v3093_v5 = vld [vmem:[#allocation4 + $0x70] sm:$0xff] }
 0x4a0   : > { %2351 = vmatpush.bf16.msrb.mxu2 %v3093_v5 }
 0x4a3   : > { %3006 = vmatmul.msk.bf16.vlgmr.msrb.gmra.mxu2 %vm1553_vm13, %v2334_v23 }
 0x4a4   : > { %v3094_v28 = vld [vmem:[#allocation4 + $0x78] sm:$0xff] }
 0x4a5   : > { %2379 = vmatpush.bf16.msrb.mxu3 %v3094_v28 }
 0x4b9   : > { %v1961_v58 = vpop.f32.mrf.mxu0 }
 0x4ba   : > { %v2386_v53 = vpack.c.bf16 %v1961_v58, %v1961_v58 }
 0x4bc   : > { %2418 = vst.msk [vmem:[#allocation5] sm:$0xf] %vm598_vm11, %v2386_v53 }
 0x4c0   : > { %v2017_v54 = vpop.f32.mrf.mxu2 }
 0x4c1   : > { %v2390_v10 = vpack.c.bf16 %v2017_v54, %v2017_v54  ;;  %v1963_v12 = vpop.f32.mrf.mxu0  ;;  %v1989_v20 = vpop.f32.mrf.mxu1 }
 0x4c2   : > { %v2387_v48 = vpack.c.bf16 %v1963_v12, %v1963_v12  ;;  %v2388_v63 = vpack.c.bf16 %v1989_v20, %v1989_v20  ;;  %v1841_v49 = vpop.xlane.xlu0 %1840 }
 0x4c3   : > { %2422 = vst.msk [vmem:[#allocation5 + $0x10] sm:$0xf] %vm598_vm11, %v2390_v10  ;;  %3331 = vrcp.f32 %v1841_v49 }
 0x4c4   : > { %2419 = vst.msk [vmem:[#allocation5 + $0x4] sm:$0xf] %vm598_vm11, %v2387_v48 }
 0x4c5   : > { %2420 = vst.msk [vmem:[#allocation5 + $0x8] sm:$0xf] %vm598_vm11, %v2388_v63 }
 0x4c6   : > { %v1838_v0 = vpop.xlane.xlu2 %1837 }
 0x4c7   : > { %3333 = vrcp.f32 %v1838_v0 }
 0x4c8   : > { %v2019_v22 = vpop.f32.mrf.mxu2 }
 0x4c9   : > { %v3332_v44 = vpop.eup %3331  ;;  %v2391_v8 = vpack.c.bf16 %v2019_v22, %v2019_v22  ;;  %v1991_v41 = vpop.f32.mrf.mxu1 }
 0x4ca   : > { %v1905_v7 = vmul.f32 %v3332_v44, %v4413_v9  ;;  %v2389_v55 = vpack.c.bf16 %v1991_v41, %v1991_v41 }
 0x4cb   : > { %2423 = vst.msk [vmem:[#allocation5 + $0x14] sm:$0xf] %vm598_vm11, %v2391_v8 }
 0x4cc   : > { %2421 = vst.msk [vmem:[#allocation5 + $0xc] sm:$0xf] %vm598_vm11, %v2389_v55  ;;  %v1937_v47 = vpack.c.bf16 %v1905_v7, %v1905_v7  ;;  %v3100_v55 = vld [vmem:[#allocation10 + $0x8] sm:$0xff] }
 0x4cd   : > { %v3334_v2 = vpop.eup %3333  ;;  %2615 = vmatpush.bf16.msra.mxu0 %v3100_v55 }
 0x4ce   : > { %v1904_v14 = vmul.f32 %v3334_v2, %v4418_v32  ;;  %v2361_v21 = vunpack.c.l.b16 %v1937_v47  ;;  %v3099_v2 = vld [vmem:[#allocation10] sm:$0xff] }
 0x4d0   : > { %v1936_v31 = vpack.c.bf16 %v1904_v14, %v1904_v14 }
 0x4d1   : > { %v2101_v43 = vpop.f32.mrf.mxu1  ;;  %2616 = vmatpush.bf16.msra.mxu0 %v3099_v2 }
 0x4d2   : > { %v2360_v4 = vunpack.c.l.b16 %v1936_v31  ;;  %v2396_v42 = vpack.c.bf16 %v2101_v43, %v2101_v43 }
 0x4d4   : > { %v2362_v57 = vpack.c.b16 %v2361_v21, %v2360_v4 }
 0x4d6   : > { %3011 = vmatmul.msk.bf16.vlgmr.msrb.gmra.mxu3 %vm1553_vm13, %v2362_v57 }
 0x4d9   : > { %v2103_v52 = vpop.f32.mrf.mxu1 }
 0x4da   : > { %v2397_v16 = vpack.c.bf16 %v2103_v52, %v2103_v52 }
 0x4df   : > { %v2045_v15 = vpop.f32.mrf.mxu3 }
 0x4e0   : > { %v2392_v60 = vpack.c.bf16 %v2045_v15, %v2045_v15 }
 0x4e1   : > { %v2073_v37 = vpop.f32.mrf.mxu0 }
 0x4e2   : > { %2424 = vst.msk [vmem:[#allocation5 + $0x18] sm:$0xf] %vm598_vm11, %v2392_v60  ;;  %v2394_v9 = vpack.c.bf16 %v2073_v37, %v2073_v37 }
 0x4e4   : > { %2434 = vrot.lane.b32.xlu1 %v2394_v9, %s3483_s11 }
 0x4e7   : > { %v2047_v29 = vpop.f32.mrf.mxu3 }
 0x4e8   : > { %v2393_v11 = vpack.c.bf16 %v2047_v29, %v2047_v29 }
 0x4e9   : > { %v2075_v19 = vpop.f32.mrf.mxu0 }
 0x4ea   : > { %2425 = vst.msk [vmem:[#allocation5 + $0x1c] sm:$0xf] %vm598_vm11, %v2393_v11  ;;  %v2395_v32 = vpack.c.bf16 %v2075_v19, %v2075_v19 }
 0x4ec   : > { %2436 = vrot.lane.b32.xlu1 %v2395_v32, %s3483_s11 }
 0x4f1   : > { %v2213_v56 = vpop.f32.mrf.mxu1 }
 0x4f2   : > { %v2404_v36 = vpack.c.bf16 %v2213_v56, %v2213_v56 }
 0x4f8   : > { %v2129_v3 = vpop.f32.mrf.mxu2 }
 0x4f9   : > { %v2185_v25 = vpop.f32.mrf.mxu0  ;;  %v2215_v50 = vpop.f32.mrf.mxu1  ;;  %v2398_v17 = vpack.c.bf16 %v2129_v3, %v2129_v3 }
 0x4fa   : > { %v2402_v34 = vpack.c.bf16 %v2185_v25, %v2185_v25  ;;  %v2405_v59 = vpack.c.bf16 %v2215_v50, %v2215_v50  ;;  %v3188_v50 = vld [vmem:[%s4577_s5] ss:$0 sm:$0xff] }
 0x4fc   : > { %2475 = vrot.lane.b32.xlu1 %v2402_v34, %s3484_s18 }
 0x500   : > { %v2131_v13 = vpop.f32.mrf.mxu2 }
 0x501   : > { %v2187_v33 = vpop.f32.mrf.mxu0  ;;  %v2399_v51 = vpack.c.bf16 %v2131_v13, %v2131_v13 }
 0x502   : > { %v2403_v18 = vpack.c.bf16 %v2187_v33, %v2187_v33 }
 0x504   : > { %2438 = vrot.lane.b32.xlu1 %v2396_v42, %s3483_s11  ;;  %2477 = vrot.lane.b32.xlu2 %v2403_v18, %s3484_s18 }
 0x507   : > { %v2157_v61 = vpop.f32.mrf.mxu3 }
 0x508   : > { %v2241_v24 = vpop.f32.mrf.mxu2  ;;  %v2400_v5 = vpack.c.bf16 %v2157_v61, %v2157_v61 }
 0x509   : > { %v2297_v30 = vpop.f32.mrf.mxu0  ;;  %v2406_v54 = vpack.c.bf16 %v2241_v24, %v2241_v24 }
 0x50a   : > { %v2410_v39 = vpack.c.bf16 %v2297_v30, %v2297_v30 }
 0x50c   : > { %2481 = vrot.lane.b32.xlu2 %v2405_v59, %s3484_s18  ;;  %2516 = vrot.lane.b32.xlu0 %v2410_v39, %s3485_s26  ;;  %v2638_v59 = vld [vmem:[%s3604_s19] sm:$0xff] }
 0x50f   : > { %v2159_v38 = vpop.f32.mrf.mxu3 }
 0x510   : > { %v2243_v27 = vpop.f32.mrf.mxu2  ;;  %v2401_v12 = vpack.c.bf16 %v2159_v38, %v2159_v38 }
 0x511   : > { %v2299_v6 = vpop.f32.mrf.mxu0  ;;  %v2325_v1 = vpop.f32.mrf.mxu1  ;;  %v2407_v35 = vpack.c.bf16 %v2243_v27, %v2243_v27  ;;  %v2640_v27 = vld [vmem:[%s3604_s19 + $0x10] sm:$0xff] }
 0x512   : > { %v2411_v45 = vpack.c.bf16 %v2299_v6, %v2299_v6  ;;  %v2412_v26 = vpack.c.bf16 %v2325_v1, %v2325_v1 }
 0x514   : > { %2442 = vrot.lane.b32.xlu2 %v2398_v17, %s3483_s11  ;;  %2440 = vrot.lane.b32.xlu0 %v2397_v16, %s3483_s11  ;;  %v2639_v16 = vld [vmem:[%s3604_s19 + $0x8] sm:$0xff] }
 0x515   : > { %2518 = vrot.lane.b32.xlu1 %v2411_v45, %s3485_s26 }
 0x519   : > { %v2327_v46 = vpop.f32.mrf.mxu1 }
 0x51a   : > { %v2413_v40 = vpack.c.bf16 %v2327_v46, %v2327_v46  ;;  %v2641_v46 = vld [vmem:[%s3604_s19 + $0x18] sm:$0xff] }
 0x51c   : > { %2485 = vrot.lane.b32.xlu2 %v2407_v35, %s3484_s18  ;;  %2520 = vrot.lane.b32.xlu0 %v2412_v26, %s3485_s26 }
 0x51d   : > { %2479 = vrot.lane.b32.xlu1 %v2404_v36, %s3484_s18  ;;  %v2269_v62 = vpop.f32.mrf.mxu3 }
 0x51e   : > { %v2408_v48 = vpack.c.bf16 %v2269_v62, %v2269_v62 }
 0x524   : > { %2446 = vrot.lane.b32.xlu2 %v2400_v5, %s3483_s11  ;;  %2444 = vrot.lane.b32.xlu0 %v2399_v51, %s3483_s11 }
 0x525   : > { %2522 = vrot.lane.b32.xlu1 %v2413_v40, %s3485_s26  ;;  %v2271_v23 = vpop.f32.mrf.mxu3 }
 0x526   : > { %v2353_v28 = vpop.f32.mrf.mxu2  ;;  %v2409_v58 = vpack.c.bf16 %v2271_v23, %v2271_v23 }
 0x527   : > { %v2414_v53 = vpack.c.bf16 %v2353_v28, %v2353_v28  ;;  %v2642_v28 = vld [vmem:[%s3604_s19 + $0x20] sm:$0xff] }
 0x52c   : > { %2524 = vrot.lane.b32.xlu0 %v2414_v53, %s3485_s26  ;;  %2489 = vrot.lane.b32.xlu2 %v2409_v58, %s3484_s18 }
 0x52d   : > { %2483 = vrot.lane.b32.xlu1 %v2406_v54, %s3484_s18 }
 0x52e   : > { %v2355_v10 = vpop.f32.mrf.mxu2 }
 0x52f   : > { %v2415_v20 = vpack.c.bf16 %v2355_v10, %v2355_v10 }
 0x534   : > { %2448 = vrot.lane.b32.xlu0 %v2401_v12, %s3483_s11  ;;  %v2643_v12 = vld [vmem:[%s3604_s19 + $0x28] sm:$0xff] }
 0x535   : > { %2526 = vrot.lane.b32.xlu1 %v2415_v20, %s3485_s26 }
 0x53d   : > { %2487 = vrot.lane.b32.xlu1 %v2408_v48, %s3484_s18 }
 0x556   : > { %v2435_v63 = vpop.permute.xlu1 %2434 }
 0x557   : > { %2459 = vst.msk [vmem:[#allocation5] sm:$0xf] %vm2458_vm14, %v2435_v63 }
 0x559   : > { %v2381_v49 = vpop.f32.mrf.mxu3 }
 0x55a   : > { %v2416_v0 = vpack.c.bf16 %v2381_v49, %v2381_v49 }
 0x55c   : > { %2528 = vrot.lane.b32.xlu0 %v2416_v0, %s3485_s26  ;;  %v2644_v0 = vld [vmem:[%s3604_s19 + $0x30] sm:$0xff] }
 0x55e   : > { %v2437_v22 = vpop.permute.xlu1 %2436  ;;  %v2478_v44 = vpop.permute.xlu2 %2477 }
 0x55f   : > { %2460 = vst.msk [vmem:[#allocation5 + $0x4] sm:$0xf] %vm2458_vm14, %v2437_v22 }
 0x560   : > { %2501 = vst.msk [vmem:[#allocation5 + $0x4] sm:$0xf] %vm2499_vm15, %v2478_v44 }
 0x561   : > { %v2383_v8 = vpop.f32.mrf.mxu3 }
 0x562   : > { %v2417_v41 = vpack.c.bf16 %v2383_v8, %v2383_v8 }
 0x564   : > { %2530 = vrot.lane.b32.xlu1 %v2417_v41, %s3485_s26 }
 0x566   : > { %v2482_v7 = vpop.permute.xlu2 %2481 }
 0x56e   : > { %v2476_v47 = vpop.permute.xlu1 %2475  ;;  %v2443_v14 = vpop.permute.xlu2 %2442 }
 0x56f   : > { %2500 = vst.msk [vmem:[#allocation5] sm:$0xf] %vm2499_vm15, %v2476_v47 }
 0x570   : > { %2463 = vst.msk [vmem:[#allocation5 + $0x10] sm:$0xf] %vm2458_vm14, %v2443_v14 }
 0x576   : > { %v2439_v31 = vpop.permute.xlu1 %2438  ;;  %v2486_v21 = vpop.permute.xlu2 %2485 }
 0x577   : > { %2461 = vst.msk [vmem:[#allocation5 + $0x8] sm:$0xf] %vm2458_vm14, %v2439_v31 }
 0x57e   : > { %v2517_v4 = vpop.permute.xlu0 %2516  ;;  %v2447_v57 = vpop.permute.xlu2 %2446 }
 0x57f   : > { %2541 = vst.msk [vmem:[#allocation5] sm:$0xf] %vm2540_vm1, %v2517_v4 }
 0x580   : > { %2465 = vst.msk [vmem:[#allocation5 + $0x18] sm:$0xf] %vm2458_vm14, %v2447_v57 }
 0x586   : > { %v2441_v15 = vpop.permute.xlu0 %2440  ;;  %v2490_v25 = vpop.permute.xlu2 %2489 }
 0x587   : > { %2462 = vst.msk [vmem:[#allocation5 + $0xc] sm:$0xf] %vm2458_vm14, %v2441_v15  ;;  %v2519_v60 = vpop.permute.xlu1 %2518 }
 0x588   : > { %2503 = vst.msk [vmem:[#allocation5 + $0xc] sm:$0xf] %vm2499_vm15, %v2482_v7  ;;  %v2645_v7 = vld [vmem:[%s3604_s19 + $0x38] sm:$0xff] }
 0x589   : > { %2542 = vst.msk [vmem:[#allocation5 + $0x4] sm:$0xf] %vm2540_vm1, %v2519_v60 }
 0x58e   : > { %v2521_v37 = vpop.permute.xlu0 %2520 }
 0x58f   : > { %v2480_v9 = vpop.permute.xlu1 %2479 }
 0x590   : > { %2502 = vst.msk [vmem:[#allocation5 + $0x8] sm:$0xf] %vm2499_vm15, %v2480_v9  ;;  %v3095_v29 = vld [vmem:[#allocation5] sm:$0xff] }
 0x591   : > { %2543 = vst.msk [vmem:[#allocation5 + $0x8] sm:$0xf] %vm2540_vm1, %v2521_v37  ;;  %3036 = vmatmul.msk.bf16.vlgmr.msra.gmra.mxu0 %vm321_vm0, %v3095_v29 }
 0x596   : > { %v2445_v11 = vpop.permute.xlu0 %2444 }
 0x597   : > { %2464 = vst.msk [vmem:[#allocation5 + $0x14] sm:$0xf] %vm2458_vm14, %v2445_v11  ;;  %v2523_v19 = vpop.permute.xlu1 %2522 }
 0x598   : > { %2505 = vst.msk [vmem:[#allocation5 + $0x14] sm:$0xf] %vm2499_vm15, %v2486_v21 }
 0x599   : > { %2544 = vst.msk [vmem:[#allocation5 + $0xc] sm:$0xf] %vm2540_vm1, %v2523_v19 }
 0x59e   : > { %v2525_v32 = vpop.permute.xlu0 %2524 }
 0x59f   : > { %v2484_v43 = vpop.permute.xlu1 %2483 }
 0x5a0   : > { %2504 = vst.msk [vmem:[#allocation5 + $0x10] sm:$0xf] %vm2499_vm15, %v2484_v43  ;;  %v3096_v52 = vld [vmem:[#allocation5 + $0x8] sm:$0xff] }
 0x5a1   : > { %2545 = vst.msk [vmem:[#allocation5 + $0x10] sm:$0xf] %vm2540_vm1, %v2525_v32  ;;  %3037 = vmatmul.msk.bf16.gmra.mxu0 %vm321_vm0, %v3096_v52 }
 0x5a6   : > { %v2449_v3 = vpop.permute.xlu0 %2448 }
 0x5a7   : > { %2466 = vst.msk [vmem:[#allocation5 + $0x1c] sm:$0xf] %vm2458_vm14, %v2449_v3  ;;  %v2527_v34 = vpop.permute.xlu1 %2526 }
 0x5a8   : > { %2507 = vst.msk [vmem:[#allocation5 + $0x1c] sm:$0xf] %vm2499_vm15, %v2490_v25 }
 0x5a9   : > { %2546 = vst.msk [vmem:[#allocation5 + $0x14] sm:$0xf] %vm2540_vm1, %v2527_v34 }
 0x5af   : > { %v2488_v56 = vpop.permute.xlu1 %2487 }
 0x5b0   : > { %2506 = vst.msk [vmem:[#allocation5 + $0x18] sm:$0xf] %vm2499_vm15, %v2488_v56  ;;  %v3097_v33 = vld [vmem:[#allocation5 + $0x10] sm:$0xff] }
 0x5b1   : > { %3038 = vmatmul.msk.bf16.gmra.mxu0 %vm321_vm0, %v3097_v33 }
 0x5ce   : > { %v2529_v42 = vpop.permute.xlu0 %2528 }
 0x5cf   : > { %2547 = vst.msk [vmem:[#allocation5 + $0x18] sm:$0xf] %vm2540_vm1, %v2529_v42 }
 0x5d6   : > { %v2531_v18 = vpop.permute.xlu1 %2530 }
 0x5d7   : > { %2548 = vst.msk [vmem:[#allocation5 + $0x1c] sm:$0xf] %vm2540_vm1, %v2531_v18 }
 0x5de   : > { %v3098_v13 = vld [vmem:[#allocation5 + $0x18] sm:$0xff] }
 0x5df   : > { %3039 = vmatmul.msk.bf16.gmra.mxu0 %vm321_vm0, %v3098_v13  ;;  %vm2662_vm0 = vcmask 257024  }
 0x60e   : > { %v2618_v30 = vpop.f32.mrf.mxu0 }
 0x60f   : > { %v2619_v39 = vadd.f32 %v3188_v50, %v2618_v30 }
 0x611   : > { %v2646_v61 = vadd.f32 %v2638_v59, %v2619_v39 }
 0x613   : > { %v2654_v24 = vpack.c.bf16 %v2646_v61, %v2646_v61 }
 0x615   : > { %2663 = vst.msk [vmem:[%s4534_s15] sm:$0xf] %vm2662_vm0, %v2654_v24 }
 0x616   : > { %v2620_v6 = vpop.f32.mrf.mxu0 }
 0x617   : > { %v2621_v17 = vadd.f32 %v3188_v50, %v2620_v6 }
 0x619   : > { %v2647_v45 = vadd.f32 %v2639_v16, %v2621_v17 }
 0x61b   : > { %v2655_v38 = vpack.c.bf16 %v2647_v45, %v2647_v45 }
 0x61d   : > { %2664 = vst.msk [vmem:[%s4534_s15 + $0x4] sm:$0xf] %vm2662_vm0, %v2655_v38 }
 0x61e   : > { %v2623_v1 = vpop.f32.mrf.mxu0 }
 0x61f   : > { %v2624_v35 = vadd.f32 %v3188_v50, %v2623_v1 }
 0x621   : > { %v2648_v26 = vadd.f32 %v2640_v27, %v2624_v35 }
 0x623   : > { %v2656_v36 = vpack.c.bf16 %v2648_v26, %v2648_v26 }
 0x625   : > { %2665 = vst.msk [vmem:[%s4534_s15 + $0x8] sm:$0xf] %vm2662_vm0, %v2656_v36 }
 0x626   : > { %v2625_v62 = vpop.f32.mrf.mxu0 }
 0x627   : > { %v2626_v51 = vadd.f32 %v3188_v50, %v2625_v62 }
 0x629   : > { %v2649_v5 = vadd.f32 %v2641_v46, %v2626_v51 }
 0x62b   : > { %v2657_v40 = vpack.c.bf16 %v2649_v5, %v2649_v5 }
 0x62d   : > { %2666 = vst.msk [vmem:[%s4534_s15 + $0xc] sm:$0xf] %vm2662_vm0, %v2657_v40 }
 0x62e   : > { %v2628_v23 = vpop.f32.mrf.mxu0 }
 0x62f   : > { %v2629_v58 = vadd.f32 %v3188_v50, %v2628_v23 }
 0x631   : > { %v2650_v53 = vadd.f32 %v2642_v28, %v2629_v58 }
 0x633   : > { %v2658_v54 = vpack.c.bf16 %v2650_v53, %v2650_v53 }
 0x635   : > { %2667 = vst.msk [vmem:[%s4534_s15 + $0x10] sm:$0xf] %vm2662_vm0, %v2658_v54 }
 0x636   : > { %v2630_v10 = vpop.f32.mrf.mxu0 }
 0x637   : > { %v2631_v20 = vadd.f32 %v3188_v50, %v2630_v10 }
 0x639   : > { %v2651_v48 = vadd.f32 %v2643_v12, %v2631_v20 }
 0x63b   : > { %v2659_v63 = vpack.c.bf16 %v2651_v48, %v2651_v48 }
 0x63d   : > { %2668 = vst.msk [vmem:[%s4534_s15 + $0x14] sm:$0xf] %vm2662_vm0, %v2659_v63 }
 0x65c   : > { %v2633_v49 = vpop.f32.mrf.mxu0 }
 0x65d   : > { %v2634_v22 = vadd.f32 %v3188_v50, %v2633_v49 }
 0x65f   : > { %v2652_v44 = vadd.f32 %v2644_v0, %v2634_v22 }
 0x661   : > { %v2660_v8 = vpack.c.bf16 %v2652_v44, %v2652_v44 }
 0x663   : > { %2669 = vst.msk [vmem:[%s4534_s15 + $0x18] sm:$0xf] %vm2662_vm0, %v2660_v8 }
 0x664   : > { %v2635_v41 = vpop.f32.mrf.mxu0 }
 0x665   : > { %v2636_v55 = vadd.f32 %v3188_v50, %v2635_v41 }
 0x667   : > { %v2653_v2 = vadd.f32 %v2645_v7, %v2636_v55 }
 0x669   : > { %v2661_v47 = vpack.c.bf16 %v2653_v2, %v2653_v2 }
 0x66b   : > { %2670 = vst.msk [vmem:[%s4534_s15 + $0x1c] sm:$0xf] %vm2662_vm0, %v2661_v47 }
 0x66c PF: > { %s4591_s24 = smov %s3581_s21  ;;  %p17_p4 = scmp.ge.s32.totalorder %s3570_s17, 4  }
 0x66d   : > { %s4592_s21 = smov %s3455_s22  ;;  %s4593_s22 = smov %s3459_s23 }
 0x66e   : > { %s4594_s23 = smov %s4591_s24  ;;  %s4595_s24 = smov %s3570_s17 }
 0x66f   :  { %19 = sbr.rel (!%p17_p4) target bundleno = 4 (0x4), region = 101 }
 0x674   :  { %2695 = vsyncpa [#allocation7], 1 }
 0x675   :  { %2697 = vsyncpa [#allocation7 + $0x1], 1 }
 0x676   :  { %2698 = vsyncpa [#allocation9], 1 }

</bundles_post_ra>
